<compile_context>
chip_gen: v7x
topology: tpu7x:2x2x1
jax: 0.10.0
libtpu: 0.0.40
codegen_flags: <defaults>
</compile_context>

<pallas_src>
import functools

import jax
import jax.numpy as jnp
from jax.experimental import pallas as pl
from jax.experimental.pallas import tpu as pltpu


def _sa_pool_kernel(feat_ref, p_ref, out_ref, *, cg, eps):
    """ShuffleAttention + global average pool for one (batch, group-chunk) step.

    feat_ref: (Gc, 2*cg, HW)  backbone features (any float dtype)
    p_ref   : (cg, 4)         packed per-channel params
                              [cweight, cbias, sw*gamma, sw*beta + sbias]
    out_ref : (Gc, 2*cg)      pooled, attention-gated per-channel means
                              (pre-channel-shuffle order)
    """
    p = p_ref[...].astype(jnp.float32)
    cw, cb = p[:, 0:1], p[:, 1:2]        # (cg, 1)
    a_s, b_s = p[:, 2:3], p[:, 3:4]      # (cg, 1)  pre-folded sw*gamma, sw*beta+sb

    # Slice the per-group halves straight off the ref (sublane-aligned: cg=80).
    x0 = feat_ref[:, :cg, :].astype(jnp.float32)   # (Gc, cg, HW) channel-attn half
    x1 = feat_ref[:, cg:, :].astype(jnp.float32)   # (Gc, cg, HW) spatial-attn half
    inv_hw = 1.0 / x0.shape[-1]

    # ---- channel attention: avg-pool -> affine -> sigmoid gate ---------------
    mean0 = jnp.sum(x0, axis=-1, keepdims=True) * inv_hw              # (Gc, cg, 1)
    gate_c = jax.nn.sigmoid(cw * mean0 + cb)                          # (Gc, cg, 1)
    # mean_hw(x0 * gate_c) == mean_hw(x0) * gate_c (gate is spatially constant)
    out_ref[:, :cg] = (mean0 * gate_c)[..., 0]                        # (Gc, cg)

    # ---- spatial attention: per-channel GroupNorm -> affine -> sigmoid gate --
    # One sweep: sum and sum-of-squares (f32 accumulation).
    sum1 = jnp.sum(x1, axis=-1, keepdims=True)                        # (Gc, cg, 1)
    sumsq1 = jnp.sum(x1 * x1, axis=-1, keepdims=True)                 # (Gc, cg, 1)
    mean1 = sum1 * inv_hw
    var1 = jnp.maximum(sumsq1 * inv_hw - mean1 * mean1, 0.0)
    # Fold GN affine, sigmoid pre-affine and mean subtraction into one
    # per-channel scale/offset (all on the tiny (Gc, cg, 1) shapes):
    #   sigmoid(sw*((x-mu)*rsqrt(var+eps)*gamma + beta) + sb)
    #     == sigmoid(x*scale + offset)
    scale = a_s * jax.lax.rsqrt(var1 + eps)                           # (Gc, cg, 1)
    offset = b_s - mean1 * scale                                      # (Gc, cg, 1)
    gate_s = jax.nn.sigmoid(x1 * scale + offset)                      # (Gc, cg, HW)
    out_ref[:, cg:] = (jnp.sum(x1 * gate_s, axis=-1, keepdims=True)
                       * inv_hw)[..., 0]                              # (Gc, cg)


def efficientnet_single_head(feat, params, *, G=8, eps=1e-5, groups_per_block=None):
    """ShuffleAttention -> AdaptiveAvgPool2d(1) -> flatten -> Dropout(eval) -> Linear."""
    B, C, H, W = feat.shape
    Cg = C // (2 * G)
    HW = H * W
    ncls = params["fc_w"].shape[0]

    if groups_per_block is None:
        # Small batch: split groups so there are >=4 grid steps (2 per TC on
        # v7x).  Larger batch: one full-group step per batch element (v5e
        # prefers the bigger blocks to amortize per-step overhead).
        groups_per_block = G if B >= 4 else max(1, G // 2)
    assert G % groups_per_block == 0, (G, groups_per_block)
    n_chunks = G // groups_per_block
    n_steps = B * n_chunks

    # Flatten (batch, group-chunk) into one leading grid axis; contiguous
    # reshape, feature map stays in its native dtype (bf16 transport is fine).
    x = feat.reshape(n_steps, groups_per_block, 2 * Cg, HW)

    # Pack the per-channel attention params; the GN affine and the sigmoid
    # pre-affine of the spatial branch are pre-folded here.
    a_s = params["sweight"] * params["gn_gamma"]
    b_s = params["sweight"] * params["gn_beta"] + params["sbias"]
    p = jnp.stack([params["cweight"], params["cbias"], a_s, b_s],
                  axis=-1).astype(jnp.float32)                        # (Cg, 4)

    kernel = functools.partial(_sa_pool_kernel, cg=Cg, eps=eps)

    bytes_in = x.size * x.dtype.itemsize
    cost = pl.CostEstimate(
        flops=5 * B * C * HW,
        # spatial-gate sigmoids (full size) + channel-gate sigmoid + rsqrt
        transcendentals=B * (C // 2) * HW + 2 * B * (C // 2),
        bytes_accessed=bytes_in + p.size * 4 + B * C * 4)

    pooled = pl.pallas_call(
        kernel,
        out_shape=jax.ShapeDtypeStruct((n_steps, groups_per_block, 2 * Cg),
                                       jnp.float32),
        grid=(n_steps,),
        in_specs=[
            pl.BlockSpec((None, groups_per_block, 2 * Cg, HW),
                         lambda i: (i, 0, 0, 0)),
            pl.BlockSpec((Cg, 4), lambda i: (0, 0)),
        ],
        out_specs=pl.BlockSpec((None, groups_per_block, 2 * Cg),
                               lambda i: (i, 0, 0)),
        compiler_params=pltpu.CompilerParams(
            dimension_semantics=("parallel",)),
        cost_estimate=cost,
    )(x, p)

    pooled = pooled.reshape(B, C)    # pre-channel-shuffle channel order (free)

    # channel_shuffle(groups=2) commutes with global average pooling, so fold
    # the channel permutation into the FC weight columns; the tiny GEMM runs
    # in XLA (MXU) outside the Pallas kernel.
    c_idx = jnp.arange(C)
    inv_perm = 2 * (c_idx % (C // 2)) + c_idx // (C // 2)
    w_eff = params["fc_w"].astype(jnp.float32)[:, inv_perm]           # (ncls, C)
    # Dropout(0.4) is eval-mode identity.
    return pooled @ w_eff.T + params["fc_b"].astype(jnp.float32)


def init_params(key, C=1280, G=8, train_classes=10):
    """Deterministic synthetic params (shapes match the module's __init__)."""
    Cg = C // (2 * G)
    ks = jax.random.split(key, 8)
    return {
        "cweight": 0.1 * jax.random.normal(ks[0], (Cg,), jnp.float32),
        "cbias": 1.0 + 0.1 * jax.random.normal(ks[1], (Cg,), jnp.float32),
        "sweight": 0.1 * jax.random.normal(ks[2], (Cg,), jnp.float32),
        "sbias": 1.0 + 0.1 * jax.random.normal(ks[3], (Cg,), jnp.float32),
        "gn_gamma": 1.0 + 0.1 * jax.random.normal(ks[4], (Cg,), jnp.float32),
        "gn_beta": 0.1 * jax.random.normal(ks[5], (Cg,), jnp.float32),
        "fc_w": 0.05 * jax.random.normal(ks[6], (train_classes, C), jnp.float32),
        "fc_b": 0.1 * jax.random.normal(ks[7], (train_classes,), jnp.float32),
    }


def reference_forward(feat, params, *, G=8, eps=1e-5):
    """Pure-JAX reference replicating the PyTorch semantics (eval mode)."""
    B, C, H, W = feat.shape
    Cg = C // (2 * G)
    x = feat.astype(jnp.float32).reshape(B * G, 2 * Cg, H, W)
    x0, x1 = x[:, :Cg], x[:, Cg:]
    # channel attention
    xc = x0.mean(axis=(2, 3), keepdims=True)
    xc = params["cweight"].reshape(1, Cg, 1, 1) * xc + params["cbias"].reshape(1, Cg, 1, 1)
    xc = x0 * jax.nn.sigmoid(xc)
    # spatial attention (GroupNorm with num_groups == num_channels)
    mu = x1.mean(axis=(2, 3), keepdims=True)
    var = x1.var(axis=(2, 3), keepdims=True)
    gn = ((x1 - mu) / jnp.sqrt(var + eps) * params["gn_gamma"].reshape(1, Cg, 1, 1)
          + params["gn_beta"].reshape(1, Cg, 1, 1))
    xs = x1 * jax.nn.sigmoid(params["sweight"].reshape(1, Cg, 1, 1) * gn
                             + params["sbias"].reshape(1, Cg, 1, 1))
    out = jnp.concatenate([xc, xs], axis=1).reshape(B, C, H, W)
    # channel shuffle, groups=2
    out = out.reshape(B, 2, C // 2, H, W).transpose(0, 2, 1, 3, 4).reshape(B, C, H, W)
    pooled = out.mean(axis=(2, 3))                       # AdaptiveAvgPool2d(1)+flatten
    return pooled @ params["fc_w"].T + params["fc_b"]    # Dropout = identity (eval)


if __name__ == "__main__":
    key = jax.random.PRNGKey(0)
    kfeat, kparams = jax.random.split(key)

    # Feature map EfficientNet-b0 would emit (C=1280); small spatial 16x16.
    B, C, H, W = 2, 1280, 16, 16
    G, train_classes = 8, 10
    feat = jax.random.normal(kfeat, (B, C, H, W), jnp.float32)
    params = init_params(kparams, C=C, G=G, train_classes=train_classes)

    out = efficientnet_single_head(feat, params, G=G)
    out = jax.block_until_ready(out)

    ref = reference_forward(feat, params, G=G)
    assert out.shape == (B, train_classes)
    assert jnp.allclose(out, ref, atol=2e-4, rtol=2e-3), (out, ref)
    print("KERNEL_OK")
</pallas_src>

<mosaic_0001>
module attributes {stable_mosaic.version = 11 : i64} {
  func.func @_sa_pool_kernel(%arg0: i32, %arg1: memref<1x4x160x256xf32, #tpu.memory_space<vmem>>, %arg2: memref<80x4xf32, #tpu.memory_space<vmem>>, %arg3: memref<1x4x160xf32, #tpu.memory_space<vmem>>) attributes {dimension_semantics = [#tpu.dimension_semantics<parallel>], iteration_bounds = array<i64: 4>, scalar_prefetch = 0 : i64, scratch_operands = 0 : i64, tpu.core_type = #tpu.core_type<tc>, window_params = [{transform_indices = @transform_0, window_bounds = array<i64: 1, 4, 160, 256>}, {pipeline_mode = #tpu.pipeline_mode<synchronous>, transform_indices = @transform_1, window_bounds = array<i64: 80, 4>}, {transform_indices = @transform_2, window_bounds = array<i64: 1, 4, 160>}]} {
    %c0 = arith.constant 0 : index
    %c0_0 = arith.constant 0 : index
    %0 = vector.load %arg2[%c0, %c0_0] : memref<80x4xf32, #tpu.memory_space<vmem>>, vector<80x4xf32>
    %1 = vector.extract_strided_slice %0 {offsets = [0, 0], sizes = [80, 1], strides = [1, 1]} : vector<80x4xf32> to vector<80x1xf32>
    %2 = vector.extract_strided_slice %0 {offsets = [0, 1], sizes = [80, 1], strides = [1, 1]} : vector<80x4xf32> to vector<80x1xf32>
    %3 = vector.extract_strided_slice %0 {offsets = [0, 2], sizes = [80, 1], strides = [1, 1]} : vector<80x4xf32> to vector<80x1xf32>
    %4 = vector.extract_strided_slice %0 {offsets = [0, 3], sizes = [80, 1], strides = [1, 1]} : vector<80x4xf32> to vector<80x1xf32>
    %c0_1 = arith.constant 0 : index
    %c0_2 = arith.constant 0 : index
    %c0_3 = arith.constant 0 : index
    %c0_4 = arith.constant 0 : index
    %5 = vector.load %arg1[%c0_1, %c0_2, %c0_3, %c0_4] : memref<1x4x160x256xf32, #tpu.memory_space<vmem>>, vector<1x4x80x256xf32>
    %6 = vector.shape_cast %5 : vector<1x4x80x256xf32> to vector<4x80x256xf32>
    %c0_5 = arith.constant 0 : index
    %c0_6 = arith.constant 0 : index
    %c80 = arith.constant 80 : index
    %c0_7 = arith.constant 0 : index
    %7 = vector.load %arg1[%c0_5, %c0_6, %c80, %c0_7] : memref<1x4x160x256xf32, #tpu.memory_space<vmem>>, vector<1x4x80x256xf32>
    %8 = vector.shape_cast %7 : vector<1x4x80x256xf32> to vector<4x80x256xf32>
    %cst = arith.constant dense<0.000000e+00> : vector<4x80xf32>
    %9 = vector.multi_reduction <add>, %6, %cst [2] : vector<4x80x256xf32> to vector<4x80xf32>
    %10 = vector.shape_cast %9 : vector<4x80xf32> to vector<4x80x1xf32>
    %cst_8 = arith.constant 3.906250e-03 : f32
    %11 = vector.broadcast %cst_8 : f32 to vector<4x80x1xf32>
    %12 = arith.mulf %10, %11 : vector<4x80x1xf32>
    %13 = vector.shape_cast %1 : vector<80x1xf32> to vector<1x80x1xf32>
    %14 = vector.broadcast %13 : vector<1x80x1xf32> to vector<4x80x1xf32>
    %15 = arith.mulf %14, %12 : vector<4x80x1xf32>
    %16 = vector.shape_cast %2 : vector<80x1xf32> to vector<1x80x1xf32>
    %17 = vector.broadcast %16 : vector<1x80x1xf32> to vector<4x80x1xf32>
    %18 = arith.addf %15, %17 : vector<4x80x1xf32>
    %19 = arith.negf %18 : vector<4x80x1xf32>
    %20 = math.exp %19 : vector<4x80x1xf32>
    %cst_9 = arith.constant 1.000000e+00 : f32
    %21 = vector.broadcast %cst_9 : f32 to vector<4x80x1xf32>
    %22 = arith.addf %21, %20 : vector<4x80x1xf32>
    %23 = arith.divf %21, %22 : vector<4x80x1xf32>
    %24 = arith.mulf %12, %23 : vector<4x80x1xf32>
    %25 = vector.shape_cast %24 : vector<4x80x1xf32> to vector<4x80xf32>
    %c0_10 = arith.constant 0 : index
    %c0_11 = arith.constant 0 : index
    %c0_12 = arith.constant 0 : index
    %26 = vector.load %arg3[%c0_10, %c0_11, %c0_12] : memref<1x4x160xf32, #tpu.memory_space<vmem>>, vector<1x4x80xf32>
    %27 = vector.shape_cast %26 : vector<1x4x80xf32> to vector<4x80xf32>
    %28 = vector.shape_cast %25 : vector<4x80xf32> to vector<1x4x80xf32>
    tpu.vector_store %arg3[%c0_10, %c0_11, %c0_12], %28 {strides = array<i32>} : memref<1x4x160xf32, #tpu.memory_space<vmem>>, vector<1x4x80xf32>,
    %cst_13 = arith.constant dense<0.000000e+00> : vector<4x80xf32>
    %29 = vector.multi_reduction <add>, %8, %cst_13 [2] : vector<4x80x256xf32> to vector<4x80xf32>
    %30 = vector.shape_cast %29 : vector<4x80xf32> to vector<4x80x1xf32>
    %31 = arith.mulf %8, %8 : vector<4x80x256xf32>
    %cst_14 = arith.constant dense<0.000000e+00> : vector<4x80xf32>
    %32 = vector.multi_reduction <add>, %31, %cst_14 [2] : vector<4x80x256xf32> to vector<4x80xf32>
    %33 = vector.shape_cast %32 : vector<4x80xf32> to vector<4x80x1xf32>
    %cst_15 = arith.constant 3.906250e-03 : f32
    %34 = vector.broadcast %cst_15 : f32 to vector<4x80x1xf32>
    %35 = arith.mulf %30, %34 : vector<4x80x1xf32>
    %cst_16 = arith.constant 3.906250e-03 : f32
    %36 = vector.broadcast %cst_16 : f32 to vector<4x80x1xf32>
    %37 = arith.mulf %33, %36 : vector<4x80x1xf32>
    %38 = arith.mulf %35, %35 : vector<4x80x1xf32>
    %39 = arith.subf %37, %38 : vector<4x80x1xf32>
    %cst_17 = arith.constant 0.000000e+00 : f32
    %40 = vector.broadcast %cst_17 : f32 to vector<4x80x1xf32>
    %41 = arith.maximumf %39, %40 : vector<4x80x1xf32>
    %cst_18 = arith.constant 9.99999974E-6 : f32
    %42 = vector.broadcast %cst_18 : f32 to vector<4x80x1xf32>
    %43 = arith.addf %41, %42 : vector<4x80x1xf32>
    %44 = math.rsqrt %43 : vector<4x80x1xf32>
    %45 = vector.shape_cast %3 : vector<80x1xf32> to vector<1x80x1xf32>
    %46 = vector.broadcast %45 : vector<1x80x1xf32> to vector<4x80x1xf32>
    %47 = arith.mulf %46, %44 : vector<4x80x1xf32>
    %48 = arith.mulf %35, %47 : vector<4x80x1xf32>
    %49 = vector.shape_cast %4 : vector<80x1xf32> to vector<1x80x1xf32>
    %50 = vector.broadcast %49 : vector<1x80x1xf32> to vector<4x80x1xf32>
    %51 = arith.subf %50, %48 : vector<4x80x1xf32>
    %52 = vector.broadcast %47 : vector<4x80x1xf32> to vector<4x80x256xf32>
    %53 = arith.mulf %8, %52 : vector<4x80x256xf32>
    %54 = vector.broadcast %51 : vector<4x80x1xf32> to vector<4x80x256xf32>
    %55 = arith.addf %53, %54 : vector<4x80x256xf32>
    %56 = arith.negf %55 : vector<4x80x256xf32>
    %57 = math.exp %56 : vector<4x80x256xf32>
    %cst_19 = arith.constant 1.000000e+00 : f32
    %58 = vector.broadcast %cst_19 : f32 to vector<4x80x256xf32>
    %59 = arith.addf %58, %57 : vector<4x80x256xf32>
    %60 = arith.divf %58, %59 : vector<4x80x256xf32>
    %61 = arith.mulf %8, %60 : vector<4x80x256xf32>
    %cst_20 = arith.constant dense<0.000000e+00> : vector<4x80xf32>
    %62 = vector.multi_reduction <add>, %61, %cst_20 [2] : vector<4x80x256xf32> to vector<4x80xf32>
    %63 = vector.shape_cast %62 : vector<4x80xf32> to vector<4x80x1xf32>
    %cst_21 = arith.constant 3.906250e-03 : f32
    %64 = vector.broadcast %cst_21 : f32 to vector<4x80x1xf32>
    %65 = arith.mulf %63, %64 : vector<4x80x1xf32>
    %66 = vector.shape_cast %65 : vector<4x80x1xf32> to vector<4x80xf32>
    %c0_22 = arith.constant 0 : index
    %c0_23 = arith.constant 0 : index
    %c80_24 = arith.constant 80 : index
    %67 = vector.load %arg3[%c0_22, %c0_23, %c80_24] : memref<1x4x160xf32, #tpu.memory_space<vmem>>, vector<1x4x80xf32>
    %68 = vector.shape_cast %67 : vector<1x4x80xf32> to vector<4x80xf32>
    %69 = vector.shape_cast %66 : vector<4x80xf32> to vector<1x4x80xf32>
    tpu.vector_store %arg3[%c0_22, %c0_23, %c80_24], %69 {strides = array<i32>} : memref<1x4x160xf32, #tpu.memory_space<vmem>>, vector<1x4x80xf32>,
    return
  }
  func.func @transform_0(%arg0: i32) -> (i32, i32, i32, i32) {
    %c0_i32 = arith.constant 0 : i32
    %c0_i32_0 = arith.constant 0 : i32
    %c0_i32_1 = arith.constant 0 : i32
    %c0_i32_2 = arith.constant 0 : i32
    return %arg0, %c0_i32, %c0_i32_0, %c0_i32_1 : i32, i32, i32, i32
  }
  func.func @transform_1(%arg0: i32) -> (i32, i32) {
    %c0_i32 = arith.constant 0 : i32
    %c0_i32_0 = arith.constant 0 : i32
    %c0_i32_1 = arith.constant 0 : i32
    return %c0_i32, %c0_i32_0 : i32, i32
  }
  func.func @transform_2(%arg0: i32) -> (i32, i32, i32) {
    %c0_i32 = arith.constant 0 : i32
    %c0_i32_0 = arith.constant 0 : i32
    %c0_i32_1 = arith.constant 0 : i32
    return %arg0, %c0_i32, %c0_i32_0 : i32, i32, i32
  }
}

</mosaic_0001>

<bundles_post_ra>
// kernel: tpu_custom_call.1
= control target key start
LH: loop header
LB: loop body
LE: loop exit
PB: predicated region body
PF: predicated region fallthrough
CT: control target
= control target key end

     0   :  { %7 = vsyncpa [#allocation3], 0  ;;  %s8734_s0 = inlined_call_operand.hbm [shape: f32[4,4,160,256], index: 0, kind: input, shape index: {}]   ;;  %s8735_s1 = inlined_call_operand.vmem [shape: f32[80,4], index: 1, kind: input, shape index: {}]   ;;  %s8736_s2 = inlined_call_operand.hbm [shape: f32[4,4,160], index: 2, kind: output, shape index: {}]  }
   0x1   :  { %9 = vsyncpa [#allocation3 + $0x1], 0 }
   0x2   :  { %10 = vsyncpa [#allocation4], 0 }
   0x3   :  { %12 = vsyncpa [#allocation4 + $0x1], 0  ;;  %s5567_s9 = smov 0   ;;  %s5569_s10 = smov 0  }
   0x4   :  { %s5571_s11 = smov 0   ;;  %s5573_s12 = smov 0  }
   0x5 LB: > { %s5588_s13 = sadd.s32 4294967295, %s5539_s12   ;;  %s4577_s14 = sadd.s32 4294967294, %s5539_s12   ;;  %s5539_s12 = sphi %s5573_s12, %s9152_s12   ;;  %s5535_s11 = sphi %s5571_s11, %s9151_s11   ;;  %s5531_s10 = sphi %s5569_s10, %s9150_s10   ;;  %s5527_s9 = sphi %s5567_s9, %s9149_s9  }
   0x6   : > { %s5592_s15 = sadd.s32 1, %s5539_s12   ;;  %s25_s16 = sadd.s32 1, %s5535_s11 }
   0x7   : > { %s22_s17 = ssub.s32 %s5539_s12, %s5592_s15  ;;  %p32_p0 = scmp.ne.s32.totalorder %s5535_s11, %s5531_s10 }
   0x8   : > { %p23_p1 = scmp.eq.s32.totalorder %s22_s17, 0  ;;  %p33_p2 = scmp.eq.s32.totalorder %s5539_s12, 0 }
   0x9   : > { %p38_p3 = scmp.ne.s32.totalorder %s5531_s10, %s5527_s9  ;;  %p39_p4 = scmp.eq.s32.totalorder %s5588_s13, 0 }
   0xa   : > { %s5604_s18 = scalar_select %p23_p1, %s5535_s11, %s25_s16  }
   0xb   : > { %p34_p5 = por %p33_p2, %p32_p0  ;;  %p5606_p6 = por %p39_p4, %p38_p3 }
   0xc   : > { %p83_p7 = scmp.eq.s32.totalorder %s5588_s13, 3  ;;  %p89_p8 = scmp.eq.s32.totalorder %s4577_s14, 3 }
   0xd   : > { %p4724_p9 = scmp.lt.s32.totalorder %s5539_s12, 4  ;;  %s112_s22 = sand.u32 1, %s5535_s11  }
   0xe   : > { %p5612_p10 = por %p83_p7, %p32_p0  ;;  %p5616_p11 = por %p89_p8, %p38_p3 }
   0xf   : > { %s4710_s23 = smul.u32 20480, %s5539_s12  ;;  %p5627_p12 = pnand %p4724_p9, %p34_p5 }
  0x10   : > { %s8838_s20 = scalar_select %p5612_p10, 1, 0 }
  0x11   : > { %s8839_s21 = scalar_select %p5616_p11, 1, 0 }
  0x12   : > { %s4709_s24 = smul.u32 1280, %s112_s22  ;;  %s5625_s27 = scalar_lea.hbm %s8734_s0, %s4710_s23 }
  0x13   : > { %s5633_s3 = scalar_lea.sflag [#allocation3], %s112_s22  ;;  %s5443_s4 = scalar_lea.hbm %s5625_s27, 20480 }
  0x14   : > { %s116_s29 = scalar_lea.vmem [#allocation2], %s4709_s24  ;;  %p5444_p13 = scmp.ne.s32.totalorder %s5625_s27, %s5443_s4 }
  0x15   : > { %s123_s30 = sshll.u32 %s116_s29, 4  ;;  %p5445_p0 = pneg %p5627_p12  ;;  %s5631_s30 = int_to_ptr.vmem [resolvable:$true] %s123_s30 }
  0x16   : > { %s5448_s7 = scalar_lea.hbm %s8734_s0, 81920  ;;  %p5449_p3 = scmp.lt.u32.totalorder %s5625_s27, %s8734_s0 }
  0x17   : > { %p5446_p1 = pnand %p5445_p0, %p5444_p13  ;;  %p5450_p4 = scmp.lt.u32.totalorder %s5448_s7, %s5443_s4 }
  0x18   : > { %p5452_p7 = scmp.lt.u32.totalorder %s5443_s4, %s5625_s27 }
  0x19   : > { %p5447_p2 = pneg %p5446_p1  ;;  %p5451_p5 = por %p5450_p4, %p5449_p3 }
  0x1b   : > { %p5453_p8 = por %p5452_p7, %p5451_p5 }
  0x1d   : > { %p5454_p9 = pnand %p5453_p8, %p5447_p2 }
  0x1f   : > { %5457 = shalt.err (!%p5454_p9)
}
  0x20   : > { %s5458_s16 = scalar_lea.vmem %s5631_s30, 20480  ;;  %s5541_s17 = smov [#allocation2]  }
  0x21   : > { %p5459_p13 = scmp.ne.s32.totalorder %s5631_s30, %s5458_s16  ;;  %s5463_s22 = sshll.u32 %s5541_s17, 4  ;;  %s5464_s22 = int_to_ptr.vmem [resolvable:$false] %s5463_s22 }
  0x22   : > { %s5465_s23 = scalar_lea.vmem %s5464_s22, 40960  ;;  %p5466_p10 = scmp.lt.s32.totalorder %s5631_s30, %s5464_s22 }
  0x23   : > { %p5461_p1 = pnand %p5459_p13, %p5445_p0  ;;  %p5467_p3 = scmp.lt.s32.totalorder %s5465_s23, %s5458_s16 }
  0x25   : > { %p5462_p11 = pneg %p5461_p1  ;;  %p5468_p4 = por %p5467_p3, %p5466_p10 }
  0x27   : > { %p5469_p5 = pnand %p5468_p4, %p5462_p11 }
  0x29   : > { %5472 = shalt.err (!%p5469_p5)
}
  0x2a   : > { %s5542_s24 = smov 256   ;;  %s5543_s25 = smov 16  }
  0x2b   : > { %4719 = dma.hbm_to_vmem [thread:$0]  (!%p5627_p12), %s5625_s27, 20480, %s5631_s30, %s5633_s3, %s5542_s24, %s5542_s24, %s5543_s25  }
  0x2c   : > { %p4581_p0 = scmp.ge.s32.totalorder %s5539_s12, 1  ;;  %p131_p2 = scmp.lt.s32.totalorder %s5539_s12, 5 }
  0x2e   : > { %p132_p7 = pnand %p4581_p0, %p131_p2 }
  0x30   : > { %135 = sbr.rel (%p132_p7) target bundleno = 1266 (0x4f2), region = 28 }
  0x37   : > { %s5664_s26 = sand.u32 1, %s5531_s10  }
  0x38   : > { %s4711_s29 = smul.u32 1280, %s5664_s26  ;;  %s138_s4 = scalar_lea.sflag [#allocation3], %s5664_s26 }
  0x3a   : > { %s5668_s5 = scalar_lea.vmem [#allocation2], %s4711_s29 }
  0x3b   : > { %5518 = dma.done.wait (%p5606_p6), %s138_s4, 20480  }
  0x3c   : > { %5520 = vsyncadd (%p5606_p6), %s138_s4, 4294946816  ;;  %v176_v0 = vld [vmem:[%s5668_s5 + $0x20] sm:$0xff]  ;;  %v177_v1 = vld [vmem:[%s5668_s5 + $0x28] sm:$0xff]  ;;  %s5544_s28 = smov 127   ;;  %s5546_s14 = smov 1   ;;  %vm1143_vm0 = vcmask 130112  }
  0x3d   : > { %v172_v2 = vld [vmem:[%s5668_s5] sm:$0xff]  ;;  %v338_v3 = vadd.f32 %v177_v1, %v176_v0  ;;  %v173_v4 = vld [vmem:[%s5668_s5 + $0x8] sm:$0xff]  ;;  %v178_v5 = vld [vmem:[%s5668_s5 + $0x30] sm:$0xff]  ;;  %vm1150_vm1 = vcmask 195712   ;;  %vm1157_vm2 = vcmask 261312   ;;  %vm1164_vm3 = vcmask 326912  }
  0x3e   : > { %v179_v6 = vld [vmem:[%s5668_s5 + $0x38] sm:$0xff]  ;;  %v332_v7 = vadd.f32 %v173_v4, %v172_v2  ;;  %v174_v8 = vld [vmem:[%s5668_s5 + $0x10] sm:$0xff]  ;;  %v180_v14 = vld [vmem:[%s5668_s5 + $0x40] sm:$0xff]  ;;  %vm1171_vm4 = vcmask 392512   ;;  %vm1178_vm5 = vcmask 458112   ;;  %vm1185_vm6 = vcmask 523712  }
  0x3f   : > { %v175_v9 = vld [vmem:[%s5668_s5 + $0x18] sm:$0xff]  ;;  %339 = vadd.xlane.f32.xlu1 %v338_v3  ;;  %v341_v10 = vadd.f32 %v179_v6, %v178_v5  ;;  %v182_v12 = vld [vmem:[%s5668_s5 + $0x50] sm:$0xff]  ;;  %v181_v15 = vld [vmem:[%s5668_s5 + $0x48] sm:$0xff]  ;;  %vm1192_vm7 = vcmask 589312   ;;  %vm1199_vm8 = vcmask 654912   ;;  %vm1348_vm9 = vcmask 1041409  }
  0x40   : > { %333 = vadd.xlane.f32.xlu0 %v332_v7  ;;  %v335_v11 = vadd.f32 %v175_v9, %v174_v8  ;;  %v183_v13 = vld [vmem:[%s5668_s5 + $0x58] sm:$0xff]  ;;  %v344_v17 = vadd.f32 %v181_v15, %v180_v14  ;;  %v186_v18 = vld [vmem:[%s5668_s5 + $0x70] sm:$0xff]  ;;  %v184_v20 = vld [vmem:[%s5668_s5 + $0x60] sm:$0xff]  ;;  %vm1350_vm10 = vcmask 1042434   ;;  %s4582_s24 = sshll.u32 %s5664_s26, 3  ;;  %vm1352_vm11 = vcmask 1043459  }
  0x41   : > { %v347_v16 = vadd.f32 %v183_v13, %v182_v12  ;;  %v187_v19 = vld [vmem:[%s5668_s5 + $0x78] sm:$0xff]  ;;  %v185_v21 = vld [vmem:[%s5668_s5 + $0x68] sm:$0xff]  ;;  %v190_v24 = vld [vmem:[%s5668_s5 + $0x90] sm:$0xff]  ;;  %vm1355_vm12 = vcmask 650240   ;;  %vm4287_vm13 = vcmask 786112   ;;  %s8566_s25 = scalar_lea.vmem [#allocation5], %s4582_s24 }
  0x42   : > { %v353_v22 = vadd.f32 %v187_v19, %v186_v18  ;;  %v350_v23 = vadd.f32 %v185_v21, %v184_v20  ;;  %v191_v25 = vld [vmem:[%s5668_s5 + $0x98] sm:$0xff]  ;;  %v188_v26 = vld [vmem:[%s5668_s5 + $0x80] sm:$0xff]  ;;  %v189_v27 = vld [vmem:[%s5668_s5 + $0x88] sm:$0xff]  ;;  %vm4294_vm14 = vcmask 851712   ;;  %vm4301_vm15 = vcmask 917312   ;;  %s4708_s29 = sshll.u32 %s5588_s13, 7 }
  0x43   : > { %342 = vadd.xlane.f32.xlu1 %v341_v10  ;;  %v359_v28 = vadd.f32 %v191_v25, %v190_v24  ;;  %v356_v29 = vadd.f32 %v189_v27, %v188_v26  ;;  %v194_v30 = vld [vmem:[%s5668_s5 + $0x150] sm:$0xff]  ;;  %v195_v31 = vld [vmem:[%s5668_s5 + $0x158] sm:$0xff]  ;;  %v192_v32 = vld [vmem:[%s5668_s5 + $0x140] sm:$0xff]  ;;  %s4507_s4 = sshll.u32 %s8566_s25, 4  ;;  %s8690_s30 = scalar_lea.hbm %s8736_s2, %s4708_s29  ;;  %s8692_s4 = int_to_ptr.vmem [resolvable:$true] %s4507_s4 }
  0x44   : > { %336 = vadd.xlane.f32.xlu0 %v335_v11  ;;  %v193_v33 = vld [vmem:[%s5668_s5 + $0x148] sm:$0xff]  ;;  %v365_v34 = vadd.f32 %v195_v31, %v194_v30  ;;  %v198_v36 = vld [vmem:[%s5668_s5 + $0x170] sm:$0xff]  ;;  %v199_v37 = vld [vmem:[%s5668_s5 + $0x178] sm:$0xff]  ;;  %s4493_s13 = scalar_lea.sflag [#allocation4], %s5664_s26  ;;  %s5473_s3 = scalar_lea.vmem %s8692_s4, 128 }
  0x45   : > { %v362_v35 = vadd.f32 %v193_v33, %v192_v32  ;;  %v196_v38 = vld [vmem:[%s5668_s5 + $0x160] sm:$0xff]  ;;  %v197_v39 = vld [vmem:[%s5668_s5 + $0x168] sm:$0xff]  ;;  %v371_v40 = vadd.f32 %v199_v37, %v198_v36  ;;  %v202_v42 = vld [vmem:[%s5668_s5 + $0x190] sm:$0xff]  ;;  %p5474_p6 = scmp.ne.s32.totalorder %s8692_s4, %s5473_s3  ;;  %p9147_p10 = scmp.ne.s32.totalorder %s8838_s20, 0 }
  0x46   : > { %v368_v41 = vadd.f32 %v197_v39, %v196_v38  ;;  %v203_v43 = vld [vmem:[%s5668_s5 + $0x198] sm:$0xff]  ;;  %v200_v44 = vld [vmem:[%s5668_s5 + $0x180] sm:$0xff]  ;;  %v201_v45 = vld [vmem:[%s5668_s5 + $0x188] sm:$0xff] }
  0x47   : > { %348 = vadd.xlane.f32.xlu1 %v347_v16  ;;  %v377_v46 = vadd.f32 %v203_v43, %v202_v42  ;;  %v374_v47 = vadd.f32 %v201_v45, %v200_v44  ;;  %v206_v48 = vld [vmem:[%s5668_s5 + $0x1b0] sm:$0xff]  ;;  %v207_v49 = vld [vmem:[%s5668_s5 + $0x1b8] sm:$0xff]  ;;  %v204_v50 = vld [vmem:[%s5668_s5 + $0x1a0] sm:$0xff]  ;;  %p5475_p11 = pnand %p5474_p6, %p9147_p10 }
  0x48   : > { %345 = vadd.xlane.f32.xlu0 %v344_v17  ;;  %v205_v51 = vld [vmem:[%s5668_s5 + $0x1a8] sm:$0xff]  ;;  %v383_v52 = vadd.f32 %v207_v49, %v206_v48  ;;  %v210_v54 = vld [vmem:[%s5668_s5 + $0x1d0] sm:$0xff]  ;;  %v211_v55 = vld [vmem:[%s5668_s5 + $0x1d8] sm:$0xff] }
  0x49   : > { %v380_v53 = vadd.f32 %v205_v51, %v204_v50  ;;  %v208_v56 = vld [vmem:[%s5668_s5 + $0x1c0] sm:$0xff]  ;;  %v209_v57 = vld [vmem:[%s5668_s5 + $0x1c8] sm:$0xff]  ;;  %v389_v58 = vadd.f32 %v211_v55, %v210_v54  ;;  %v214_v60 = vld [vmem:[%s5668_s5 + $0x290] sm:$0xff]  ;;  %p5476_p12 = pneg %p5475_p11 }
  0x4a   : > { %v386_v59 = vadd.f32 %v209_v57, %v208_v56  ;;  %v215_v61 = vld [vmem:[%s5668_s5 + $0x298] sm:$0xff]  ;;  %v212_v62 = vld [vmem:[%s5668_s5 + $0x280] sm:$0xff]  ;;  %v213_v63 = vld [vmem:[%s5668_s5 + $0x288] sm:$0xff] }
  0x4b   : > { %354 = vadd.xlane.f32.xlu1 %v353_v22  ;;  %v395_v0 = vadd.f32 %v215_v61, %v214_v60  ;;  %v392_v1 = vadd.f32 %v213_v63, %v212_v62  ;;  %v218_v2 = vld [vmem:[%s5668_s5 + $0x2b0] sm:$0xff]  ;;  %v219_v3 = vld [vmem:[%s5668_s5 + $0x2b8] sm:$0xff]  ;;  %v216_v4 = vld [vmem:[%s5668_s5 + $0x2a0] sm:$0xff] }
  0x4c   : > { %351 = vadd.xlane.f32.xlu0 %v350_v23  ;;  %v217_v5 = vld [vmem:[%s5668_s5 + $0x2a8] sm:$0xff]  ;;  %v401_v6 = vadd.f32 %v219_v3, %v218_v2  ;;  %v222_v8 = vld [vmem:[%s5668_s5 + $0x2d0] sm:$0xff]  ;;  %v223_v9 = vld [vmem:[%s5668_s5 + $0x2d8] sm:$0xff] }
  0x4d   : > { %v398_v7 = vadd.f32 %v217_v5, %v216_v4  ;;  %v220_v10 = vld [vmem:[%s5668_s5 + $0x2c0] sm:$0xff]  ;;  %v221_v11 = vld [vmem:[%s5668_s5 + $0x2c8] sm:$0xff]  ;;  %v407_v12 = vadd.f32 %v223_v9, %v222_v8  ;;  %v226_v14 = vld [vmem:[%s5668_s5 + $0x2f0] sm:$0xff] }
  0x4e   : > { %v404_v13 = vadd.f32 %v221_v11, %v220_v10  ;;  %v227_v15 = vld [vmem:[%s5668_s5 + $0x2f8] sm:$0xff]  ;;  %v224_v16 = vld [vmem:[%s5668_s5 + $0x2e0] sm:$0xff]  ;;  %v225_v17 = vld [vmem:[%s5668_s5 + $0x2e8] sm:$0xff] }
  0x4f   : > { %360 = vadd.xlane.f32.xlu1 %v359_v28  ;;  %v413_v18 = vadd.f32 %v227_v15, %v226_v14  ;;  %v410_v19 = vadd.f32 %v225_v17, %v224_v16  ;;  %v230_v20 = vld [vmem:[%s5668_s5 + $0x310] sm:$0xff]  ;;  %v231_v21 = vld [vmem:[%s5668_s5 + $0x318] sm:$0xff]  ;;  %v228_v22 = vld [vmem:[%s5668_s5 + $0x300] sm:$0xff] }
  0x50   : > { %357 = vadd.xlane.f32.xlu0 %v356_v29  ;;  %v229_v23 = vld [vmem:[%s5668_s5 + $0x308] sm:$0xff]  ;;  %v419_v24 = vadd.f32 %v231_v21, %v230_v20  ;;  %v234_v26 = vld [vmem:[%s5668_s5 + $0x3d0] sm:$0xff]  ;;  %v235_v27 = vld [vmem:[%s5668_s5 + $0x3d8] sm:$0xff] }
  0x51   : > { %v416_v25 = vadd.f32 %v229_v23, %v228_v22  ;;  %v232_v28 = vld [vmem:[%s5668_s5 + $0x3c0] sm:$0xff]  ;;  %v233_v29 = vld [vmem:[%s5668_s5 + $0x3c8] sm:$0xff]  ;;  %v425_v30 = vadd.f32 %v235_v27, %v234_v26  ;;  %v238_v32 = vld [vmem:[%s5668_s5 + $0x3f0] sm:$0xff] }
  0x52   : > { %v422_v31 = vadd.f32 %v233_v29, %v232_v28  ;;  %v239_v33 = vld [vmem:[%s5668_s5 + $0x3f8] sm:$0xff]  ;;  %v242_v38 = vld [vmem:[%s5668_s5 + $0x410] sm:$0xff]  ;;  %v163_v56 = vld [vmem:[%s8735_s1 + $0x8] sm:$0xff] }
  0x53   : > { %366 = vadd.xlane.f32.xlu1 %v365_v34  ;;  %v236_v34 = vld [vmem:[%s5668_s5 + $0x3e0] sm:$0xff]  ;;  %v431_v36 = vadd.f32 %v239_v33, %v238_v32  ;;  %v243_v39 = vld [vmem:[%s5668_s5 + $0x418] sm:$0xff]  ;;  %v246_v44 = vld [vmem:[%s5668_s5 + $0x430] sm:$0xff] }
  0x54   : > { %363 = vadd.xlane.f32.xlu0 %v362_v35  ;;  %v237_v35 = vld [vmem:[%s5668_s5 + $0x3e8] sm:$0xff]  ;;  %v437_v42 = vadd.f32 %v243_v39, %v242_v38  ;;  %v247_v45 = vld [vmem:[%s5668_s5 + $0x438] sm:$0xff]  ;;  %v250_v50 = vld [vmem:[%s5668_s5 + $0x450] sm:$0xff] }
  0x55   : > { %v428_v37 = vadd.f32 %v237_v35, %v236_v34  ;;  %v443_v48 = vadd.f32 %v247_v45, %v246_v44  ;;  %v251_v51 = vld [vmem:[%s5668_s5 + $0x458] sm:$0xff]  ;;  %v164_v57 = vld [vmem:[%s8735_s1 + $0x10] sm:$0xff]  ;;  %v166_v60 = vld [vmem:[%s8735_s1 + $0x20] sm:$0xff] }
  0x56   : > { %v449_v54 = vadd.f32 %v251_v51, %v250_v50  ;;  %v167_v61 = vld [vmem:[%s8735_s1 + $0x28] sm:$0xff]  ;;  %v168_v62 = vld [vmem:[%s8735_s1 + $0x30] sm:$0xff]  ;;  %v169_v63 = vld [vmem:[%s8735_s1 + $0x38] sm:$0xff] }
  0x57   : > { %372 = vadd.xlane.f32.xlu1 %v371_v40  ;;  %v240_v40 = vld [vmem:[%s5668_s5 + $0x400] sm:$0xff]  ;;  %v5785_v2 = vld [vmem:[%s5668_s5 + $0xb0] sm:$0xff]  ;;  %v5788_v3 = vld [vmem:[%s5668_s5 + $0xb8] sm:$0xff] }
  0x58   : > { %369 = vadd.xlane.f32.xlu0 %v368_v41  ;;  %v241_v41 = vld [vmem:[%s5668_s5 + $0x408] sm:$0xff]  ;;  %v1360_v4 = vadd.f32 %v5788_v3, %v5785_v2  ;;  %v5793_v5 = vld [vmem:[%s5668_s5 + $0xc0] sm:$0xff]  ;;  %v5831_v20 = vld [vmem:[%s5668_s5 + $0xf0] sm:$0xff] }
  0x59   : > { %v434_v43 = vadd.f32 %v241_v41, %v240_v40  ;;  %v5805_v10 = vld [vmem:[%s5668_s5 + $0xa0] sm:$0xff]  ;;  %v5808_v11 = vld [vmem:[%s5668_s5 + $0xa8] sm:$0xff]  ;;  %v5834_v21 = vld [vmem:[%s5668_s5 + $0xf8] sm:$0xff] }
  0x5a   : > { %v1357_v15 = vadd.f32 %v5808_v11, %v5805_v10  ;;  %v5823_v17 = vld [vmem:[%s5668_s5 + $0xe0] sm:$0xff]  ;;  %v5846_v26 = vld [vmem:[%s5668_s5 + $0x108] sm:$0xff]  ;;  %v5849_v27 = vld [vmem:[%s5668_s5 + $0x110] sm:$0xff] }
  0x5b   : > { %378 = vadd.xlane.f32.xlu1 %v377_v46  ;;  %v244_v46 = vld [vmem:[%s5668_s5 + $0x420] sm:$0xff]  ;;  %v5852_v28 = vld [vmem:[%s5668_s5 + $0x118] sm:$0xff]  ;;  %v5866_v34 = vld [vmem:[%s5668_s5 + $0x128] sm:$0xff] }
  0x5c   : > { %375 = vadd.xlane.f32.xlu0 %v374_v47  ;;  %v245_v47 = vld [vmem:[%s5668_s5 + $0x428] sm:$0xff]  ;;  %v1378_v32 = vadd.f32 %v5852_v28, %v5849_v27  ;;  %v5863_v33 = vld [vmem:[%s5668_s5 + $0x120] sm:$0xff]  ;;  %v5869_v35 = vld [vmem:[%s5668_s5 + $0x130] sm:$0xff] }
  0x5d   : > { %v440_v49 = vadd.f32 %v245_v47, %v244_v46  ;;  %v5879_v39 = vld [vmem:[%s5668_s5 + $0x1e0] sm:$0xff]  ;;  %v5882_v40 = vld [vmem:[%s5668_s5 + $0x1e8] sm:$0xff]  ;;  %v5908_v50 = vld [vmem:[%s5668_s5 + $0x218] sm:$0xff] }
  0x5e   : > { %v1387_v45 = vadd.f32 %v5882_v40, %v5879_v39  ;;  %v5899_v47 = vld [vmem:[%s5668_s5 + $0x200] sm:$0xff] }
  0x5f   : > { %384 = vadd.xlane.f32.xlu1 %v383_v52  ;;  %v248_v52 = vld [vmem:[%s5668_s5 + $0x440] sm:$0xff] }
  0x60   : > { %381 = vadd.xlane.f32.xlu0 %v380_v53  ;;  %v249_v53 = vld [vmem:[%s5668_s5 + $0x448] sm:$0xff] }
  0x61   : > { %v446_v55 = vadd.f32 %v249_v53, %v248_v52 }
  0x63   : > { %390 = vadd.xlane.f32.xlu1 %v389_v58  ;;  %v162_v58 = vld [vmem:[%s8735_s1] sm:$0xff] }
  0x64   : > { %387 = vadd.xlane.f32.xlu0 %v386_v59  ;;  %v165_v59 = vld [vmem:[%s8735_s1 + $0x18] sm:$0xff] }
  0x67   : > { %396 = vadd.xlane.f32.xlu1 %v395_v0  ;;  %v170_v0 = vld [vmem:[%s8735_s1 + $0x40] sm:$0xff] }
  0x68   : > { %393 = vadd.xlane.f32.xlu0 %v392_v1  ;;  %v171_v1 = vld [vmem:[%s8735_s1 + $0x48] sm:$0xff] }
  0x6b   : > { %402 = vadd.xlane.f32.xlu1 %v401_v6  ;;  %v5796_v6 = vld [vmem:[%s5668_s5 + $0xc8] sm:$0xff] }
  0x6c   : > { %399 = vadd.xlane.f32.xlu0 %v398_v7  ;;  %v1363_v9 = vadd.f32 %v5796_v6, %v5793_v5 }
  0x6f   : > { %408 = vadd.xlane.f32.xlu1 %v407_v12  ;;  %v5811_v12 = vld [vmem:[%s5668_s5 + $0xd0] sm:$0xff] }
  0x70   : > { %405 = vadd.xlane.f32.xlu0 %v404_v13  ;;  %v5814_v13 = vld [vmem:[%s5668_s5 + $0xd8] sm:$0xff] }
  0x71   : > { %v1366_v16 = vadd.f32 %v5814_v13, %v5811_v12 }
  0x73   : > { %414 = vadd.xlane.f32.xlu1 %v413_v18  ;;  %v5826_v18 = vld [vmem:[%s5668_s5 + $0xe8] sm:$0xff] }
  0x74   : > { %411 = vadd.xlane.f32.xlu0 %v410_v19  ;;  %v1369_v23 = vadd.f32 %v5826_v18, %v5823_v17 }
  0x77   : > { %420 = vadd.xlane.f32.xlu1 %v419_v24  ;;  %v1372_v24 = vadd.f32 %v5834_v21, %v5831_v20 }
  0x78   : > { %417 = vadd.xlane.f32.xlu0 %v416_v25  ;;  %v5843_v25 = vld [vmem:[%s5668_s5 + $0x100] sm:$0xff] }
  0x7b   : > { %426 = vadd.xlane.f32.xlu1 %v425_v30  ;;  %v1375_v30 = vadd.f32 %v5846_v26, %v5843_v25 }
  0x7c   : > { %423 = vadd.xlane.f32.xlu0 %v422_v31 }
  0x7f   : > { %432 = vadd.xlane.f32.xlu1 %v431_v36  ;;  %v5872_v36 = vld [vmem:[%s5668_s5 + $0x138] sm:$0xff] }
  0x80   : > { %429 = vadd.xlane.f32.xlu0 %v428_v37  ;;  %v1381_v37 = vadd.f32 %v5866_v34, %v5863_v33  ;;  %v1384_v38 = vadd.f32 %v5872_v36, %v5869_v35 }
  0x83   : > { %438 = vadd.xlane.f32.xlu1 %v437_v42  ;;  %v5887_v42 = vld [vmem:[%s5668_s5 + $0x1f0] sm:$0xff] }
  0x84   : > { %435 = vadd.xlane.f32.xlu0 %v434_v43  ;;  %v5890_v43 = vld [vmem:[%s5668_s5 + $0x1f8] sm:$0xff] }
  0x85   : > { %v1390_v46 = vadd.f32 %v5890_v43, %v5887_v42 }
  0x87   : > { %444 = vadd.xlane.f32.xlu1 %v443_v48  ;;  %v5902_v48 = vld [vmem:[%s5668_s5 + $0x208] sm:$0xff] }
  0x88   : > { %441 = vadd.xlane.f32.xlu0 %v440_v49  ;;  %v5905_v49 = vld [vmem:[%s5668_s5 + $0x210] sm:$0xff]  ;;  %v1393_v52 = vadd.f32 %v5902_v48, %v5899_v47 }
  0x8b   : > { %450 = vadd.xlane.f32.xlu1 %v449_v54  ;;  %v1396_v54 = vadd.f32 %v5908_v50, %v5905_v49 }
  0x8c   : > { %447 = vadd.xlane.f32.xlu0 %v446_v55  ;;  %v5919_v55 = vld [vmem:[%s5668_s5 + $0x220] sm:$0xff] }
  0x9c   : > { %544 = vrot.lane.b32.xlu1 %v163_v56, %s5544_s28  ;;  %v5922_v56 = vld [vmem:[%s5668_s5 + $0x228] sm:$0xff] }
  0xa0   : > { %546 = vrot.lane.b32.xlu1 %v164_v57, %s5544_s28  ;;  %v5925_v57 = vld [vmem:[%s5668_s5 + $0x230] sm:$0xff] }
  0xa2   : > { %542 = vrot.lane.b32.xlu0 %v162_v58, %s5544_s28  ;;  %v5928_v58 = vld [vmem:[%s5668_s5 + $0x238] sm:$0xff] }
  0xa4   : > { %548 = vrot.lane.b32.xlu1 %v165_v59, %s5544_s28  ;;  %v1399_v59 = vadd.f32 %v5922_v56, %v5919_v55 }
  0xa6   : > { %550 = vrot.lane.b32.xlu0 %v166_v60, %s5544_s28  ;;  %v1402_v60 = vadd.f32 %v5928_v58, %v5925_v57 }
  0xa8   : > { %552 = vrot.lane.b32.xlu1 %v167_v61, %s5544_s28  ;;  %v5935_v61 = vld [vmem:[%s5668_s5 + $0x240] sm:$0xff] }
  0xaa   : > { %554 = vrot.lane.b32.xlu0 %v168_v62, %s5544_s28  ;;  %v5938_v62 = vld [vmem:[%s5668_s5 + $0x248] sm:$0xff] }
  0xac   : > { %556 = vrot.lane.b32.xlu1 %v169_v63, %s5544_s28 }
  0xae   : > { %558 = vrot.lane.b32.xlu0 %v170_v0, %s5544_s28  ;;  %v5943_v0 = vld [vmem:[%s5668_s5 + $0x250] sm:$0xff] }
  0xb0   : > { %560 = vrot.lane.b32.xlu1 %v171_v1, %s5544_s28  ;;  %v5946_v1 = vld [vmem:[%s5668_s5 + $0x258] sm:$0xff] }
  0xcc   : > { %v5798_v7 = vpop.xlane.xlu1 %339 }
  0xcd   : > { %8841 = vst [vmem:[#allocation8_spill] sm:$0xff] %v5798_v7  ;;  %v5800_v8 = vpop.xlane.xlu0 %333  ;;  %1361 = vadd.xlane.f32.xlu0 %v1360_v4  ;;  %v6031_v7 = vld [vmem:[%s5668_s5 + $0x380] sm:$0xff] }
  0xce   : > { %8842 = vst [vmem:[#allocation9_spill] sm:$0xff] %v5800_v8  ;;  %8862 = vst [vmem:[#allocation29_spill] sm:$0xff] %v6031_v7  ;;  %v6050_v8 = vld [vmem:[%s5668_s5 + $0x3a8] sm:$0xff] }
  0xcf   : > { %8867 = vst [vmem:[#allocation34_spill] sm:$0xff] %v6050_v8 }
  0xd0   : > { %v5816_v14 = vpop.xlane.xlu1 %342 }
  0xd1   : > { %8843 = vst [vmem:[#allocation10_spill] sm:$0xff] %v5816_v14  ;;  %1364 = vadd.xlane.f32.xlu0 %v1363_v9  ;;  %v5828_v19 = vpop.xlane.xlu0 %336  ;;  %v1405_v9 = vadd.f32 %v5938_v62, %v5935_v61  ;;  %v6037_v14 = vld [vmem:[%s5668_s5 + $0x390] sm:$0xff] }
  0xd2   : > { %8844 = vst [vmem:[#allocation11_spill] sm:$0xff] %v5828_v19  ;;  %8864 = vst [vmem:[#allocation31_spill] sm:$0xff] %v6037_v14  ;;  %v6055_v19 = vld [vmem:[%s5668_s5 + $0x3b0] sm:$0xff] }
  0xd3   : > { %8869 = vst [vmem:[#allocation36_spill] sm:$0xff] %v6055_v19 }
  0xd4   : > { %v5836_v22 = vpop.xlane.xlu1 %348  ;;  %1358 = vadd.xlane.f32.xlu1 %v1357_v15  ;;  %v1408_v15 = vadd.f32 %v5946_v1, %v5943_v0 }
  0xd5   : > { %8845 = vst [vmem:[#allocation12_spill] sm:$0xff] %v5836_v22  ;;  %1367 = vadd.xlane.f32.xlu0 %v1366_v16  ;;  %v5854_v29 = vpop.xlane.xlu0 %345  ;;  %v5955_v16 = vld [vmem:[%s5668_s5 + $0x260] sm:$0xff]  ;;  %v6034_v22 = vld [vmem:[%s5668_s5 + $0x388] sm:$0xff] }
  0xd6   : > { %8846 = vst [vmem:[#allocation13_spill] sm:$0xff] %v5854_v29  ;;  %8863 = vst [vmem:[#allocation30_spill] sm:$0xff] %v6034_v22 }
  0xd8   : > { %1370 = vadd.xlane.f32.xlu1 %v1369_v23  ;;  %v5858_v31 = vpop.xlane.xlu1 %354  ;;  %v5958_v23 = vld [vmem:[%s5668_s5 + $0x268] sm:$0xff] }
  0xd9   : > { %8847 = vst [vmem:[#allocation14_spill] sm:$0xff] %v5858_v31  ;;  %1373 = vadd.xlane.f32.xlu0 %v1372_v24  ;;  %v5884_v41 = vpop.xlane.xlu0 %351  ;;  %v5961_v24 = vld [vmem:[%s5668_s5 + $0x270] sm:$0xff]  ;;  %v6020_v31 = vld [vmem:[%s5668_s5 + $0x378] sm:$0xff] }
  0xda   : > { %8848 = vst [vmem:[#allocation15_spill] sm:$0xff] %v5884_v41  ;;  %v6017_v41 = vld [vmem:[%s5668_s5 + $0x370] sm:$0xff]  ;;  %8859 = vst [vmem:[#allocation26_spill] sm:$0xff] %v6020_v31 }
  0xdb   : > { %8858 = vst [vmem:[#allocation25_spill] sm:$0xff] %v6017_v41  ;;  %v1432_v29 = vadd.f32 %v6020_v31, %v6017_v41  ;;  %v6058_v31 = vld [vmem:[%s5668_s5 + $0x3b8] sm:$0xff] }
  0xdc   : > { %1376 = vadd.xlane.f32.xlu1 %v1375_v30  ;;  %v5892_v44 = vpop.xlane.xlu1 %360  ;;  %v5964_v30 = vld [vmem:[%s5668_s5 + $0x278] sm:$0xff]  ;;  %8870 = vst [vmem:[#allocation37_spill] sm:$0xff] %v6058_v31 }
  0xdd   : > { %1379 = vadd.xlane.f32.xlu0 %v1378_v32  ;;  %8849 = vst [vmem:[#allocation16_spill] sm:$0xff] %v5892_v44  ;;  %v5910_v51 = vpop.xlane.xlu0 %357  ;;  %v6011_v44 = vld [vmem:[%s5668_s5 + $0x360] sm:$0xff]  ;;  %v6152_v41 = vld [vmem:[%s5668_s5 + $0x4f8] sm:$0xff] }
  0xde   : > { %8850 = vst [vmem:[#allocation17_spill] sm:$0xff] %v5910_v51  ;;  %8894 = vst [vmem:[#allocation61_spill] sm:$0xff] %v6152_v41 }
  0xe0   : > { %1382 = vadd.xlane.f32.xlu1 %v1381_v37  ;;  %v5914_v53 = vpop.xlane.xlu1 %366  ;;  %v1411_v37 = vadd.f32 %v5958_v23, %v5955_v16 }
  0xe1   : > { %1385 = vadd.xlane.f32.xlu0 %v1384_v38  ;;  %8851 = vst [vmem:[#allocation18_spill] sm:$0xff] %v5914_v53  ;;  %v5940_v63 = vpop.xlane.xlu0 %363 }
  0xe2   : > { %8852 = vst [vmem:[#allocation19_spill] sm:$0xff] %v5940_v63  ;;  %v6002_v63 = vld [vmem:[%s5668_s5 + $0x358] sm:$0xff] }
  0xe4   : > { %1388 = vadd.xlane.f32.xlu1 %v1387_v45  ;;  %v5948_v4 = vpop.xlane.xlu1 %372  ;;  %v1414_v45 = vadd.f32 %v5964_v30, %v5961_v24 }
  0xe5   : > { %1391 = vadd.xlane.f32.xlu0 %v1390_v46  ;;  %8853 = vst [vmem:[#allocation20_spill] sm:$0xff] %v5948_v4  ;;  %v5966_v32 = vpop.xlane.xlu0 %369  ;;  %v5975_v46 = vld [vmem:[%s5668_s5 + $0x320] sm:$0xff]  ;;  %v5999_v4 = vld [vmem:[%s5668_s5 + $0x350] sm:$0xff] }
  0xe6   : > { %8854 = vst [vmem:[#allocation21_spill] sm:$0xff] %v5966_v32  ;;  %v1426_v51 = vadd.f32 %v6002_v63, %v5999_v4 }
  0xe8   : > { %1394 = vadd.xlane.f32.xlu1 %v1393_v52  ;;  %v5970_v38 = vpop.xlane.xlu1 %378  ;;  %v5978_v52 = vld [vmem:[%s5668_s5 + $0x328] sm:$0xff] }
  0xe9   : > { %1397 = vadd.xlane.f32.xlu0 %v1396_v54  ;;  %8855 = vst [vmem:[#allocation22_spill] sm:$0xff] %v5970_v38  ;;  %v5981_v54 = vld [vmem:[%s5668_s5 + $0x330] sm:$0xff]  ;;  %v5994_v38 = vld [vmem:[%s5668_s5 + $0x348] sm:$0xff]  ;;  %v5996_v32 = vpop.xlane.xlu0 %375 }
  0xea   : > { %8856 = vst [vmem:[#allocation23_spill] sm:$0xff] %v5996_v32  ;;  %v6014_v32 = vld [vmem:[%s5668_s5 + $0x368] sm:$0xff] }
  0xec   : > { %1400 = vadd.xlane.f32.xlu1 %v1399_v59  ;;  %v5984_v59 = vld [vmem:[%s5668_s5 + $0x338] sm:$0xff] }
  0xed   : > { %1403 = vadd.xlane.f32.xlu0 %v1402_v60  ;;  %v1417_v60 = vadd.f32 %v5978_v52, %v5975_v46 }
  0xf0   : > { %1406 = vadd.xlane.f32.xlu1 %v1405_v9  ;;  %v1420_v9 = vadd.f32 %v5984_v59, %v5981_v54 }
  0xf1   : > { %1409 = vadd.xlane.f32.xlu0 %v1408_v15  ;;  %v5991_v15 = vld [vmem:[%s5668_s5 + $0x340] sm:$0xff] }
  0xf4   : > { %1412 = vadd.xlane.f32.xlu1 %v1411_v37  ;;  %v6004_v37 = vpop.xlane.xlu1 %384 }
  0xf5   : > { %1415 = vadd.xlane.f32.xlu0 %v1414_v45  ;;  %8857 = vst [vmem:[#allocation24_spill] sm:$0xff] %v6004_v37  ;;  %v1423_v45 = vadd.f32 %v5994_v38, %v5991_v15 }
  0xf8   : > { %1418 = vadd.xlane.f32.xlu1 %v1417_v60  ;;  %v6022_v60 = vpop.xlane.xlu0 %381  ;;  %v6026_v37 = vpop.xlane.xlu1 %390 }
  0xf9   : > { %1421 = vadd.xlane.f32.xlu0 %v1420_v9  ;;  %8860 = vst [vmem:[#allocation27_spill] sm:$0xff] %v6022_v60  ;;  %v1429_v9 = vadd.f32 %v6014_v32, %v6011_v44  ;;  %8861 = vst [vmem:[#allocation28_spill] sm:$0xff] %v6026_v37  ;;  %v6040_v60 = vld [vmem:[%s5668_s5 + $0x398] sm:$0xff]  ;;  %v6047_v37 = vld [vmem:[%s5668_s5 + $0x3a0] sm:$0xff] }
  0xfa   : > { %8865 = vst [vmem:[#allocation32_spill] sm:$0xff] %v6040_v60  ;;  %8866 = vst [vmem:[#allocation33_spill] sm:$0xff] %v6047_v37 }
  0xfc   : > { %1424 = vadd.xlane.f32.xlu1 %v1423_v45  ;;  %v1435_v45 = vadd.f32 %v6034_v22, %v6031_v7  ;;  %v6052_v53 = vpop.xlane.xlu0 %387  ;;  %v6073_v22 = vld [vmem:[%s5668_s5 + $0x470] sm:$0xff]  ;;  %v6076_v7 = vld [vmem:[%s5668_s5 + $0x478] sm:$0xff] }
  0xfd   : > { %1427 = vadd.xlane.f32.xlu0 %v1426_v51  ;;  %v1438_v51 = vadd.f32 %v6040_v60, %v6037_v14  ;;  %8868 = vst [vmem:[#allocation35_spill] sm:$0xff] %v6052_v53  ;;  %v1444_v60 = vadd.f32 %v6058_v31, %v6055_v19  ;;  %v6067_v14 = vld [vmem:[%s5668_s5 + $0x460] sm:$0xff]  ;;  %v6070_v53 = vld [vmem:[%s5668_s5 + $0x468] sm:$0xff]  ;;  %8874 = vst [vmem:[#allocation41_spill] sm:$0xff] %v6073_v22  ;;  %v1450_v31 = vadd.f32 %v6076_v7, %v6073_v22 }
  0xfe   : > { %8872 = vst [vmem:[#allocation39_spill] sm:$0xff] %v6067_v14  ;;  %8873 = vst [vmem:[#allocation40_spill] sm:$0xff] %v6070_v53  ;;  %v6087_v19 = vld [vmem:[%s5668_s5 + $0x480] sm:$0xff] }
  0xff   : > { %8875 = vst [vmem:[#allocation42_spill] sm:$0xff] %v6076_v7  ;;  %8878 = vst [vmem:[#allocation45_spill] sm:$0xff] %v6087_v19  ;;  %v6106_v7 = vld [vmem:[%s5668_s5 + $0x4a8] sm:$0xff] }
 0x100   : > { %1430 = vadd.xlane.f32.xlu1 %v1429_v9  ;;  %v6060_v9 = vpop.xlane.xlu1 %396  ;;  %8883 = vst [vmem:[#allocation50_spill] sm:$0xff] %v6106_v7 }
 0x101   : > { %1433 = vadd.xlane.f32.xlu0 %v1432_v29  ;;  %8871 = vst [vmem:[#allocation38_spill] sm:$0xff] %v6060_v9  ;;  %v1441_v29 = vadd.f32 %v6050_v8, %v6047_v37  ;;  %v6090_v8 = vld [vmem:[%s5668_s5 + $0x488] sm:$0xff]  ;;  %v6093_v37 = vld [vmem:[%s5668_s5 + $0x490] sm:$0xff] }
 0x102   : > { %8879 = vst [vmem:[#allocation46_spill] sm:$0xff] %v6090_v8  ;;  %8880 = vst [vmem:[#allocation47_spill] sm:$0xff] %v6093_v37 }
 0x104   : > { %1436 = vadd.xlane.f32.xlu1 %v1435_v45  ;;  %v6078_v45 = vpop.xlane.xlu0 %393  ;;  %v6082_v9 = vpop.xlane.xlu1 %402 }
 0x105   : > { %1439 = vadd.xlane.f32.xlu0 %v1438_v51  ;;  %8876 = vst [vmem:[#allocation43_spill] sm:$0xff] %v6078_v45  ;;  %v1447_v51 = vadd.f32 %v6070_v53, %v6067_v14  ;;  %8877 = vst [vmem:[#allocation44_spill] sm:$0xff] %v6082_v9  ;;  %v6096_v45 = vld [vmem:[%s5668_s5 + $0x498] sm:$0xff]  ;;  %v6103_v9 = vld [vmem:[%s5668_s5 + $0x4a0] sm:$0xff] }
 0x106   : > { %8881 = vst [vmem:[#allocation48_spill] sm:$0xff] %v6096_v45  ;;  %8882 = vst [vmem:[#allocation49_spill] sm:$0xff] %v6103_v9  ;;  %v6111_v53 = vld [vmem:[%s5668_s5 + $0x4b0] sm:$0xff]  ;;  %v6114_v14 = vld [vmem:[%s5668_s5 + $0x4b8] sm:$0xff] }
 0x107   : > { %8885 = vst [vmem:[#allocation52_spill] sm:$0xff] %v6111_v53  ;;  %8886 = vst [vmem:[#allocation53_spill] sm:$0xff] %v6114_v14 }
 0x108   : > { %1442 = vadd.xlane.f32.xlu1 %v1441_v29  ;;  %v1453_v29 = vadd.f32 %v6090_v8, %v6087_v19  ;;  %v6108_v22 = vpop.xlane.xlu0 %399  ;;  %v6129_v8 = vld [vmem:[%s5668_s5 + $0x4d0] sm:$0xff]  ;;  %v6132_v19 = vld [vmem:[%s5668_s5 + $0x4d8] sm:$0xff] }
 0x109   : > { %1445 = vadd.xlane.f32.xlu0 %v1444_v60  ;;  %v1456_v60 = vadd.f32 %v6096_v45, %v6093_v37  ;;  %8884 = vst [vmem:[#allocation51_spill] sm:$0xff] %v6108_v22  ;;  %v1462_v45 = vadd.f32 %v6114_v14, %v6111_v53  ;;  %v6123_v37 = vld [vmem:[%s5668_s5 + $0x4c0] sm:$0xff]  ;;  %v6126_v22 = vld [vmem:[%s5668_s5 + $0x4c8] sm:$0xff]  ;;  %8889 = vst [vmem:[#allocation56_spill] sm:$0xff] %v6129_v8 }
 0x10a   : > { %8888 = vst [vmem:[#allocation55_spill] sm:$0xff] %v6126_v22  ;;  %8890 = vst [vmem:[#allocation57_spill] sm:$0xff] %v6132_v19  ;;  %v6143_v14 = vld [vmem:[%s5668_s5 + $0x4e0] sm:$0xff]  ;;  %v6146_v53 = vld [vmem:[%s5668_s5 + $0x4e8] sm:$0xff] }
 0x10b   : > { %8893 = vst [vmem:[#allocation60_spill] sm:$0xff] %v6146_v53 }
 0x10c   : > { %1448 = vadd.xlane.f32.xlu1 %v1447_v51  ;;  %v6116_v51 = vpop.xlane.xlu1 %408 }
 0x10d   : > { %1451 = vadd.xlane.f32.xlu0 %v1450_v31  ;;  %8887 = vst [vmem:[#allocation54_spill] sm:$0xff] %v6116_v51  ;;  %v1459_v31 = vadd.f32 %v6106_v7, %v6103_v9  ;;  %v6134_v51 = vpop.xlane.xlu0 %405  ;;  %v6149_v9 = vld [vmem:[%s5668_s5 + $0x4f0] sm:$0xff] }
 0x10e   : > { %8891 = vst [vmem:[#allocation58_spill] sm:$0xff] %v6134_v51  ;;  %v1477_v51 = vmul.f32 %v5805_v10, %v5805_v10  ;;  %v1481_v10 = vmul.f32 %v5793_v5, %v5793_v5  ;;  %v1486_v5 = vmul.f32 %v5826_v18, %v5826_v18 }
 0x110   : > { %1454 = vadd.xlane.f32.xlu1 %v1453_v29  ;;  %v1465_v29 = vadd.f32 %v6126_v22, %v6123_v37  ;;  %v6138_v7 = vpop.xlane.xlu1 %414 }
 0x111   : > { %1457 = vadd.xlane.f32.xlu0 %v1456_v60  ;;  %8892 = vst [vmem:[#allocation59_spill] sm:$0xff] %v6138_v7  ;;  %v1468_v60 = vadd.f32 %v6132_v19, %v6129_v8  ;;  %v1474_v7 = vadd.f32 %v6152_v41, %v6149_v9  ;;  %v1479_v19 = vmul.f32 %v5785_v2, %v5785_v2 }
 0x112   : > { %v1480_v8 = vmul.f32 %v5788_v3, %v5788_v3  ;;  %v1483_v2 = vmul.f32 %v5811_v12, %v5811_v12  ;;  %v1484_v3 = vmul.f32 %v5814_v13, %v5814_v13  ;;  %v1489_v13 = vmul.f32 %v5843_v25, %v5843_v25 }
 0x113   : > { %v1494_v25 = vmul.f32 %v5866_v34, %v5866_v34 }
 0x114   : > { %1460 = vadd.xlane.f32.xlu1 %v1459_v31  ;;  %v1471_v31 = vadd.f32 %v6146_v53, %v6143_v14  ;;  %v6168_v22 = vpop.xlane.xlu1 %420 }
 0x115   : > { %1463 = vadd.xlane.f32.xlu0 %v1462_v45  ;;  %v1478_v45 = vmul.f32 %v5808_v11, %v5808_v11  ;;  %8896 = vst [vmem:[#allocation63_spill] sm:$0xff] %v6168_v22  ;;  %v1482_v11 = vmul.f32 %v5796_v6, %v5796_v6  ;;  %v1566_v6 = vadd.f32 %v1484_v3, %v1483_v2 }
 0x117   : > { %v1557_v53 = vadd.f32 %v1478_v45, %v1477_v51  ;;  %v1563_v22 = vadd.f32 %v1482_v11, %v1481_v10  ;;  %v1485_v51 = vmul.f32 %v5823_v17, %v5823_v17  ;;  %v1490_v17 = vmul.f32 %v5846_v26, %v5846_v26 }
 0x118   : > { %1466 = vadd.xlane.f32.xlu1 %v1465_v29  ;;  %v6166_v29 = vpop.xlane.xlu0 %411 }
 0x119   : > { %1469 = vadd.xlane.f32.xlu0 %v1468_v60  ;;  %8895 = vst [vmem:[#allocation62_spill] sm:$0xff] %v6166_v29  ;;  %v1560_v60 = vadd.f32 %v1480_v8, %v1479_v19  ;;  %v1488_v8 = vmul.f32 %v5834_v21, %v5834_v21  ;;  %v1569_v12 = vadd.f32 %v1486_v5, %v1485_v51 }
 0x11a   : > { %v1491_v19 = vmul.f32 %v5849_v27, %v5849_v27  ;;  %v1575_v21 = vadd.f32 %v1490_v17, %v1489_v13  ;;  %v1495_v27 = vmul.f32 %v5869_v35, %v5869_v35  ;;  %v1499_v35 = vmul.f32 %v5887_v42, %v5887_v42 }
 0x11b   : > { %v1501_v51 = vmul.f32 %v5899_v47, %v5899_v47  ;;  %v1503_v5 = vmul.f32 %v5905_v49, %v5905_v49  ;;  %v1505_v47 = vmul.f32 %v5919_v55, %v5919_v55  ;;  %v1507_v49 = vmul.f32 %v5925_v57, %v5925_v57 }
 0x11c   : > { %1472 = vadd.xlane.f32.xlu1 %v1471_v31  ;;  %v6178_v41 = vpop.xlane.xlu0 %417  ;;  %v6184_v31 = vpop.xlane.xlu1 %426  ;;  %v1509_v17 = vmul.f32 %v5935_v61, %v5935_v61  ;;  %v1510_v55 = vmul.f32 %v5938_v62, %v5938_v62  ;;  %v1511_v57 = vmul.f32 %v5943_v0, %v5943_v0  ;;  %v1514_v61 = vmul.f32 %v5958_v23, %v5958_v23 }
 0x11d   : > { %1475 = vadd.xlane.f32.xlu0 %v1474_v7  ;;  %8897 = vst [vmem:[#allocation64_spill] sm:$0xff] %v6178_v41  ;;  %8898 = vst [vmem:[#allocation65_spill] sm:$0xff] %v6184_v31  ;;  %v1487_v7 = vmul.f32 %v5831_v20, %v5831_v20  ;;  %v1518_v23 = vmul.f32 %v5978_v52, %v5978_v52 }
 0x11f   : > { %v1572_v18 = vadd.f32 %v1488_v8, %v1487_v7 }
 0x120   : > { %1558 = vadd.xlane.f32.xlu1 %v1557_v53  ;;  %v1492_v53 = vmul.f32 %v5852_v28, %v5852_v28  ;;  %v6198_v20 = vpop.xlane.xlu0 %423  ;;  %v6200_v45 = vpop.xlane.xlu1 %432  ;;  %v1496_v28 = vmul.f32 %v5872_v36, %v5872_v36  ;;  %v1500_v36 = vmul.f32 %v5890_v43, %v5890_v43 }
 0x121   : > { %1561 = vadd.xlane.f32.xlu0 %v1560_v60  ;;  %8899 = vst [vmem:[#allocation66_spill] sm:$0xff] %v6198_v20  ;;  %8900 = vst [vmem:[#allocation67_spill] sm:$0xff] %v6200_v45  ;;  %v1497_v60 = vmul.f32 %v5879_v39, %v5879_v39  ;;  %v1502_v39 = vmul.f32 %v5902_v48, %v5902_v48  ;;  %v1506_v48 = vmul.f32 %v5922_v56, %v5922_v56 }
 0x122   : > { %v1578_v26 = vadd.f32 %v1492_v53, %v1491_v19  ;;  %v1584_v34 = vadd.f32 %v1496_v28, %v1495_v27  ;;  %v1605_v19 = vadd.f32 %v1510_v55, %v1509_v17  ;;  %v1513_v53 = vmul.f32 %v5955_v16, %v5955_v16  ;;  %v8921_v55 = vld [vmem:[#allocation34_spill] sm:$0xff] }
 0x123   : > { %v1593_v43 = vadd.f32 %v1502_v39, %v1501_v51  ;;  %v1599_v13 = vadd.f32 %v1506_v48, %v1505_v47  ;;  %v1517_v16 = vmul.f32 %v5975_v46, %v5975_v46  ;;  %v1522_v46 = vmul.f32 %v5994_v38, %v5994_v38  ;;  %v8918_v48 = vld [vmem:[#allocation32_spill] sm:$0xff] }
 0x124   : > { %1564 = vadd.xlane.f32.xlu1 %v1563_v22  ;;  %v1493_v22 = vmul.f32 %v5863_v33, %v5863_v33  ;;  %v6210_v10 = vpop.xlane.xlu0 %429  ;;  %v1498_v33 = vmul.f32 %v5882_v40, %v5882_v40  ;;  %v6216_v2 = vpop.xlane.xlu1 %438  ;;  %v1590_v40 = vadd.f32 %v1500_v36, %v1499_v35  ;;  %v8911_v35 = vld [vmem:[#allocation25_spill] sm:$0xff] }
 0x125   : > { %1567 = vadd.xlane.f32.xlu0 %v1566_v6  ;;  %8901 = vst [vmem:[#allocation68_spill] sm:$0xff] %v6210_v10  ;;  %8902 = vst [vmem:[#allocation69_spill] sm:$0xff] %v6216_v2  ;;  %v1504_v6 = vmul.f32 %v5908_v50, %v5908_v50  ;;  %v1508_v50 = vmul.f32 %v5928_v58, %v5928_v58  ;;  %v1512_v58 = vmul.f32 %v5946_v1, %v5946_v1 }
 0x126   : > { %v1581_v11 = vadd.f32 %v1494_v25, %v1493_v22  ;;  %v1587_v3 = vadd.f32 %v1498_v33, %v1497_v60  ;;  %v1516_v22 = vmul.f32 %v5964_v30, %v5964_v30  ;;  %v1611_v1 = vadd.f32 %v1514_v61, %v1513_v53  ;;  %v8924_v61 = vld [vmem:[#allocation37_spill] sm:$0xff] }
 0x127   : > { %v1596_v8 = vadd.f32 %v1504_v6, %v1503_v5  ;;  %v1602_v56 = vadd.f32 %v1508_v50, %v1507_v49  ;;  %v1608_v62 = vadd.f32 %v1512_v58, %v1511_v57  ;;  %v1520_v30 = vmul.f32 %v5984_v59, %v5984_v59  ;;  %v8916_v5 = vld [vmem:[#allocation30_spill] sm:$0xff] }
 0x128   : > { %1570 = vadd.xlane.f32.xlu1 %v1569_v12  ;;  %v6230_v42 = vpop.xlane.xlu0 %435  ;;  %v6232_v7 = vpop.xlane.xlu1 %444  ;;  %v1617_v28 = vadd.f32 %v1518_v23, %v1517_v16  ;;  %v1524_v59 = vmul.f32 %v6002_v63, %v6002_v63  ;;  %v1527_v36 = vmul.f32 %v8911_v35, %v8911_v35  ;;  %v8926_v16 = vld [vmem:[#allocation40_spill] sm:$0xff]  ;;  %v8933_v35 = vld [vmem:[#allocation47_spill] sm:$0xff] }
 0x129   : > { %1573 = vadd.xlane.f32.xlu0 %v1572_v18  ;;  %8903 = vst [vmem:[#allocation70_spill] sm:$0xff] %v6230_v42  ;;  %8904 = vst [vmem:[#allocation71_spill] sm:$0xff] %v6232_v7  ;;  %v1538_v23 = vmul.f32 %v8926_v16, %v8926_v16 }
 0x12c   : > { %1576 = vadd.xlane.f32.xlu1 %v1575_v21  ;;  %v6242_v12 = vpop.xlane.xlu0 %441  ;;  %v6248_v18 = vpop.xlane.xlu1 %450  ;;  %v1515_v21 = vmul.f32 %v5961_v24, %v5961_v24  ;;  %v1519_v24 = vmul.f32 %v5981_v54, %v5981_v54  ;;  %v1523_v54 = vmul.f32 %v5999_v4, %v5999_v4 }
 0x12d   : > { %1579 = vadd.xlane.f32.xlu0 %v1578_v26  ;;  %8905 = vst [vmem:[#allocation72_spill] sm:$0xff] %v6242_v12  ;;  %8906 = vst [vmem:[#allocation73_spill] sm:$0xff] %v6248_v18 }
 0x12e   : > { %v1614_v26 = vadd.f32 %v1516_v22, %v1515_v21  ;;  %v1620_v52 = vadd.f32 %v1520_v30, %v1519_v24  ;;  %v1626_v38 = vadd.f32 %v1524_v59, %v1523_v54  ;;  %v8925_v22 = vld [vmem:[#allocation39_spill] sm:$0xff]  ;;  %v8927_v24 = vld [vmem:[#allocation41_spill] sm:$0xff] }
 0x12f   : > { %v1539_v30 = vmul.f32 %v8927_v24, %v8927_v24  ;;  %v8931_v59 = vld [vmem:[#allocation45_spill] sm:$0xff]  ;;  %v8943_v24 = vld [vmem:[#allocation60_spill] sm:$0xff] }
 0x130   : > { %1582 = vadd.xlane.f32.xlu1 %v1581_v11  ;;  %v6262_v0 = vpop.xlane.xlu0 %447  ;;  %v6264_v25 = vpop.permute.xlu1 %544  ;;  %v1521_v11 = vmul.f32 %v5991_v15, %v5991_v15  ;;  %v1526_v15 = vmul.f32 %v6014_v32, %v6014_v32  ;;  %v1530_v32 = vmul.f32 %v8916_v5, %v8916_v5 }
 0x131   : > { %1585 = vadd.xlane.f32.xlu0 %v1584_v34  ;;  %8907 = vst [vmem:[#allocation74_spill] sm:$0xff] %v6262_v0  ;;  %8908 = vst [vmem:[#allocation75_spill] sm:$0xff] %v6264_v25  ;;  %v1525_v34 = vmul.f32 %v6011_v44, %v6011_v44 }
 0x132   : > { %v1623_v33 = vadd.f32 %v1522_v46, %v1521_v11 }
 0x133   : > { %v1629_v63 = vadd.f32 %v1526_v15, %v1525_v34  ;;  %v8932_v34 = vld [vmem:[#allocation46_spill] sm:$0xff] }
 0x134   : > { %1588 = vadd.xlane.f32.xlu1 %v1587_v3  ;;  %v6274_v27 = vpop.permute.xlu0 %542  ;;  %v6280_v60 = vpop.permute.xlu1 %546  ;;  %v8912_v3 = vld [vmem:[#allocation26_spill] sm:$0xff]  ;;  %v1542_v15 = vmul.f32 %v8932_v34, %v8932_v34 }
 0x135   : > { %1591 = vadd.xlane.f32.xlu0 %v1590_v40  ;;  %8909 = vst [vmem:[#allocation76_spill] sm:$0xff] %v6274_v27  ;;  %8910 = vst [vmem:[#allocation77_spill] sm:$0xff] %v6280_v60  ;;  %v1528_v51 = vmul.f32 %v8912_v3, %v8912_v3  ;;  %v8915_v40 = vld [vmem:[#allocation29_spill] sm:$0xff]  ;;  %v8934_v3 = vld [vmem:[#allocation48_spill] sm:$0xff] }
 0x136   : > { %v1529_v44 = vmul.f32 %v8915_v40, %v8915_v40 }
 0x137   : > { %v1632_v6 = vadd.f32 %v1528_v51, %v1527_v36  ;;  %v1543_v36 = vmul.f32 %v8933_v35, %v8933_v35  ;;  %v1544_v51 = vmul.f32 %v8934_v3, %v8934_v3 }
 0x138   : > { %1594 = vadd.xlane.f32.xlu1 %v1593_v43  ;;  %v6294_v4 = vpop.permute.xlu0 %550  ;;  %v6296_v39 = vpop.permute.xlu1 %548  ;;  %v8917_v43 = vld [vmem:[#allocation31_spill] sm:$0xff]  ;;  %v1635_v50 = vadd.f32 %v1530_v32, %v1529_v44  ;;  %v8935_v44 = vld [vmem:[#allocation49_spill] sm:$0xff]  ;;  %v8936_v32 = vld [vmem:[#allocation50_spill] sm:$0xff] }
 0x139   : > { %1597 = vadd.xlane.f32.xlu0 %v1596_v8  ;;  %8913 = vst [vmem:[#allocation25_spill] sm:$0xff] %v6294_v4  ;;  %8914 = vst [vmem:[#allocation26_spill] sm:$0xff] %v6296_v39  ;;  %v1531_v47 = vmul.f32 %v8917_v43, %v8917_v43  ;;  %v1532_v8 = vmul.f32 %v8918_v48, %v8918_v48  ;;  %v1545_v5 = vmul.f32 %v8935_v44, %v8935_v44  ;;  %v8938_v48 = vld [vmem:[#allocation52_spill] sm:$0xff] }
 0x13b   : > { %v1638_v58 = vadd.f32 %v1532_v8, %v1531_v47  ;;  %v1656_v47 = vadd.f32 %v1544_v51, %v1543_v36  ;;  %v1547_v8 = vmul.f32 %v8938_v48, %v8938_v48 }
 0x13c   : > { %1600 = vadd.xlane.f32.xlu1 %v1599_v13  ;;  %v6306_v49 = vpop.permute.xlu0 %554  ;;  %v8920_v13 = vld [vmem:[#allocation33_spill] sm:$0xff]  ;;  %v6312_v57 = vpop.permute.xlu1 %552 }
 0x13d   : > { %1603 = vadd.xlane.f32.xlu0 %v1602_v56  ;;  %8919 = vst [vmem:[#allocation29_spill] sm:$0xff] %v6306_v49  ;;  %v1533_v17 = vmul.f32 %v8920_v13, %v8920_v13  ;;  %v1534_v56 = vmul.f32 %v8921_v55, %v8921_v55  ;;  %8922 = vst [vmem:[#allocation30_spill] sm:$0xff] %v6312_v57 }
 0x13f   : > { %v1641_v21 = vadd.f32 %v1534_v56, %v1533_v17  ;;  %v1549_v56 = vmul.f32 %v6123_v37, %v6123_v37  ;;  %v1554_v37 = vmul.f32 %v8943_v24, %v8943_v24 }
 0x140   : > { %1606 = vadd.xlane.f32.xlu1 %v1605_v19  ;;  %v8923_v19 = vld [vmem:[#allocation36_spill] sm:$0xff]  ;;  %v6326_v46 = vpop.permute.xlu0 %558 }
 0x141   : > { %1609 = vadd.xlane.f32.xlu0 %v1608_v62  ;;  %v1535_v53 = vmul.f32 %v8923_v19, %v8923_v19  ;;  %v1536_v62 = vmul.f32 %v8924_v61, %v8924_v61  ;;  %8929 = vst [vmem:[#allocation31_spill] sm:$0xff] %v6326_v46 }
 0x144   : > { %1612 = vadd.xlane.f32.xlu1 %v1611_v1  ;;  %v1537_v1 = vmul.f32 %v8925_v22, %v8925_v22  ;;  %v8942_v22 = vld [vmem:[#allocation57_spill] sm:$0xff] }
 0x145   : > { %1615 = vadd.xlane.f32.xlu0 %v1614_v26  ;;  %v1644_v26 = vadd.f32 %v1536_v62, %v1535_v53  ;;  %v8941_v62 = vld [vmem:[#allocation56_spill] sm:$0xff] }
 0x146   : > { %v1647_v54 = vadd.f32 %v1538_v23, %v1537_v1  ;;  %v1552_v1 = vmul.f32 %v8942_v22, %v8942_v22 }
 0x148   : > { %1618 = vadd.xlane.f32.xlu1 %v1617_v28  ;;  %v8928_v28 = vld [vmem:[#allocation42_spill] sm:$0xff] }
 0x149   : > { %1621 = vadd.xlane.f32.xlu0 %v1620_v52  ;;  %v1540_v11 = vmul.f32 %v8928_v28, %v8928_v28  ;;  %v6328_v52 = vpop.permute.xlu1 %556 }
 0x14a   : > { %8930 = vst [vmem:[#allocation32_spill] sm:$0xff] %v6328_v52 }
 0x14c   : > { %1624 = vadd.xlane.f32.xlu1 %v1623_v33  ;;  %v1541_v33 = vmul.f32 %v8931_v59, %v8931_v59 }
 0x14d   : > { %1627 = vadd.xlane.f32.xlu0 %v1626_v38  ;;  %v1650_v38 = vadd.f32 %v1540_v11, %v1539_v30  ;;  %v6344_v43 = vpop.permute.xlu1 %560  ;;  %v1555_v11 = vmul.f32 %v6149_v9, %v6149_v9 }
 0x14e   : > { %v1653_v40 = vadd.f32 %v1542_v15, %v1541_v33  ;;  %8937 = vst [vmem:[#allocation33_spill] sm:$0xff] %v6344_v43 }
 0x150   : > { %1630 = vadd.xlane.f32.xlu1 %v1629_v63 }
 0x151   : > { %1633 = vadd.xlane.f32.xlu0 %v1632_v6  ;;  %v1546_v6 = vmul.f32 %v8936_v32, %v8936_v32 }
 0x153   : > { %v1659_v55 = vadd.f32 %v1546_v6, %v1545_v5 }
 0x154   : > { %1636 = vadd.xlane.f32.xlu1 %v1635_v50  ;;  %v8939_v50 = vld [vmem:[#allocation53_spill] sm:$0xff] }
 0x155   : > { %1639 = vadd.xlane.f32.xlu0 %v1638_v58  ;;  %v1548_v13 = vmul.f32 %v8939_v50, %v8939_v50  ;;  %v8940_v58 = vld [vmem:[#allocation55_spill] sm:$0xff] }
 0x156   : > { %v1550_v19 = vmul.f32 %v8940_v58, %v8940_v58 }
 0x157   : > { %v1662_v61 = vadd.f32 %v1548_v13, %v1547_v8 }
 0x158   : > { %1642 = vadd.xlane.f32.xlu1 %v1641_v21  ;;  %v1551_v21 = vmul.f32 %v8941_v62, %v8941_v62  ;;  %v1665_v23 = vadd.f32 %v1550_v19, %v1549_v56  ;;  %v5545_v62 = vmov 2  }
 0x159   : > { %1645 = vadd.xlane.f32.xlu0 %v1644_v26  ;;  %v1553_v26 = vmul.f32 %v6143_v14, %v6143_v14  ;;  %4767 = vset.pattern.permute.xlu1 %v5545_v62 }
 0x15a   : > { %v6338_v63 = vpop.xlane.xlu0 %1361  ;;  %v1668_v28 = vadd.f32 %v1552_v1, %v1551_v21  ;;  %4768 = vset.pattern.permute.xlu0 %v5545_v62 }
 0x15b   : > { %v1671_v34 = vadd.f32 %v1554_v37, %v1553_v26 }
 0x15c   : > { %1648 = vadd.xlane.f32.xlu1 %v1647_v54  ;;  %v8944_v54 = vld [vmem:[#allocation61_spill] sm:$0xff] }
 0x15d   : > { %1651 = vadd.xlane.f32.xlu0 %v1650_v38  ;;  %v1556_v59 = vmul.f32 %v8944_v54, %v8944_v54 }
 0x15e   : > { %v1365_v17 = vpop.xlane.xlu0 %1364 }
 0x15f   : > { %v1674_v38 = vadd.f32 %v1556_v59, %v1555_v11  ;;  %v6411_v59 = vmul.f32 0.00390625, %v6338_v63 }
 0x160   : > { %1654 = vadd.xlane.f32.xlu1 %v1653_v40 }
 0x161   : > { %1657 = vadd.xlane.f32.xlu0 %v1656_v47  ;;  %v1359_v53 = vpop.xlane.xlu1 %1358  ;;  %v1758_v63 = vmul.f32 %v6411_v59, %v6411_v59 }
 0x162   : > { %v1368_v16 = vpop.xlane.xlu0 %1367 }
 0x163   : > { %v6419_v0 = vmul.f32 0.00390625, %v1368_v16 }
 0x164   : > { %1660 = vadd.xlane.f32.xlu1 %v1659_v55 }
 0x165   : > { %1663 = vadd.xlane.f32.xlu0 %v1662_v61  ;;  %v1371_v30 = vpop.xlane.xlu1 %1370 }
 0x166   : > { %v1374_v33 = vpop.xlane.xlu0 %1373  ;;  %v6421_v12 = vmul.f32 0.00390625, %v1371_v30 }
 0x167   : > { %v6425_v18 = vmul.f32 0.00390625, %v1374_v33 }
 0x168   : > { %1666 = vadd.xlane.f32.xlu1 %v1665_v23 }
 0x169   : > { %1669 = vadd.xlane.f32.xlu0 %v1668_v28  ;;  %v1377_v15 = vpop.xlane.xlu1 %1376  ;;  %v1762_v29 = vmul.f32 %v6425_v18, %v6425_v18 }
 0x16a   : > { %v1380_v35 = vpop.xlane.xlu0 %1379  ;;  %v6427_v7 = vmul.f32 0.00390625, %v1377_v15  ;;  %v1760_v15 = vmul.f32 %v6419_v0, %v6419_v0 }
 0x16b   : > { %v6431_v2 = vmul.f32 0.00390625, %v1380_v35  ;;  %v1761_v35 = vmul.f32 %v6421_v12, %v6421_v12 }
 0x16c   : > { %1672 = vadd.xlane.f32.xlu1 %v1671_v34  ;;  %v6413_v34 = vmul.f32 0.00390625, %v1365_v17 }
 0x16d   : > { %1675 = vadd.xlane.f32.xlu0 %v1674_v38  ;;  %v1383_v14 = vpop.xlane.xlu1 %1382  ;;  %v6415_v38 = vmul.f32 0.00390625, %v1359_v53  ;;  %v6459_v49 = vmul.f32 %v6431_v2, %v6431_v2 }
 0x16e   : > { %v1386_v36 = vpop.xlane.xlu0 %1385  ;;  %v6433_v17 = vmul.f32 0.00390625, %v1383_v14  ;;  %v1759_v53 = vmul.f32 %v6413_v34, %v6413_v34 }
 0x16f   : > { %v1757_v16 = vmul.f32 %v6415_v38, %v6415_v38  ;;  %v6439_v30 = vmul.f32 0.00390625, %v1386_v36  ;;  %v6453_v36 = vmul.f32 %v6427_v7, %v6427_v7 }
 0x171   : > { %v1389_v3 = vpop.xlane.xlu1 %1388  ;;  %v6469_v43 = vmul.f32 %v6439_v30, %v6439_v30 }
 0x172   : > { %v1392_v51 = vpop.xlane.xlu0 %1391  ;;  %v6441_v10 = vmul.f32 0.00390625, %v1389_v3 }
 0x173   : > { %v6447_v45 = vmul.f32 0.00390625, %v1392_v51  ;;  %v6463_v51 = vmul.f32 %v6433_v17, %v6433_v17 }
 0x175   : > { %v1395_v40 = vpop.xlane.xlu1 %1394  ;;  %v6479_v52 = vmul.f32 %v6447_v45, %v6447_v45 }
 0x176   : > { %v1398_v44 = vpop.xlane.xlu0 %1397  ;;  %v6455_v3 = vmul.f32 0.00390625, %v1395_v40  ;;  %v6473_v40 = vmul.f32 %v6441_v10, %v6441_v10 }
 0x178   : > { %v6485_v57 = vmul.f32 %v6455_v3, %v6455_v3 }
 0x179   : > { %v1401_v5 = vpop.xlane.xlu1 %1400 }
 0x17a   : > { %v1404_v9 = vpop.xlane.xlu0 %1403 }
 0x17b   : > { %v6481_v31 = vmul.f32 0.00390625, %v1404_v9 }
 0x17d   : > { %v6366_v32 = vpop.xlane.xlu1 %1406 }
 0x17e   : > { %v6368_v6 = vpop.xlane.xlu0 %1409  ;;  %v6488_v39 = vmul.f32 0.00390625, %v6366_v32 }
 0x180   : > { %8949 = vst [vmem:[#allocation40_spill] sm:$0xff] %v6488_v39 }
 0x181   : > { %v6370_v47 = vpop.xlane.xlu1 %1412 }
 0x182   : > { %v6372_v48 = vpop.xlane.xlu0 %1415  ;;  %v6502_v25 = vmul.f32 0.00390625, %v6370_v47 }
 0x185   : > { %v6374_v8 = vpop.xlane.xlu1 %1418 }
 0x186   : > { %v6376_v50 = vpop.xlane.xlu0 %1421 }
 0x189   : > { %v6378_v13 = vpop.xlane.xlu1 %1424 }
 0x18a   : > { %v6380_v55 = vpop.xlane.xlu0 %1427 }
 0x18d   : > { %v6382_v56 = vpop.xlane.xlu1 %1430 }
 0x18e   : > { %v6384_v58 = vpop.xlane.xlu0 %1433 }
 0x191   : > { %v6386_v19 = vpop.xlane.xlu1 %1436 }
 0x192   : > { %v6388_v61 = vpop.xlane.xlu0 %1439 }
 0x195   : > { %v6390_v21 = vpop.xlane.xlu1 %1442 }
 0x196   : > { %v6392_v22 = vpop.xlane.xlu0 %1445 }
 0x199   : > { %v6394_v1 = vpop.xlane.xlu1 %1448 }
 0x19a   : > { %v6396_v23 = vpop.xlane.xlu0 %1451 }
 0x19d   : > { %v6398_v26 = vpop.xlane.xlu1 %1454 }
 0x19e   : > { %v6400_v24 = vpop.xlane.xlu0 %1457 }
 0x1a1   : > { %v6402_v37 = vpop.xlane.xlu1 %1460 }
 0x1a2   : > { %v6404_v28 = vpop.xlane.xlu0 %1463 }
 0x1a5   : > { %v6406_v11 = vpop.xlane.xlu1 %1466 }
 0x1a6   : > { %8945 = vst [vmem:[#allocation34_spill] sm:$0xff] %v6406_v11  ;;  %v6408_v54 = vpop.xlane.xlu0 %1469 }
 0x1a7   : > { %8946 = vst [vmem:[#allocation36_spill] sm:$0xff] %v6408_v54 }
 0x1a9   : > { %v6417_v62 = vpop.xlane.xlu1 %1472 }
 0x1aa   : > { %8947 = vst [vmem:[#allocation37_spill] sm:$0xff] %v6417_v62  ;;  %v6423_v42 = vpop.xlane.xlu0 %1475 }
 0x1ab   : > { %8948 = vst [vmem:[#allocation39_spill] sm:$0xff] %v6423_v42 }
 0x1ad   : > { %v1559_v33 = vpop.xlane.xlu1 %1558 }
 0x1ae   : > { %v1717_v14 = vmul.f32 0.00390625, %v1559_v33  ;;  %v1562_v41 = vpop.xlane.xlu0 %1561  ;;  %v6465_v33 = vmul.f32 0.00390625, %v1398_v44 }
 0x1af   : > { %v1718_v46 = vmul.f32 0.00390625, %v1562_v41  ;;  %v6475_v41 = vmul.f32 0.00390625, %v1401_v5 }
 0x1b0   : > { %v1797_v20 = vsub.f32 %v1717_v14, %v1757_v16 }
 0x1b1   : > { %v1798_v4 = vsub.f32 %v1718_v46, %v1758_v63  ;;  %v1565_v60 = vpop.xlane.xlu1 %1564  ;;  %v6492_v46 = vmul.f32 %v6465_v33, %v6465_v33  ;;  %v6495_v63 = vmul.f32 0.00390625, %v6368_v6 }
 0x1b2   : > { %v1837_v44 = vmax.f32 %v1797_v20, 0.0  ;;  %v1719_v16 = vmul.f32 0.00390625, %v1565_v60  ;;  %v1568_v14 = vpop.xlane.xlu0 %1567  ;;  %v6499_v60 = vmul.f32 %v6475_v41, %v6475_v41 }
 0x1b3   : > { %v1838_v5 = vmax.f32 %v1798_v4, 0.0  ;;  %v1720_v27 = vmul.f32 0.00390625, %v1568_v14  ;;  %v6506_v14 = vmul.f32 %v6481_v31, %v6481_v31  ;;  %v6514_v47 = vmul.f32 %v6495_v63, %v6495_v63 }
 0x1b4   : > { %v1877_v9 = vadd.f32 1e-05, %v1837_v44  ;;  %v1799_v20 = vsub.f32 %v1719_v16, %v1759_v53  ;;  %v6510_v53 = vmul.f32 %v6488_v39, %v6488_v39 }
 0x1b5   : > { %v1878_v32 = vadd.f32 1e-05, %v1838_v5  ;;  %v1800_v42 = vsub.f32 %v1720_v27, %v1760_v15  ;;  %v1571_v4 = vpop.xlane.xlu1 %1570  ;;  %v6517_v27 = vmul.f32 0.00390625, %v6372_v48 }
 0x1b6   : > { %4773 = vrsqrt.f32 %v1877_v9  ;;  %v1839_v62 = vmax.f32 %v1799_v20, 0.0  ;;  %v1721_v6 = vmul.f32 0.00390625, %v1571_v4  ;;  %v1574_v54 = vpop.xlane.xlu0 %1573  ;;  %v6521_v9 = vmul.f32 %v6502_v25, %v6502_v25 }
 0x1b7   : > { %4775 = vrsqrt.f32 %v1878_v32  ;;  %v1840_v44 = vmax.f32 %v1800_v42, 0.0  ;;  %v1722_v16 = vmul.f32 0.00390625, %v1574_v54  ;;  %v6524_v20 = vmul.f32 0.00390625, %v6374_v8 }
 0x1b8   : > { %v1879_v15 = vadd.f32 1e-05, %v1839_v62  ;;  %v1801_v5 = vsub.f32 %v1721_v6, %v1761_v35  ;;  %v6527_v54 = vmul.f32 0.00390625, %v6376_v50  ;;  %v6530_v62 = vmul.f32 0.00390625, %v6378_v13 }
 0x1b9   : > { %8950 = vst [vmem:[#allocation41_spill] sm:$0xff] %v6524_v20  ;;  %v1880_v4 = vadd.f32 1e-05, %v1840_v44  ;;  %v1802_v32 = vsub.f32 %v1722_v16, %v1762_v29  ;;  %v1577_v42 = vpop.xlane.xlu1 %1576  ;;  %v6534_v8 = vmul.f32 %v6517_v27, %v6517_v27  ;;  %v6537_v29 = vmul.f32 0.00390625, %v6380_v55 }
 0x1ba   : > { %8951 = vst [vmem:[#allocation42_spill] sm:$0xff] %v6527_v54  ;;  %4777 = vrsqrt.f32 %v1879_v15  ;;  %v1841_v11 = vmax.f32 %v1801_v5, 0.0  ;;  %v1723_v39 = vmul.f32 0.00390625, %v1577_v42  ;;  %v1580_v48 = vpop.xlane.xlu0 %1579  ;;  %8952 = vst [vmem:[#allocation45_spill] sm:$0xff] %v6530_v62  ;;  %v6542_v16 = vmul.f32 %v6524_v20, %v6524_v20 }
 0x1bb   : > { %4779 = vrsqrt.f32 %v1880_v4  ;;  %v1842_v35 = vmax.f32 %v1802_v32, 0.0  ;;  %v1724_v6 = vmul.f32 0.00390625, %v1580_v48  ;;  %8953 = vst [vmem:[#allocation46_spill] sm:$0xff] %v6537_v29  ;;  %v6545_v13 = vmul.f32 0.00390625, %v6382_v56 }
 0x1bc   : > { %v1881_v44 = vadd.f32 1e-05, %v1841_v11  ;;  %v1803_v50 = vsub.f32 %v1723_v39, %v6453_v36  ;;  %v6550_v32 = vmul.f32 %v6527_v54, %v6527_v54  ;;  %v6554_v39 = vmul.f32 %v6530_v62, %v6530_v62 }
 0x1bd   : > { %8954 = vst [vmem:[#allocation47_spill] sm:$0xff] %v6545_v13  ;;  %v1882_v15 = vadd.f32 1e-05, %v1842_v35  ;;  %v1804_v5 = vsub.f32 %v1724_v6, %v6459_v49  ;;  %v1583_v4 = vpop.xlane.xlu1 %1582  ;;  %v6558_v49 = vmul.f32 %v6537_v29, %v6537_v29  ;;  %v6561_v35 = vmul.f32 0.00390625, %v6384_v58 }
 0x1be   : > { %4781 = vrsqrt.f32 %v1881_v44  ;;  %v1843_v55 = vmax.f32 %v1803_v50, 0.0  ;;  %v1725_v11 = vmul.f32 0.00390625, %v1583_v4  ;;  %v1586_v42 = vpop.xlane.xlu0 %1585  ;;  %v6566_v4 = vmul.f32 %v6545_v13, %v6545_v13  ;;  %v6580_v13 = vld [vmem:[%s8735_s1 + $0x8] sm:$0xff] }
 0x1bf   : > { %4783 = vrsqrt.f32 %v1882_v15  ;;  %v1844_v36 = vmax.f32 %v1804_v5, 0.0  ;;  %v1726_v56 = vmul.f32 0.00390625, %v1586_v42  ;;  %v6572_v42 = vld [vmem:[%s8735_s1] sm:$0xff] }
 0x1c0   : > { %v4774_v48 = vpop.eup %4773  ;;  %v1883_v6 = vadd.f32 1e-05, %v1843_v55  ;;  %v1805_v44 = vsub.f32 %v1725_v11, %v6463_v51 }
 0x1c1   : > { %v4776_v50 = vpop.eup %4775  ;;  %v1884_v62 = vadd.f32 1e-05, %v1844_v36  ;;  %v1806_v15 = vsub.f32 %v1726_v56, %v6469_v43  ;;  %v1589_v5 = vpop.xlane.xlu1 %1588  ;;  %v6575_v58 = vmul.f32 %v6572_v42, %v4774_v48 }
 0x1c2   : > { %4785 = vrsqrt.f32 %v1883_v6  ;;  %v1845_v55 = vmax.f32 %v1805_v44, 0.0  ;;  %v1727_v51 = vmul.f32 0.00390625, %v1589_v5  ;;  %v1592_v11 = vpop.xlane.xlu0 %1591  ;;  %v6583_v43 = vmul.f32 %v6580_v13, %v4776_v50 }
 0x1c3   : > { %8955 = vst [vmem:[#allocation48_spill] sm:$0xff] %v6575_v58  ;;  %4787 = vrsqrt.f32 %v1884_v62  ;;  %v1846_v36 = vmax.f32 %v1806_v15, 0.0  ;;  %v1728_v56 = vmul.f32 0.00390625, %v1592_v11  ;;  %v1997_v29 = vmul.f32 %v6575_v58, %v6415_v38 }
 0x1c4   : > { %8956 = vst [vmem:[#allocation49_spill] sm:$0xff] %v6583_v43  ;;  %v4778_v48 = vpop.eup %4777  ;;  %v6588_v6 = vmul.f32 0.00390625, %v6386_v19  ;;  %v1885_v44 = vadd.f32 1e-05, %v1845_v55  ;;  %v1807_v5 = vsub.f32 %v1727_v51, %v6473_v40  ;;  %v1998_v20 = vmul.f32 %v6583_v43, %v6411_v59  ;;  %v6601_v19 = vld [vmem:[%s8735_s1 + $0x10] sm:$0xff] }
 0x1c5   : > { %v4780_v54 = vpop.eup %4779  ;;  %v6594_v50 = vmul.f32 0.00390625, %v6388_v61  ;;  %v1886_v62 = vadd.f32 1e-05, %v1846_v36  ;;  %v1808_v15 = vsub.f32 %v1728_v56, %v6479_v52  ;;  %v1595_v11 = vpop.xlane.xlu1 %1594  ;;  %2077 = vrot.lane.b32.xlu1 %v1997_v29, %s5546_s14  ;;  %v6604_v38 = vmul.f32 %v6601_v19, %v4778_v48  ;;  %v6610_v52 = vld [vmem:[%s8735_s1 + $0x18] sm:$0xff] }
 0x1c6   : > { %4789 = vrsqrt.f32 %v1885_v44  ;;  %v1847_v59 = vmax.f32 %v1807_v5, 0.0  ;;  %v1729_v40 = vmul.f32 0.00390625, %v1595_v11  ;;  %2079 = vrot.lane.b32.xlu0 %v1998_v20, %s5546_s14  ;;  %v1598_v61 = vpop.xlane.xlu0 %1597  ;;  %v6613_v29 = vmul.f32 %v6610_v52, %v4780_v54 }
 0x1c7   : > { %8957 = vst [vmem:[#allocation50_spill] sm:$0xff] %v6604_v38  ;;  %4791 = vrsqrt.f32 %v1886_v62  ;;  %v1848_v55 = vmax.f32 %v1808_v15, 0.0  ;;  %v1730_v51 = vmul.f32 0.00390625, %v1598_v61  ;;  %v1999_v36 = vmul.f32 %v6604_v38, %v6413_v34 }
 0x1c8   : > { %8958 = vst [vmem:[#allocation52_spill] sm:$0xff] %v6613_v29  ;;  %v4782_v56 = vpop.eup %4781  ;;  %v6619_v48 = vmul.f32 %v6561_v35, %v6561_v35  ;;  %v6623_v20 = vmul.f32 %v6588_v6, %v6588_v6  ;;  %v1887_v44 = vadd.f32 1e-05, %v1847_v59  ;;  %v1809_v5 = vsub.f32 %v1729_v40, %v6485_v57  ;;  %v6637_v57 = vld [vmem:[%s8735_s1 + $0x28] sm:$0xff] }
 0x1c9   : > { %v4784_v54 = vpop.eup %4783  ;;  %v6628_v62 = vmul.f32 %v6594_v50, %v6594_v50  ;;  %v1888_v15 = vadd.f32 1e-05, %v1848_v55  ;;  %v1810_v34 = vsub.f32 %v1730_v51, %v6492_v46  ;;  %v1601_v11 = vpop.xlane.xlu1 %1600  ;;  %2081 = vrot.lane.b32.xlu1 %v1999_v36, %s5546_s14  ;;  %v2000_v61 = vmul.f32 %v6613_v29, %v6419_v0  ;;  %v6645_v51 = vld [vmem:[%s8735_s1 + $0x20] sm:$0xff] }
 0x1ca   : > { %4793 = vrsqrt.f32 %v1887_v44  ;;  %v1849_v38 = vmax.f32 %v1809_v5, 0.0  ;;  %v1731_v58 = vmul.f32 0.00390625, %v1601_v11  ;;  %v1604_v59 = vpop.xlane.xlu0 %1603  ;;  %v6640_v40 = vmul.f32 %v6637_v57, %v4784_v54 }
 0x1cb   : > { %4795 = vrsqrt.f32 %v1888_v15  ;;  %v1850_v46 = vmax.f32 %v1810_v34, 0.0  ;;  %v1732_v55 = vmul.f32 0.00390625, %v1604_v59  ;;  %v6648_v0 = vmul.f32 %v6645_v51, %v4782_v56 }
 0x1cc   : > { %8959 = vst [vmem:[#allocation53_spill] sm:$0xff] %v6640_v40  ;;  %v4786_v36 = vpop.eup %4785  ;;  %v6651_v44 = vmul.f32 0.00390625, %v6390_v21  ;;  %v1889_v5 = vadd.f32 1e-05, %v1849_v38  ;;  %v1811_v11 = vsub.f32 %v1731_v58, %v6499_v60  ;;  %v2002_v54 = vmul.f32 %v6640_v40, %v6425_v18  ;;  %v6664_v21 = vld [vmem:[%s8735_s1 + $0x30] sm:$0xff] }
 0x1cd   : > { %v4788_v15 = vpop.eup %4787  ;;  %v6657_v34 = vmul.f32 0.00390625, %v6392_v22  ;;  %v1890_v59 = vadd.f32 1e-05, %v1850_v46  ;;  %v1812_v29 = vsub.f32 %v1732_v55, %v6506_v14  ;;  %v1607_v43 = vpop.xlane.xlu1 %1606  ;;  %2083 = vrot.lane.b32.xlu1 %v2000_v61, %s5546_s14  ;;  %v6667_v60 = vmul.f32 %v6664_v21, %v4786_v36  ;;  %v6673_v14 = vld [vmem:[%s8735_s1 + $0x38] sm:$0xff] }
 0x1ce   : > { %4797 = vrsqrt.f32 %v1889_v5  ;;  %v1851_v18 = vmax.f32 %v1811_v11, 0.0  ;;  %v1733_v58 = vmul.f32 0.00390625, %v1607_v43  ;;  %2087 = vrot.lane.b32.xlu0 %v2002_v54, %s5546_s14  ;;  %v1610_v22 = vpop.xlane.xlu0 %1609  ;;  %v6676_v38 = vmul.f32 %v6673_v14, %v4788_v15 }
 0x1cf   : > { %4799 = vrsqrt.f32 %v1890_v59  ;;  %v1852_v56 = vmax.f32 %v1812_v29, 0.0  ;;  %v1734_v61 = vmul.f32 0.00390625, %v1610_v22  ;;  %v2001_v46 = vmul.f32 %v6648_v0, %v6421_v12 }
 0x1d0   : > { %8960 = vst [vmem:[#allocation55_spill] sm:$0xff] %v6676_v38  ;;  %v4790_v55 = vpop.eup %4789  ;;  %v6682_v43 = vmul.f32 %v6651_v44, %v6651_v44  ;;  %v1891_v36 = vadd.f32 1e-05, %v1851_v18  ;;  %v1813_v5 = vsub.f32 %v1733_v58, %v6510_v53  ;;  %v2004_v11 = vmul.f32 %v6676_v38, %v6431_v2  ;;  %v6699_v58 = vld [vmem:[%s8735_s1 + $0x48] sm:$0xff] }
 0x1d1   : > { %v4792_v54 = vpop.eup %4791  ;;  %v6689_v15 = vmul.f32 %v6657_v34, %v6657_v34  ;;  %v1892_v29 = vadd.f32 1e-05, %v1852_v56  ;;  %v1814_v59 = vsub.f32 %v1734_v61, %v6514_v47  ;;  %v1613_v12 = vpop.xlane.xlu1 %1612  ;;  %2085 = vrot.lane.b32.xlu1 %v2001_v46, %s5546_s14  ;;  %v2003_v22 = vmul.f32 %v6667_v60, %v6427_v7  ;;  %v6707_v7 = vld [vmem:[%s8735_s1 + $0x40] sm:$0xff] }
 0x1d2   : > { %4801 = vrsqrt.f32 %v1891_v36  ;;  %v1853_v18 = vmax.f32 %v1813_v5, 0.0  ;;  %v1735_v53 = vmul.f32 0.00390625, %v1613_v12  ;;  %2091 = vrot.lane.b32.xlu0 %v2004_v11, %s5546_s14  ;;  %v1616_v2 = vpop.xlane.xlu0 %1615  ;;  %v6702_v56 = vmul.f32 %v6699_v58, %v4792_v54 }
 0x1d3   : > { %4803 = vrsqrt.f32 %v1892_v29  ;;  %v1854_v47 = vmax.f32 %v1814_v59, 0.0  ;;  %v1736_v61 = vmul.f32 0.00390625, %v1616_v2  ;;  %v6710_v46 = vmul.f32 %v6707_v7, %v4790_v55 }
 0x1d4   : > { %v4794_v36 = vpop.eup %4793  ;;  %v6713_v5 = vmul.f32 0.00390625, %v6394_v1  ;;  %v1893_v11 = vadd.f32 1e-05, %v1853_v18  ;;  %v1815_v12 = vsub.f32 %v1735_v53, %v6521_v9  ;;  %v2006_v54 = vmul.f32 %v6702_v56, %v6439_v30 }
 0x1d5   : > { %v4796_v29 = vpop.eup %4795  ;;  %v6719_v59 = vmul.f32 0.00390625, %v6396_v23  ;;  %v1894_v2 = vadd.f32 1e-05, %v1854_v47  ;;  %v1816_v38 = vsub.f32 %v1736_v61, %v6534_v8  ;;  %v1619_v40 = vpop.xlane.xlu1 %1618  ;;  %2089 = vrot.lane.b32.xlu1 %v2003_v22, %s5546_s14  ;;  %v6724_v55 = vmul.f32 %v6572_v42, %v4794_v36 }
 0x1d6   : > { %4805 = vrsqrt.f32 %v1893_v11  ;;  %v1855_v1 = vmax.f32 %v1815_v12, 0.0  ;;  %v1737_v18 = vmul.f32 0.00390625, %v1619_v40  ;;  %2095 = vrot.lane.b32.xlu0 %v2006_v54, %s5546_s14  ;;  %v1622_v9 = vpop.xlane.xlu0 %1621  ;;  %v6728_v30 = vmul.f32 %v6580_v13, %v4796_v29 }
 0x1d7   : > { %4807 = vrsqrt.f32 %v1894_v2  ;;  %v1856_v23 = vmax.f32 %v1816_v38, 0.0  ;;  %v1738_v53 = vmul.f32 0.00390625, %v1622_v9  ;;  %v2005_v8 = vmul.f32 %v6710_v46, %v6433_v17 }
 0x1d8   : > { %v4798_v47 = vpop.eup %4797  ;;  %v6734_v22 = vmul.f32 %v6713_v5, %v6713_v5  ;;  %v1895_v61 = vadd.f32 1e-05, %v1855_v1  ;;  %v1817_v40 = vsub.f32 %v1737_v18, %v6542_v16  ;;  %v2008_v36 = vmul.f32 %v6728_v30, %v6447_v45 }
 0x1d9   : > { %v4800_v11 = vpop.eup %4799  ;;  %v6741_v12 = vmul.f32 %v6719_v59, %v6719_v59  ;;  %v1896_v38 = vadd.f32 1e-05, %v1856_v23  ;;  %v1818_v54 = vsub.f32 %v1738_v53, %v6550_v32  ;;  %v1625_v17 = vpop.xlane.xlu1 %1624  ;;  %2093 = vrot.lane.b32.xlu1 %v2005_v8, %s5546_s14  ;;  %v2007_v29 = vmul.f32 %v6724_v55, %v6441_v10 }
 0x1da   : > { %4809 = vrsqrt.f32 %v1895_v61  ;;  %v1857_v2 = vmax.f32 %v1817_v40, 0.0  ;;  %v1739_v16 = vmul.f32 0.00390625, %v1625_v17  ;;  %2099 = vrot.lane.b32.xlu0 %v2008_v36, %s5546_s14  ;;  %v1628_v45 = vpop.xlane.xlu0 %1627  ;;  %v6749_v1 = vmul.f32 %v6610_v52, %v4800_v11 }
 0x1db   : > { %4811 = vrsqrt.f32 %v1896_v38  ;;  %v1858_v18 = vmax.f32 %v1818_v54, 0.0  ;;  %v1740_v9 = vmul.f32 0.00390625, %v1628_v45  ;;  %v6752_v32 = vmul.f32 %v6601_v19, %v4798_v47 }
 0x1dc   : > { %v4802_v23 = vpop.eup %4801  ;;  %v6755_v53 = vmul.f32 0.00390625, %v6398_v26  ;;  %v1897_v10 = vadd.f32 1e-05, %v1857_v2  ;;  %v1819_v8 = vsub.f32 %v1739_v16, %v6554_v39  ;;  %v2010_v61 = vmul.f32 %v6749_v1, %v6465_v33 }
 0x1dd   : > { %v4804_v40 = vpop.eup %4803  ;;  %v6761_v36 = vmul.f32 0.00390625, %v6400_v24  ;;  %v1898_v11 = vadd.f32 1e-05, %v1858_v18  ;;  %v1820_v38 = vsub.f32 %v1740_v9, %v6558_v49  ;;  %v1631_v54 = vpop.xlane.xlu1 %1630  ;;  %2097 = vrot.lane.b32.xlu1 %v2007_v29, %s5546_s14  ;;  %v6766_v47 = vmul.f32 %v6645_v51, %v4802_v23 }
 0x1de   : > { %4813 = vrsqrt.f32 %v1897_v10  ;;  %v1859_v26 = vmax.f32 %v1819_v8, 0.0  ;;  %v1741_v17 = vmul.f32 0.00390625, %v1631_v54  ;;  %2103 = vrot.lane.b32.xlu0 %v2010_v61, %s5546_s14  ;;  %v1634_v39 = vpop.xlane.xlu0 %1633  ;;  %v6770_v33 = vmul.f32 %v6637_v57, %v4804_v40 }
 0x1df   : > { %4815 = vrsqrt.f32 %v1898_v11  ;;  %v1860_v24 = vmax.f32 %v1820_v38, 0.0  ;;  %v1742_v2 = vmul.f32 0.00390625, %v1634_v39  ;;  %v2009_v49 = vmul.f32 %v6752_v32, %v6455_v3 }
 0x1e0   : > { %v4806_v16 = vpop.eup %4805  ;;  %v6776_v29 = vmul.f32 %v6755_v53, %v6755_v53  ;;  %v1899_v45 = vadd.f32 1e-05, %v1859_v26  ;;  %v1821_v18 = vsub.f32 %v1741_v17, %v6566_v4  ;;  %v2012_v9 = vmul.f32 %v6770_v33, %v6481_v31 }
 0x1e1   : > { %v4808_v23 = vpop.eup %4807  ;;  %v6783_v10 = vmul.f32 %v6761_v36, %v6761_v36  ;;  %v1900_v8 = vadd.f32 1e-05, %v1860_v24  ;;  %v1822_v61 = vsub.f32 %v1742_v2, %v6619_v48  ;;  %v1637_v3 = vpop.xlane.xlu1 %1636  ;;  %2101 = vrot.lane.b32.xlu1 %v2009_v49, %s5546_s14  ;;  %v2011_v40 = vmul.f32 %v6766_v47, %v6475_v41 }
 0x1e2   : > { %4817 = vrsqrt.f32 %v1899_v45  ;;  %v1861_v11 = vmax.f32 %v1821_v18, 0.0  ;;  %v1743_v4 = vmul.f32 0.00390625, %v1637_v3  ;;  %2107 = vrot.lane.b32.xlu0 %v2012_v9, %s5546_s14  ;;  %v1640_v31 = vpop.xlane.xlu0 %1639  ;;  %v6791_v38 = vmul.f32 %v6673_v14, %v4808_v23  ;;  %v8961_v3 = vld [vmem:[#allocation40_spill] sm:$0xff] }
 0x1e3   : > { %4819 = vrsqrt.f32 %v1900_v8  ;;  %v1862_v54 = vmax.f32 %v1822_v61, 0.0  ;;  %v1744_v26 = vmul.f32 0.00390625, %v1640_v31  ;;  %v6794_v48 = vmul.f32 %v6664_v21, %v4806_v16 }
 0x1e4   : > { %v4810_v17 = vpop.eup %4809  ;;  %v6797_v39 = vmul.f32 0.00390625, %v6402_v37  ;;  %v1901_v41 = vadd.f32 1e-05, %v1861_v11  ;;  %v1823_v24 = vsub.f32 %v1743_v4, %v6623_v20  ;;  %v2014_v2 = vmul.f32 %v6791_v38, %v6495_v63 }
 0x1e5   : > { %v4812_v49 = vpop.eup %4811  ;;  %v6803_v45 = vmul.f32 0.00390625, %v6404_v28  ;;  %v1902_v18 = vadd.f32 1e-05, %v1862_v54  ;;  %v1824_v9 = vsub.f32 %v1744_v26, %v6628_v62  ;;  %v1643_v23 = vpop.xlane.xlu1 %1642  ;;  %2105 = vrot.lane.b32.xlu1 %v2011_v40, %s5546_s14  ;;  %v6808_v16 = vmul.f32 %v6707_v7, %v4810_v17 }
 0x1e6   : > { %4821 = vrsqrt.f32 %v1901_v41  ;;  %v1863_v37 = vmax.f32 %v1823_v24, 0.0  ;;  %v1745_v8 = vmul.f32 0.00390625, %v1643_v23  ;;  %2111 = vrot.lane.b32.xlu0 %v2014_v2, %s5546_s14  ;;  %v1646_v20 = vpop.xlane.xlu0 %1645  ;;  %v6812_v63 = vmul.f32 %v6699_v58, %v4812_v49 }
 0x1e7   : > { %4823 = vrsqrt.f32 %v1902_v18  ;;  %v1864_v28 = vmax.f32 %v1824_v9, 0.0  ;;  %v1746_v61 = vmul.f32 0.00390625, %v1646_v20  ;;  %v2013_v62 = vmul.f32 %v6794_v48, %v8961_v3  ;;  %v8962_v20 = vld [vmem:[#allocation34_spill] sm:$0xff] }
 0x1e8   : > { %v4814_v11 = vpop.eup %4813  ;;  %v6818_v40 = vmul.f32 %v6797_v39, %v6797_v39  ;;  %v1903_v4 = vadd.f32 1e-05, %v1863_v37  ;;  %v1825_v31 = vsub.f32 %v1745_v8, %v6682_v43  ;;  %v2016_v54 = vmul.f32 %v6812_v63, %v6517_v27  ;;  %v8963_v3 = vld [vmem:[#allocation42_spill] sm:$0xff] }
 0x1e9   : > { %v4816_v26 = vpop.eup %4815  ;;  %v6825_v17 = vmul.f32 %v6803_v45, %v6803_v45  ;;  %v1904_v41 = vadd.f32 1e-05, %v1864_v28  ;;  %v1826_v24 = vsub.f32 %v1746_v61, %v6689_v15  ;;  %v1649_v2 = vpop.xlane.xlu1 %1648  ;;  %2109 = vrot.lane.b32.xlu1 %v2013_v62, %s5546_s14  ;;  %v2015_v49 = vmul.f32 %v6808_v16, %v6502_v25 }
 0x1ea   : > { %4825 = vrsqrt.f32 %v1903_v4  ;;  %v1865_v18 = vmax.f32 %v1825_v31, 0.0  ;;  %v1747_v43 = vmul.f32 0.00390625, %v1649_v2  ;;  %2115 = vrot.lane.b32.xlu0 %v2016_v54, %s5546_s14  ;;  %v1652_v27 = vpop.xlane.xlu0 %1651  ;;  %v6833_v9 = vmul.f32 %v6580_v13, %v4816_v26  ;;  %v8964_v31 = vld [vmem:[#allocation36_spill] sm:$0xff] }
 0x1eb   : > { %4827 = vrsqrt.f32 %v1904_v41  ;;  %v1866_v23 = vmax.f32 %v1826_v24, 0.0  ;;  %v1748_v37 = vmul.f32 0.00390625, %v1652_v27  ;;  %v6836_v15 = vmul.f32 %v6572_v42, %v4814_v11 }
 0x1ec   : > { %v4818_v8 = vpop.eup %4817  ;;  %v6839_v28 = vmul.f32 0.00390625, %v8962_v20  ;;  %v1905_v25 = vadd.f32 1e-05, %v1865_v18  ;;  %v1827_v61 = vsub.f32 %v1747_v43, %v6734_v22  ;;  %v2018_v62 = vmul.f32 %v6833_v9, %v8963_v3  ;;  %v8966_v20 = vld [vmem:[#allocation41_spill] sm:$0xff] }
 0x1ed   : > { %v4820_v4 = vpop.eup %4819  ;;  %v6845_v54 = vmul.f32 0.00390625, %v8964_v31  ;;  %v1906_v26 = vadd.f32 1e-05, %v1866_v23  ;;  %v1828_v41 = vsub.f32 %v1748_v37, %v6741_v12  ;;  %v1655_v24 = vpop.xlane.xlu1 %1654  ;;  %2113 = vrot.lane.b32.xlu1 %v2015_v49, %s5546_s14  ;;  %v6850_v11 = vmul.f32 %v6601_v19, %v4818_v8 }
 0x1ee   : > { %4829 = vrsqrt.f32 %v1905_v25  ;;  %v1867_v2 = vmax.f32 %v1827_v61, 0.0  ;;  %v1749_v18 = vmul.f32 0.00390625, %v1655_v24  ;;  %2119 = vrot.lane.b32.xlu0 %v2018_v62, %s5546_s14  ;;  %v1658_v22 = vpop.xlane.xlu0 %1657  ;;  %v6854_v43 = vmul.f32 %v6610_v52, %v4820_v4  ;;  %v8967_v61 = vld [vmem:[#allocation46_spill] sm:$0xff]  ;;  %v8968_v24 = vld [vmem:[#allocation45_spill] sm:$0xff] }
 0x1ef   : > { %4831 = vrsqrt.f32 %v1906_v26  ;;  %v1868_v27 = vmax.f32 %v1828_v41, 0.0  ;;  %v1750_v23 = vmul.f32 0.00390625, %v1658_v22  ;;  %v2017_v12 = vmul.f32 %v6836_v15, %v8966_v20 }
 0x1f0   : > { %8965 = vst [vmem:[#allocation56_spill] sm:$0xff] %v6854_v43  ;;  %v4822_v37 = vpop.eup %4821  ;;  %v1793_v49 = vmul.f32 %v6839_v28, %v6839_v28  ;;  %v1907_v8 = vadd.f32 1e-05, %v1867_v2  ;;  %v1829_v25 = vsub.f32 %v1749_v18, %v6776_v29  ;;  %v2020_v3 = vmul.f32 %v6854_v43, %v8967_v61 }
 0x1f1   : > { %v4824_v62 = vpop.eup %4823  ;;  %v1794_v4 = vmul.f32 %v6845_v54, %v6845_v54  ;;  %v1908_v31 = vadd.f32 1e-05, %v1868_v27  ;;  %v1830_v26 = vsub.f32 %v1750_v23, %v6783_v10  ;;  %v1661_v41 = vpop.xlane.xlu1 %1660  ;;  %2117 = vrot.lane.b32.xlu1 %v2017_v12, %s5546_s14  ;;  %v2019_v22 = vmul.f32 %v6850_v11, %v8968_v24  ;;  %v8970_v12 = vld [vmem:[#allocation37_spill] sm:$0xff] }
 0x1f2   : > { %4833 = vrsqrt.f32 %v1907_v8  ;;  %v1869_v2 = vmax.f32 %v1829_v25, 0.0  ;;  %v1751_v20 = vmul.f32 0.00390625, %v1661_v41  ;;  %2123 = vrot.lane.b32.xlu0 %v2020_v3, %s5546_s14  ;;  %v1664_v29 = vpop.xlane.xlu0 %1663  ;;  %v6871_v18 = vmul.f32 %v6637_v57, %v4824_v62  ;;  %v8971_v41 = vld [vmem:[#allocation39_spill] sm:$0xff] }
 0x1f3   : > { %4835 = vrsqrt.f32 %v1908_v31  ;;  %v1870_v61 = vmax.f32 %v1830_v26, 0.0  ;;  %v1752_v27 = vmul.f32 0.00390625, %v1664_v29  ;;  %v6874_v10 = vmul.f32 %v6645_v51, %v4822_v37 }
 0x1f4   : > { %8969 = vst [vmem:[#allocation57_spill] sm:$0xff] %v6871_v18  ;;  %v4826_v23 = vpop.eup %4825  ;;  %v6877_v43 = vmul.f32 0.00390625, %v8970_v12  ;;  %v1909_v24 = vadd.f32 1e-05, %v1869_v2  ;;  %v1831_v8 = vsub.f32 %v1751_v20, %v6818_v40  ;;  %v2022_v25 = vmul.f32 %v6871_v18, %v6561_v35 }
 0x1f5   : > { %v4828_v3 = vpop.eup %4827  ;;  %v6883_v62 = vmul.f32 0.00390625, %v8971_v41  ;;  %v1910_v31 = vadd.f32 1e-05, %v1870_v61  ;;  %v1832_v26 = vsub.f32 %v1752_v27, %v6825_v17  ;;  %v1667_v29 = vpop.xlane.xlu1 %1666  ;;  %2121 = vrot.lane.b32.xlu1 %v2019_v22, %s5546_s14  ;;  %v6888_v37 = vmul.f32 %v6664_v21, %v4826_v23  ;;  %v8972_v41 = vld [vmem:[#allocation47_spill] sm:$0xff] }
 0x1f6   : > { %4837 = vrsqrt.f32 %v1909_v24  ;;  %v1871_v2 = vmax.f32 %v1831_v8, 0.0  ;;  %v1753_v12 = vmul.f32 0.00390625, %v1667_v29  ;;  %2127 = vrot.lane.b32.xlu0 %v2022_v25, %s5546_s14  ;;  %v1670_v40 = vpop.xlane.xlu0 %1669  ;;  %v6892_v35 = vmul.f32 %v6673_v14, %v4828_v3 }
 0x1f7   : > { %4839 = vrsqrt.f32 %v1910_v31  ;;  %v1872_v20 = vmax.f32 %v1832_v26, 0.0  ;;  %v1754_v61 = vmul.f32 0.00390625, %v1670_v40  ;;  %v2021_v17 = vmul.f32 %v6874_v10, %v8972_v41 }
 0x1f8   : > { %v4830_v27 = vpop.eup %4829  ;;  %v1795_v22 = vmul.f32 %v6877_v43, %v6877_v43  ;;  %v1911_v23 = vadd.f32 1e-05, %v1871_v2  ;;  %v1833_v24 = vsub.f32 %v1753_v12, %v1793_v49  ;;  %v2024_v8 = vmul.f32 %v6892_v35, %v6594_v50 }
 0x1f9   : > { %v4832_v25 = vpop.eup %4831  ;;  %v1796_v3 = vmul.f32 %v6883_v62, %v6883_v62  ;;  %v1912_v29 = vadd.f32 1e-05, %v1872_v20  ;;  %v1834_v31 = vsub.f32 %v1754_v61, %v1794_v4  ;;  %v1673_v26 = vpop.xlane.xlu1 %1672  ;;  %2125 = vrot.lane.b32.xlu1 %v2021_v17, %s5546_s14  ;;  %v2023_v40 = vmul.f32 %v6888_v37, %v6588_v6 }
 0x1fa   : > { %4841 = vrsqrt.f32 %v1911_v23  ;;  %v1873_v41 = vmax.f32 %v1833_v24, 0.0  ;;  %v1755_v18 = vmul.f32 0.00390625, %v1673_v26  ;;  %2131 = vrot.lane.b32.xlu0 %v2024_v8, %s5546_s14  ;;  %v1676_v49 = vpop.xlane.xlu0 %1675  ;;  %v6907_v50 = vmul.f32 %v6699_v58, %v4832_v25 }
 0x1fb   : > { %4843 = vrsqrt.f32 %v1912_v29  ;;  %v1874_v2 = vmax.f32 %v1834_v31, 0.0  ;;  %v1756_v12 = vmul.f32 0.00390625, %v1676_v49  ;;  %v6910_v4 = vmul.f32 %v6707_v7, %v4830_v27 }
 0x1fc   : > { %v4834_v20 = vpop.eup %4833  ;;  %v1913_v61 = vadd.f32 1e-05, %v1873_v41  ;;  %v1835_v17 = vsub.f32 %v1755_v18, %v1795_v22  ;;  %v2026_v6 = vmul.f32 %v6907_v50, %v6657_v34 }
 0x1fd   : > { %v4836_v23 = vpop.eup %4835  ;;  %v1914_v24 = vadd.f32 1e-05, %v1874_v2  ;;  %v1836_v26 = vsub.f32 %v1756_v12, %v1796_v3  ;;  %2129 = vrot.lane.b32.xlu1 %v2023_v40, %s5546_s14  ;;  %v2025_v18 = vmul.f32 %v6910_v4, %v6651_v44  ;;  %v6922_v22 = vmul.f32 %v6572_v42, %v4834_v20 }
 0x1fe   : > { %4845 = vrsqrt.f32 %v1913_v61  ;;  %v1875_v8 = vmax.f32 %v1835_v17, 0.0  ;;  %2135 = vrot.lane.b32.xlu0 %v2026_v6, %s5546_s14  ;;  %v6917_v25 = vmul.f32 %v6580_v13, %v4836_v23 }
 0x1ff   : > { %4847 = vrsqrt.f32 %v1914_v24  ;;  %v1876_v27 = vmax.f32 %v1836_v26, 0.0  ;;  %v2027_v44 = vmul.f32 %v6922_v22, %v6713_v5 }
 0x200   : > { %v4838_v34 = vpop.eup %4837  ;;  %v1915_v29 = vadd.f32 1e-05, %v1875_v8  ;;  %v2028_v3 = vmul.f32 %v6917_v25, %v6719_v59 }
 0x201   : > { %v4840_v31 = vpop.eup %4839  ;;  %v1916_v40 = vadd.f32 1e-05, %v1876_v27  ;;  %2133 = vrot.lane.b32.xlu1 %v2025_v18, %s5546_s14  ;;  %v6934_v49 = vmul.f32 %v6601_v19, %v4838_v34 }
 0x202   : > { %4849 = vrsqrt.f32 %v1915_v29  ;;  %2139 = vrot.lane.b32.xlu0 %v2028_v3, %s5546_s14  ;;  %v6929_v41 = vmul.f32 %v6610_v52, %v4840_v31  ;;  %v8973_v29 = vld [vmem:[#allocation49_spill] sm:$0xff]  ;;  %v8974_v3 = vld [vmem:[#allocation48_spill] sm:$0xff] }
 0x203   : > { %4851 = vrsqrt.f32 %v1916_v40  ;;  %v2029_v61 = vmul.f32 %v6934_v49, %v6755_v53  ;;  %v8976_v31 = vld [vmem:[#allocation52_spill] sm:$0xff] }
 0x204   : > { %v4842_v2 = vpop.eup %4841  ;;  %v2030_v59 = vmul.f32 %v6929_v41, %v6761_v36 }
 0x205   : > { %v4844_v12 = vpop.eup %4843  ;;  %2137 = vrot.lane.b32.xlu1 %v2027_v44, %s5546_s14  ;;  %v6946_v5 = vmul.f32 %v6645_v51, %v4842_v2  ;;  %v5547_v44 = vmov 3  }
 0x206   : > { %2143 = vrot.lane.b32.xlu0 %v2030_v59, %s5546_s14  ;;  %v6941_v20 = vmul.f32 %v6637_v57, %v4844_v12 }
 0x207   : > { %v2031_v24 = vmul.f32 %v6946_v5, %v6797_v39 }
 0x208   : > { %v4846_v17 = vpop.eup %4845  ;;  %v2032_v6 = vmul.f32 %v6941_v20, %v6803_v45 }
 0x209   : > { %v4848_v23 = vpop.eup %4847  ;;  %2141 = vrot.lane.b32.xlu1 %v2029_v61, %s5546_s14  ;;  %v6958_v53 = vmul.f32 %v6664_v21, %v4846_v17 }
 0x20a   : > { %2147 = vrot.lane.b32.xlu0 %v2032_v6, %s5546_s14  ;;  %v6953_v36 = vmul.f32 %v6673_v14, %v4848_v23 }
 0x20b   : > { %v2033_v18 = vmul.f32 %v6958_v53, %v6839_v28  ;;  %v8975_v28 = vld [vmem:[#allocation50_spill] sm:$0xff] }
 0x20c   : > { %v4850_v26 = vpop.eup %4849  ;;  %v2034_v8 = vmul.f32 %v6953_v36, %v6845_v54 }
 0x20d   : > { %v4852_v27 = vpop.eup %4851  ;;  %2145 = vrot.lane.b32.xlu1 %v2031_v24, %s5546_s14  ;;  %v1995_v39 = vmul.f32 %v6707_v7, %v4850_v26 }
 0x20e   : > { %2151 = vrot.lane.b32.xlu0 %v2034_v8, %s5546_s14  ;;  %v6965_v45 = vmul.f32 %v6699_v58, %v4852_v27 }
 0x20f   : > { %v2035_v54 = vmul.f32 %v1995_v39, %v6877_v43  ;;  %v8978_v43 = vld [vmem:[#allocation55_spill] sm:$0xff] }
 0x210   : > { %v2036_v34 = vmul.f32 %v6965_v45, %v6883_v62  ;;  %v8977_v62 = vld [vmem:[#allocation53_spill] sm:$0xff] }
 0x211   : > { %2149 = vrot.lane.b32.xlu1 %v2033_v18, %s5546_s14 }
 0x212   : > { %2155 = vrot.lane.b32.xlu0 %v2036_v34, %s5546_s14 }
 0x215   : > { %2153 = vrot.lane.b32.xlu1 %v2035_v54, %s5546_s14 }
 0x216   : > { %2244 = vperm.xlu0 %4768, %v8973_v29  }
 0x219   : > { %2239 = vperm.xlu1 %4767, %v8974_v3  }
 0x21a   : > { %2259 = vperm.xlu0 %4768, %v6648_v0  }
 0x21d   : > { %2249 = vperm.xlu1 %4767, %v8975_v28  }
 0x21e   : > { %2269 = vperm.xlu0 %4768, %v6667_v60  }
 0x221   : > { %2254 = vperm.xlu1 %4767, %v8976_v31  }
 0x222   : > { %2279 = vperm.xlu0 %4768, %v6710_v46  }
 0x225   : > { %2264 = vperm.xlu1 %4767, %v8977_v62  }
 0x226   : > { %2289 = vperm.xlu0 %4768, %v6724_v55  }
 0x229   : > { %2274 = vperm.xlu1 %4767, %v8978_v43  }
 0x22a   : > { %2299 = vperm.xlu0 %4768, %v6752_v32  }
 0x22d   : > { %2284 = vperm.xlu1 %4767, %v6702_v56  }
 0x22e   : > { %2309 = vperm.xlu0 %4768, %v6766_v47  }
 0x231   : > { %2294 = vperm.xlu1 %4767, %v6728_v30  }
 0x232   : > { %2319 = vperm.xlu0 %4768, %v6794_v48  }
 0x235   : > { %2304 = vperm.xlu1 %4767, %v6749_v1  }
 0x236   : > { %2329 = vperm.xlu0 %4768, %v6808_v16   ;;  %v8980_v16 = vld [vmem:[#allocation57_spill] sm:$0xff] }
 0x237   : > { %v2078_v0 = vpop.permute.xlu1 %2077 }
 0x238   : > { %v2080_v46 = vpop.permute.xlu0 %2079 }
 0x239   : > { %2314 = vperm.xlu1 %4767, %v6770_v33   ;;  %v8979_v33 = vld [vmem:[#allocation56_spill] sm:$0xff]  ;;  %v2198_v61 = vsub.f32 %v6580_v13, %v2080_v46 }
 0x23a   : > { %2339 = vperm.xlu0 %4768, %v6836_v15  }
 0x23b   : > { %v6995_v60 = vpop.permute.xlu1 %2081 }
 0x23c   : > { %v2199_v6 = vsub.f32 %v6601_v19, %v6995_v60 }
 0x23d   : > { %2324 = vperm.xlu1 %4767, %v6791_v38  }
 0x23e   : > { %2349 = vperm.xlu0 %4768, %v6850_v11  }
 0x23f   : > { %v2084_v56 = vpop.permute.xlu1 %2083 }
 0x240   : > { %v2088_v55 = vpop.permute.xlu0 %2087  ;;  %v2200_v2 = vsub.f32 %v6610_v52, %v2084_v56 }
 0x241   : > { %2334 = vperm.xlu1 %4767, %v6812_v63   ;;  %v2202_v12 = vsub.f32 %v6637_v57, %v2088_v55 }
 0x242   : > { %2359 = vperm.xlu0 %4768, %v6874_v10  }
 0x243   : > { %v2086_v30 = vpop.permute.xlu1 %2085 }
 0x244   : > { %v2092_v1 = vpop.permute.xlu0 %2091 }
 0x245   : > { %2344 = vperm.xlu1 %4767, %v6833_v9  }
 0x246   : > { %2369 = vperm.xlu0 %4768, %v6888_v37  }
 0x247   : > { %v2090_v32 = vpop.permute.xlu1 %2089 }
 0x248   : > { %v2096_v47 = vpop.permute.xlu0 %2095  ;;  %v2203_v27 = vsub.f32 %v6664_v21, %v2090_v32 }
 0x249   : > { %2354 = vperm.xlu1 %4767, %v8979_v33  }
 0x24a   : > { %2379 = vperm.xlu0 %4768, %v6910_v4  }
 0x24b   : > { %v7005_v38 = vpop.permute.xlu1 %2093 }
 0x24c   : > { %v2100_v48 = vpop.permute.xlu0 %2099 }
 0x24d   : > { %2364 = vperm.xlu1 %4767, %v8980_v16   ;;  %v2208_v26 = vsub.f32 %v6580_v13, %v2100_v48 }
 0x24e   : > { %2389 = vperm.xlu0 %4768, %v6922_v22  }
 0x24f   : > { %v7009_v63 = vpop.permute.xlu1 %2097 }
 0x250   : > { %v2104_v15 = vpop.permute.xlu0 %2103  ;;  %v2207_v3 = vsub.f32 %v6572_v42, %v7009_v63 }
 0x251   : > { %2374 = vperm.xlu1 %4767, %v6892_v35  }
 0x252   : > { %2399 = vperm.xlu0 %4768, %v6934_v49  }
 0x253   : > { %v7013_v9 = vpop.permute.xlu1 %2101 }
 0x254   : > { %v2108_v11 = vpop.permute.xlu0 %2107  ;;  %v2209_v62 = vsub.f32 %v6601_v19, %v7013_v9 }
 0x255   : > { %2384 = vperm.xlu1 %4767, %v6907_v50   ;;  %v2197_v50 = vsub.f32 %v6572_v42, %v2078_v0  ;;  %v2212_v54 = vsub.f32 %v6637_v57, %v2108_v11 }
 0x256   : > { %2409 = vperm.xlu0 %4768, %v6946_v5   ;;  %v2204_v5 = vsub.f32 %v6673_v14, %v2092_v1 }
 0x257   : > { %v7017_v10 = vpop.permute.xlu1 %2105 }
 0x258   : > { %v2112_v37 = vpop.permute.xlu0 %2111  ;;  %v2211_v60 = vsub.f32 %v6645_v51, %v7017_v10 }
 0x259   : > { %2394 = vperm.xlu1 %4767, %v6917_v25   ;;  %v2214_v28 = vsub.f32 %v6673_v14, %v2112_v37 }
 0x25a   : > { %2419 = vperm.xlu0 %4768, %v6958_v53   ;;  %v2201_v53 = vsub.f32 %v6645_v51, %v2086_v30 }
 0x25b   : > { %v7021_v4 = vpop.permute.xlu1 %2109 }
 0x25c   : > { %v2116_v22 = vpop.permute.xlu0 %2115  ;;  %v2213_v30 = vsub.f32 %v6664_v21, %v7021_v4  ;;  %v7094_v4 = vld [vmem:[%s8735_s1 + $0x8] sm:$0xff] }
 0x25d   : > { %2404 = vperm.xlu1 %4767, %v6929_v41   ;;  %v2216_v43 = vsub.f32 %v6699_v58, %v2116_v22 }
 0x25e   : > { %2429 = vperm.xlu0 %4768, %v1995_v39   ;;  %v2205_v39 = vsub.f32 %v6707_v7, %v7005_v38 }
 0x25f   : > { %v7024_v35 = vpop.permute.xlu1 %2113 }
 0x260   : > { %v2120_v40 = vpop.permute.xlu0 %2119 }
 0x261   : > { %2414 = vperm.xlu1 %4767, %v6941_v20   ;;  %v2218_v56 = vsub.f32 %v6580_v13, %v2120_v40 }
 0x262   : > { %4769 = vset.pattern.permute.xlu0 %v5547_v44 }
 0x263   : > { %2519 = vperm.xlu0 %4769, %v2197_v50   ;;  %v7028_v49 = vpop.permute.xlu1 %2117 }
 0x264   : > { %v2124_v25 = vpop.permute.xlu0 %2123  ;;  %v2217_v13 = vsub.f32 %v6572_v42, %v7028_v49 }
 0x265   : > { %2424 = vperm.xlu1 %4767, %v6953_v36   ;;  %v2206_v36 = vsub.f32 %v6699_v58, %v2096_v47  ;;  %v2220_v1 = vsub.f32 %v6610_v52, %v2124_v25  ;;  %v2215_v47 = vsub.f32 %v6707_v7, %v7024_v35 }
 0x267   : > { %2534 = vperm.xlu0 %4769, %v2200_v2   ;;  %v7032_v41 = vpop.permute.xlu1 %2121 }
 0x268   : > { %v2128_v59 = vpop.permute.xlu0 %2127 }
 0x269   : > { %2434 = vperm.xlu1 %4767, %v6965_v45   ;;  %v2210_v45 = vsub.f32 %v6610_v52, %v2104_v15  ;;  %v2222_v33 = vsub.f32 %v6637_v57, %v2128_v59  ;;  %v2219_v15 = vsub.f32 %v6601_v19, %v7032_v41  ;;  %v5344_v59 = vld [vmem:[%s8735_s1] sm:$0xff] }
 0x26b   : > { %2544 = vperm.xlu0 %4769, %v2202_v12   ;;  %v7036_v20 = vpop.permute.xlu1 %2125 }
 0x26c   : > { %v2132_v17 = vpop.permute.xlu0 %2131  ;;  %v2221_v42 = vsub.f32 %v6645_v51, %v7036_v20 }
 0x26d   : > { %4770 = vset.pattern.permute.xlu1 %v5547_v44  ;;  %v2224_v16 = vsub.f32 %v6673_v14, %v2132_v17 }
 0x26e   : > { %2524 = vperm.xlu1 %4770, %v2198_v61  }
 0x26f   : > { %2554 = vperm.xlu0 %4769, %v2204_v5   ;;  %v7042_v23 = vpop.permute.xlu1 %2129 }
 0x270   : > { %v2136_v24 = vpop.permute.xlu0 %2135  ;;  %v2223_v35 = vsub.f32 %v6664_v21, %v7042_v23 }
 0x271   : > { %v2226_v11 = vsub.f32 %v6699_v58, %v2136_v24 }
 0x272   : > { %2529 = vperm.xlu1 %4770, %v2199_v6  }
 0x273   : > { %2564 = vperm.xlu0 %4769, %v2206_v36   ;;  %v7047_v8 = vpop.permute.xlu1 %2133 }
 0x274   : > { %v2140_v18 = vpop.permute.xlu0 %2139  ;;  %v2225_v49 = vsub.f32 %v6707_v7, %v7047_v8 }
 0x275   : > { %v2228_v19 = vsub.f32 %v7094_v4, %v2140_v18 }
 0x276   : > { %2539 = vperm.xlu1 %4770, %v2201_v53  }
 0x277   : > { %2574 = vperm.xlu0 %4769, %v2208_v26   ;;  %v7053_v34 = vpop.permute.xlu1 %2137 }
 0x278   : > { %v2144_v29 = vpop.permute.xlu0 %2143 }
 0x279   : > { %v2230_v50 = vsub.f32 %v6610_v52, %v2144_v29  ;;  %v2227_v52 = vsub.f32 %v5344_v59, %v7053_v34 }
 0x27a   : > { %2549 = vperm.xlu1 %4770, %v2203_v27  }
 0x27b   : > { %2584 = vperm.xlu0 %4769, %v2210_v45   ;;  %v7059_v31 = vpop.permute.xlu1 %2141 }
 0x27c   : > { %v2148_v0 = vpop.permute.xlu0 %2147 }
 0x27d   : > { %v2232_v2 = vsub.f32 %v6637_v57, %v2148_v0  ;;  %v7125_v57 = vld [vmem:[%s8735_s1 + $0x10] sm:$0xff]  ;;  %v8988_v0 = vld [vmem:[#allocation11_spill] sm:$0xff] }
 0x27e   : > { %2559 = vperm.xlu1 %4770, %v2205_v39   ;;  %v2229_v5 = vsub.f32 %v7125_v57, %v7059_v31 }
 0x27f   : > { %2594 = vperm.xlu0 %4769, %v2212_v54   ;;  %v7066_v46 = vpop.permute.xlu1 %2145 }
 0x280   : > { %v2152_v55 = vpop.permute.xlu0 %2151 }
 0x281   : > { %v2234_v20 = vsub.f32 %v6673_v14, %v2152_v55  ;;  %v2231_v14 = vsub.f32 %v6645_v51, %v7066_v46 }
 0x282   : > { %2569 = vperm.xlu1 %4770, %v2207_v3  }
 0x283   : > { %2604 = vperm.xlu0 %4769, %v2214_v28   ;;  %v2150_v32 = vpop.permute.xlu1 %2149 }
 0x284   : > { %v2156_v38 = vpop.permute.xlu0 %2155  ;;  %v2233_v53 = vsub.f32 %v6664_v21, %v2150_v32 }
 0x285   : > { %v2236_v6 = vsub.f32 %v6699_v58, %v2156_v38 }
 0x286   : > { %2579 = vperm.xlu1 %4770, %v2209_v62  }
 0x287   : > { %2614 = vperm.xlu0 %4769, %v2216_v43   ;;  %v2154_v48 = vpop.permute.xlu1 %2153 }
 0x288   : > { %v2235_v58 = vsub.f32 %v6707_v7, %v2154_v48 }
 0x28a   : > { %2589 = vperm.xlu1 %4770, %v2211_v60   ;;  %v7177_v60 = vmul.f32 0.00390625, %v8988_v0  ;;  %v9005_v0 = vld [vmem:[#allocation12_spill] sm:$0xff] }
 0x28b   : > { %2624 = vperm.xlu0 %4769, %v2218_v56   ;;  %v8991_v56 = vld [vmem:[#allocation18_spill] sm:$0xff] }
 0x28c   : > { %8989 = vst [vmem:[#allocation46_spill] sm:$0xff] %v7177_v60  ;;  %v7182_v55 = vmul.f32 0.00390625, %v8991_v56 }
 0x28e   : > { %2599 = vperm.xlu1 %4770, %v2213_v30   ;;  %8992 = vst [vmem:[#allocation37_spill] sm:$0xff] %v7182_v55  ;;  %v8993_v30 = vld [vmem:[#allocation38_spill] sm:$0xff]  ;;  %v503_v38 = vmul.f32 %v7094_v4, %v7182_v55 }
 0x28f   : > { %2634 = vperm.xlu0 %4769, %v2220_v1   ;;  %v7185_v1 = vmul.f32 0.00390625, %v8993_v30  ;;  %v9007_v30 = vld [vmem:[#allocation76_spill] sm:$0xff] }
 0x291   : > { %8994 = vst [vmem:[#allocation39_spill] sm:$0xff] %v7185_v1 }
 0x292   : > { %2609 = vperm.xlu1 %4770, %v2215_v47   ;;  %v493_v47 = vmul.f32 %v7094_v4, %v7177_v60 }
 0x293   : > { %2644 = vperm.xlu0 %4769, %v2222_v33  }
 0x295   : > { %v7078_v63 = vpop.permute.xlu0 %2244 }
 0x296   : > { %2619 = vperm.xlu1 %4770, %v2217_v13   ;;  %v8997_v13 = vld [vmem:[#allocation75_spill] sm:$0xff] }
 0x297   : > { %2654 = vperm.xlu0 %4769, %v2224_v16   ;;  %v573_v48 = vadd.f32 %v8997_v13, %v493_v47  ;;  %v8998_v16 = vld [vmem:[#allocation9_spill] sm:$0xff] }
 0x298   : > { %v7082_v9 = vpop.permute.xlu1 %2239 }
 0x299   : > { %v7085_v10 = vpop.permute.xlu0 %2259 }
 0x29a   : > { %2629 = vperm.xlu1 %4770, %v2219_v15   ;;  %v7197_v15 = vmul.f32 0.00390625, %v8998_v16 }
 0x29b   : > { %2664 = vperm.xlu0 %4769, %v2226_v11   ;;  %v513_v11 = vmul.f32 %v7094_v4, %v7185_v1 }
 0x29c   : > { %v7089_v37 = vpop.permute.xlu1 %2249  ;;  %8999 = vst [vmem:[#allocation48_spill] sm:$0xff] %v7197_v15 }
 0x29d   : > { %v7097_v22 = vpop.permute.xlu0 %2269 }
 0x29e   : > { %2639 = vperm.xlu1 %4770, %v2221_v42   ;;  %v583_v42 = vadd.f32 %v8997_v13, %v503_v38 }
 0x29f   : > { %2674 = vperm.xlu0 %4769, %v2228_v19  }
 0x2a0   : > { %v7101_v40 = vpop.permute.xlu1 %2254 }
 0x2a1   : > { %v7104_v44 = vpop.permute.xlu0 %2279 }
 0x2a2   : > { %2649 = vperm.xlu1 %4770, %v2223_v35  }
 0x2a3   : > { %2684 = vperm.xlu0 %4769, %v2230_v50   ;;  %v593_v50 = vadd.f32 %v8997_v13, %v513_v11  ;;  %v5348_v11 = vld [vmem:[%s8735_s1 + $0x18] sm:$0xff] }
 0x2a4   : > { %v7108_v25 = vpop.permute.xlu1 %2264 }
 0x2a5   : > { %v7111_v41 = vpop.permute.xlu0 %2289  ;;  %v4604_v56 = vmul.f32 -1.442695, %v593_v50 }
 0x2a6   : > { %2659 = vperm.xlu1 %4770, %v2225_v49   ;;  %v4584_v49 = vmul.f32 -1.442695, %v573_v48 }
 0x2a7   : > { %2694 = vperm.xlu0 %4769, %v2232_v2   ;;  %v492_v2 = vmul.f32 %v5344_v59, %v7197_v15  ;;  %v7224_v59 = vmul.f32 0.00390625, %v9005_v0  ;;  %v7239_v0 = vld [vmem:[%s5668_s5 + $0xd8] sm:$0xff]  ;;  %v9010_v15 = vld [vmem:[#allocation30_spill] sm:$0xff] }
 0x2a8   : > { %v7117_v12 = vpop.permute.xlu1 %2274  ;;  %4853 = vpow2.f32 %v4584_v49  ;;  %v2444_v49 = vmul.f32 %v7239_v0, %v7101_v40 }
 0x2a9   : > { %v7120_v61 = vpop.permute.xlu0 %2299  ;;  %9006 = vst [vmem:[#allocation56_spill] sm:$0xff] %v7224_v59  ;;  %v572_v47 = vadd.f32 %v9007_v30, %v492_v2 }
 0x2aa   : > { %2669 = vperm.xlu1 %4770, %v2227_v52   ;;  %v9002_v52 = vld [vmem:[#allocation10_spill] sm:$0xff] }
 0x2ab   : > { %2704 = vperm.xlu0 %4769, %v2234_v20   ;;  %v7209_v20 = vmul.f32 0.00390625, %v9002_v52 }
 0x2ac   : > { %v7129_v17 = vpop.permute.xlu1 %2284 }
 0x2ad   : > { %v7132_v23 = vpop.permute.xlu0 %2309  ;;  %9003 = vst [vmem:[#allocation53_spill] sm:$0xff] %v7209_v20 }
 0x2ae   : > { %2679 = vperm.xlu1 %4770, %v2229_v5   ;;  %v4594_v5 = vmul.f32 -1.442695, %v583_v42  ;;  %v495_v42 = vmul.f32 %v5348_v11, %v7209_v20  ;;  %v9009_v11 = vld [vmem:[#allocation26_spill] sm:$0xff] }
 0x2af   : > { %2714 = vperm.xlu0 %4769, %v2236_v6  }
 0x2b0   : > { %v7136_v36 = vpop.permute.xlu1 %2294  ;;  %4855 = vpow2.f32 %v4594_v5  ;;  %v5351_v5 = vld [vmem:[%s8735_s1 + $0x28] sm:$0xff]  ;;  %v575_v1 = vadd.f32 %v9009_v11, %v495_v42 }
 0x2b1   : > { %v7138_v24 = vpop.permute.xlu0 %2319  ;;  %4857 = vpow2.f32 %v4604_v56  ;;  %v7257_v56 = vld [vmem:[%s5668_s5 + $0xf8] sm:$0xff] }
 0x2b2   : > { %2689 = vperm.xlu1 %4770, %v2231_v14   ;;  %v7214_v14 = vld [vmem:[%s5668_s5 + $0xa0] sm:$0xff] }
 0x2b3   : > { %v2437_v4 = vmul.f32 %v7214_v14, %v7082_v9 }
 0x2b4   : > { %v7141_v26 = vpop.permute.xlu1 %2304 }
 0x2b5   : > { %v7143_v8 = vpop.permute.xlu0 %2329 }
 0x2b6   : > { %2699 = vperm.xlu1 %4770, %v2233_v53   ;;  %v7219_v53 = vld [vmem:[%s5668_s5 + $0xa8] sm:$0xff] }
 0x2b8   : > { %v7146_v27 = vpop.permute.xlu1 %2314 }
 0x2b9   : > { %v7148_v45 = vpop.permute.xlu0 %2339 }
 0x2ba   : > { %2709 = vperm.xlu1 %4770, %v2235_v58   ;;  %v2438_v58 = vmul.f32 %v7219_v53, %v7082_v9  ;;  %v7234_v9 = vld [vmem:[%s5668_s5 + $0xd0] sm:$0xff] }
 0x2bb   : > { %v2443_v50 = vmul.f32 %v7234_v9, %v7101_v40 }
 0x2bc   : > { %v7150_v51 = vpop.permute.xlu1 %2324 }
 0x2bd   : > { %v7152_v18 = vpop.permute.xlu0 %2349 }
 0x2be   : > { %8981 = vst [vmem:[#allocation60_spill] sm:$0xff] %v7152_v18 }
 0x2c0   : > { %v7154_v39 = vpop.permute.xlu1 %2334 }
 0x2c1   : > { %v7156_v34 = vpop.permute.xlu0 %2359 }
 0x2c2   : > { %8982 = vst [vmem:[#allocation61_spill] sm:$0xff] %v7156_v34  ;;  %v7350_v34 = vld [vmem:[%s5668_s5 + $0x100] sm:$0xff] }
 0x2c4   : > { %v7158_v21 = vpop.permute.xlu1 %2344 }
 0x2c5   : > { %v7160_v54 = vpop.permute.xlu0 %2369 }
 0x2c6   : > { %8983 = vst [vmem:[#allocation40_spill] sm:$0xff] %v7160_v54 }
 0x2c8   : > { %v7162_v29 = vpop.permute.xlu1 %2354 }
 0x2c9   : > { %v7164_v7 = vpop.permute.xlu0 %2379 }
 0x2ca   : > { %8984 = vst [vmem:[#allocation34_spill] sm:$0xff] %v7164_v7 }
 0x2cc   : > { %v7166_v3 = vpop.permute.xlu1 %2364 }
 0x2cd   : > { %v7168_v28 = vpop.permute.xlu0 %2389 }
 0x2ce   : > { %8985 = vst [vmem:[#allocation42_spill] sm:$0xff] %v7168_v28  ;;  %v7324_v28 = vld [vmem:[%s5668_s5 + $0xe0] sm:$0xff] }
 0x2d0   : > { %v7170_v31 = vpop.permute.xlu1 %2374 }
 0x2d1   : > { %v7172_v62 = vpop.permute.xlu0 %2399 }
 0x2d2   : > { %8986 = vst [vmem:[#allocation36_spill] sm:$0xff] %v7172_v62 }
 0x2d4   : > { %v7174_v43 = vpop.permute.xlu1 %2384 }
 0x2d5   : > { %8987 = vst [vmem:[#allocation41_spill] sm:$0xff] %v7174_v43  ;;  %v7179_v46 = vpop.permute.xlu0 %2409 }
 0x2d6   : > { %8990 = vst [vmem:[#allocation45_spill] sm:$0xff] %v7179_v46 }
 0x2d8   : > { %v7187_v32 = vpop.permute.xlu1 %2394 }
 0x2d9   : > { %8995 = vst [vmem:[#allocation47_spill] sm:$0xff] %v7187_v32  ;;  %v7191_v33 = vpop.permute.xlu0 %2419  ;;  %v7377_v32 = vld [vmem:[%s5668_s5 + $0x238] sm:$0xff] }
 0x2da   : > { %8996 = vst [vmem:[#allocation49_spill] sm:$0xff] %v7191_v33  ;;  %9022 = vst [vmem:[#allocation79_spill] sm:$0xff] %v7377_v32 }
 0x2dc   : > { %v7202_v19 = vpop.permute.xlu1 %2404 }
 0x2dd   : > { %9000 = vst [vmem:[#allocation50_spill] sm:$0xff] %v7202_v19  ;;  %v7204_v35 = vpop.permute.xlu0 %2429 }
 0x2de   : > { %9001 = vst [vmem:[#allocation52_spill] sm:$0xff] %v7204_v35 }
 0x2e0   : > { %v7211_v6 = vpop.permute.xlu1 %2414 }
 0x2e1   : > { %9004 = vst [vmem:[#allocation55_spill] sm:$0xff] %v7211_v6 }
 0x2e2   : > { %v2520_v38 = vpop.permute.xlu0 %2519 }
 0x2e3   : > { %v2717_v48 = vadd.f32 %v2520_v38, %v2437_v4  ;;  %v2718_v16 = vadd.f32 %v2520_v38, %v2438_v58  ;;  %v497_v58 = vmul.f32 %v5351_v5, %v7224_v59  ;;  %v4583_v38 = vmul.f32 -1.442695, %v572_v47 }
 0x2e4   : > { %v7231_v52 = vpop.permute.xlu1 %2424  ;;  %v2448_v47 = vmul.f32 %v7257_v56, %v7108_v25 }
 0x2e5   : > { %9008 = vst [vmem:[#allocation57_spill] sm:$0xff] %v7231_v52  ;;  %v4623_v2 = vmul.f32 -1.442695, %v2717_v48  ;;  %v4624_v4 = vmul.f32 -1.442695, %v2718_v16  ;;  %v577_v30 = vadd.f32 %v9010_v15, %v497_v58  ;;  %v7252_v48 = vld [vmem:[%s5668_s5 + $0xf0] sm:$0xff] }
 0x2e6   : > { %v2535_v55 = vpop.permute.xlu0 %2534  ;;  %v2447_v16 = vmul.f32 %v7252_v48, %v7108_v25  ;;  %v7262_v58 = vld [vmem:[%s5668_s5 + $0xb0] sm:$0xff]  ;;  %v7267_v15 = vld [vmem:[%s5668_s5 + $0xb8] sm:$0xff] }
 0x2e7   : > { %4859 = vpow2.f32 %v4623_v2  ;;  %v2723_v60 = vadd.f32 %v2535_v55, %v2443_v50  ;;  %v2724_v20 = vadd.f32 %v2535_v55, %v2444_v49  ;;  %v4586_v50 = vmul.f32 -1.442695, %v575_v1 }
 0x2e8   : > { %4861 = vpow2.f32 %v4624_v4  ;;  %v7249_v40 = vpop.permute.xlu1 %2434  ;;  %v4588_v5 = vmul.f32 -1.442695, %v577_v30  ;;  %v2439_v59 = vmul.f32 %v7262_v58, %v7078_v63  ;;  %v2440_v25 = vmul.f32 %v7267_v15, %v7078_v63 }
 0x2e9   : > { %9011 = vst [vmem:[#allocation11_spill] sm:$0xff] %v7249_v40  ;;  %v4629_v42 = vmul.f32 -1.442695, %v2723_v60  ;;  %v4630_v55 = vmul.f32 -1.442695, %v2724_v20  ;;  %4863 = vpow2.f32 %v4583_v38  ;;  %v7271_v60 = vpop.eup %4853  ;;  %v7274_v20 = vld [vmem:[%s5668_s5 + $0x110] sm:$0xff] }
 0x2ea   : > { %v2545_v49 = vpop.permute.xlu0 %2544  ;;  %9012 = vst [vmem:[#allocation18_spill] sm:$0xff] %v7271_v60  ;;  %v2451_v1 = vmul.f32 %v7274_v20, %v7117_v12  ;;  %v7279_v38 = vld [vmem:[%s5668_s5 + $0x118] sm:$0xff] }
 0x2eb   : > { %4865 = vpow2.f32 %v4629_v42  ;;  %v2727_v2 = vadd.f32 %v2545_v49, %v2447_v16  ;;  %v2728_v4 = vadd.f32 %v2545_v49, %v2448_v47  ;;  %v2452_v30 = vmul.f32 %v7279_v38, %v7117_v12  ;;  %v7283_v49 = vpop.eup %4855  ;;  %v7288_v12 = vld [vmem:[%s5668_s5 + $0x130] sm:$0xff] }
 0x2ec   : > { %4867 = vpow2.f32 %v4630_v55  ;;  %9013 = vst [vmem:[#allocation38_spill] sm:$0xff] %v7283_v49  ;;  %v7285_v35 = vpop.eup %4857  ;;  %v7300_v49 = vld [vmem:[%s5668_s5 + $0xc0] sm:$0xff] }
 0x2ed   : > { %v4633_v16 = vmul.f32 -1.442695, %v2727_v2  ;;  %v4634_v47 = vmul.f32 -1.442695, %v2728_v4  ;;  %v2525_v42 = vpop.permute.xlu1 %2524  ;;  %4869 = vpow2.f32 %v4586_v50  ;;  %9014 = vst [vmem:[#allocation9_spill] sm:$0xff] %v7285_v35  ;;  %v2455_v2 = vmul.f32 %v7288_v12, %v7129_v17  ;;  %v7293_v4 = vld [vmem:[%s5668_s5 + $0x138] sm:$0xff] }
 0x2ee   : > { %v2555_v63 = vpop.permute.xlu0 %2554  ;;  %v2719_v55 = vadd.f32 %v2525_v42, %v2439_v59  ;;  %v2720_v60 = vadd.f32 %v2525_v42, %v2440_v25  ;;  %v2456_v59 = vmul.f32 %v7293_v4, %v7129_v17  ;;  %v2441_v17 = vmul.f32 %v7300_v49, %v7089_v37 }
 0x2ef   : > { %4871 = vpow2.f32 %v4633_v16  ;;  %v2731_v11 = vadd.f32 %v2555_v63, %v2451_v1  ;;  %v2732_v13 = vadd.f32 %v2555_v63, %v2452_v30 }
 0x2f0   : > { %4873 = vpow2.f32 %v4634_v47  ;;  %v4625_v33 = vmul.f32 -1.442695, %v2719_v55  ;;  %v4626_v16 = vmul.f32 -1.442695, %v2720_v60 }
 0x2f1   : > { %v4860_v46 = vpop.eup %4859  ;;  %4875 = vpow2.f32 %v4588_v5  ;;  %v4637_v50 = vmul.f32 -1.442695, %v2731_v11  ;;  %v4638_v30 = vmul.f32 -1.442695, %v2732_v13  ;;  %v2530_v55 = vpop.permute.xlu1 %2529 }
 0x2f2   : > { %v4862_v25 = vpop.eup %4861  ;;  %v3037_v1 = vadd.f32 1.0, %v4860_v46  ;;  %4877 = vpow2.f32 %v4625_v33  ;;  %v2565_v47 = vpop.permute.xlu0 %2564  ;;  %v2721_v60 = vadd.f32 %v2530_v55, %v2441_v17 }
 0x2f3   : > { %v3038_v42 = vadd.f32 1.0, %v4862_v25  ;;  %4879 = vpow2.f32 %v4637_v50  ;;  %v2735_v5 = vadd.f32 %v2565_v47, %v2455_v2  ;;  %v2736_v63 = vadd.f32 %v2565_v47, %v2456_v59  ;;  %v7297_v35 = vpop.eup %4863  ;;  %v7305_v50 = vld [vmem:[%s5668_s5 + $0xc8] sm:$0xff] }
 0x2f4   : > { %9015 = vst [vmem:[#allocation10_spill] sm:$0xff] %v7297_v35  ;;  %4881 = vrcp.f32 %v3037_v1  ;;  %v2442_v2 = vmul.f32 %v7305_v50, %v7089_v37  ;;  %v7312_v1 = vld [vmem:[%s5668_s5 + $0x1f0] sm:$0xff]  ;;  %v4627_v37 = vmul.f32 -1.442695, %v2721_v60 }
 0x2f5   : > { %v4866_v46 = vpop.eup %4865  ;;  %4883 = vrcp.f32 %v3038_v42  ;;  %v4641_v11 = vmul.f32 -1.442695, %v2735_v5  ;;  %v4642_v25 = vmul.f32 -1.442695, %v2736_v63  ;;  %v2459_v42 = vmul.f32 %v7312_v1, %v7136_v36  ;;  %v7319_v63 = vld [vmem:[%s5668_s5 + $0x1f8] sm:$0xff]  ;;  %v2540_v40 = vpop.permute.xlu1 %2539 }
 0x2f6   : > { %v4868_v33 = vpop.eup %4867  ;;  %v3043_v13 = vadd.f32 1.0, %v4866_v46  ;;  %4885 = vpow2.f32 %v4638_v30  ;;  %v2575_v47 = vpop.permute.xlu0 %2574  ;;  %v2722_v5 = vadd.f32 %v2530_v55, %v2442_v2  ;;  %v2445_v55 = vmul.f32 %v7324_v28, %v7085_v10 }
 0x2f7   : > { %v3044_v59 = vadd.f32 1.0, %v4868_v33  ;;  %4887 = vpow2.f32 %v4626_v16  ;;  %v7309_v35 = vpop.eup %4869  ;;  %v2739_v16 = vadd.f32 %v2575_v47, %v2459_v42 }
 0x2f8   : > { %9016 = vst [vmem:[#allocation12_spill] sm:$0xff] %v7309_v35  ;;  %4889 = vrcp.f32 %v3043_v13  ;;  %v2460_v35 = vmul.f32 %v7319_v63, %v7136_v36  ;;  %v4628_v2 = vmul.f32 -1.442695, %v2722_v5 }
 0x2f9   : > { %v4872_v30 = vpop.eup %4871  ;;  %4891 = vrcp.f32 %v3044_v59  ;;  %v2550_v54 = vpop.permute.xlu1 %2549 }
 0x2fa   : > { %v4874_v17 = vpop.eup %4873  ;;  %v3047_v46 = vadd.f32 1.0, %v4872_v30  ;;  %4893 = vpow2.f32 %v4641_v11  ;;  %v2740_v59 = vadd.f32 %v2575_v47, %v2460_v35  ;;  %v2725_v30 = vadd.f32 %v2540_v40, %v2445_v55  ;;  %v7340_v47 = vld [vmem:[%s5668_s5 + $0x218] sm:$0xff] }
 0x2fb   : > { %v7316_v33 = vpop.eup %4875  ;;  %v3048_v62 = vadd.f32 1.0, %v4874_v17  ;;  %4895 = vpow2.f32 %v4642_v25  ;;  %v4645_v25 = vmul.f32 -1.442695, %v2739_v16  ;;  %v2464_v5 = vmul.f32 %v7340_v47, %v7141_v26 }
 0x2fc   : > { %9017 = vst [vmem:[#allocation78_spill] sm:$0xff] %v7316_v33  ;;  %v4878_v13 = vpop.eup %4877  ;;  %4897 = vrcp.f32 %v3047_v46  ;;  %v7329_v33 = vld [vmem:[%s5668_s5 + $0xe8] sm:$0xff]  ;;  %v2585_v46 = vpop.permute.xlu0 %2584  ;;  %v4646_v55 = vmul.f32 -1.442695, %v2740_v59 }
 0x2fd   : > { %v4880_v11 = vpop.eup %4879  ;;  %4899 = vrcp.f32 %v3048_v62  ;;  %v3039_v60 = vadd.f32 1.0, %v4878_v13  ;;  %v2446_v52 = vmul.f32 %v7329_v33, %v7085_v10  ;;  %v7335_v13 = vld [vmem:[%s5668_s5 + $0x210] sm:$0xff] }
 0x2fe   : > { %v4882_v42 = vpop.eup %4881  ;;  %v3051_v36 = vadd.f32 1.0, %v4880_v11  ;;  %4901 = vpow2.f32 %v4627_v37  ;;  %v2463_v35 = vmul.f32 %v7335_v13, %v7141_v26  ;;  %v2449_v26 = vmul.f32 %v7350_v34, %v7097_v22 }
 0x2ff   : > { %v4884_v17 = vpop.eup %4883  ;;  %4903 = vrcp.f32 %v3039_v60  ;;  %v3277_v62 = vmul.f32 %v7214_v14, %v4882_v42  ;;  %v2726_v14 = vadd.f32 %v2540_v40, %v2446_v52  ;;  %v4631_v42 = vmul.f32 -1.442695, %v2725_v30  ;;  %v7357_v30 = vld [vmem:[%s5668_s5 + $0x108] sm:$0xff] }
 0x300   : > { %v4886_v7 = vpop.eup %4885  ;;  %4905 = vrcp.f32 %v3051_v36  ;;  %v3278_v37 = vmul.f32 %v7219_v53, %v4884_v17  ;;  %v2743_v6 = vadd.f32 %v2585_v46, %v2463_v35  ;;  %v2744_v52 = vadd.f32 %v2585_v46, %v2464_v5  ;;  %v9018_v46 = vld [vmem:[#allocation8_spill] sm:$0xff] }
 0x301   : > { %v4888_v10 = vpop.eup %4887  ;;  %v3052_v16 = vadd.f32 1.0, %v4886_v7  ;;  %4907 = vpow2.f32 %v4628_v2  ;;  %v4632_v59 = vmul.f32 -1.442695, %v2726_v14  ;;  %v2729_v36 = vadd.f32 %v2550_v54, %v2449_v26 }
 0x302   : > { %v7345_v11 = vpop.eup %4889  ;;  %v3040_v60 = vadd.f32 1.0, %v4888_v10  ;;  %4909 = vpow2.f32 %v4645_v25  ;;  %v3357_v7 = vadd.f32 %v3278_v37, %v3277_v62  ;;  %v2450_v17 = vmul.f32 %v7357_v30, %v7097_v22  ;;  %v2595_v37 = vpop.permute.xlu0 %2594 }
 0x303   : > { %v7347_v19 = vpop.eup %4891  ;;  %4911 = vrcp.f32 %v3052_v16  ;;  %v4649_v62 = vmul.f32 -1.442695, %v2743_v6  ;;  %v7364_v5 = vmul.f32 0.00390625, %v9018_v46  ;;  %v7367_v16 = vld [vmem:[%s5668_s5 + $0x230] sm:$0xff]  ;;  %v4650_v22 = vmul.f32 -1.442695, %v2744_v52 }
 0x304   : > { %v4894_v53 = vpop.eup %4893  ;;  %4913 = vrcp.f32 %v3040_v60  ;;  %3358 = vadd.xlane.f32.xlu1 %v3357_v7  ;;  %v2730_v60 = vadd.f32 %v2550_v54, %v2450_v17  ;;  %v4635_v26 = vmul.f32 -1.442695, %v2729_v36  ;;  %v7386_v52 = vld [vmem:[%s5668_s5 + $0x120] sm:$0xff] }
 0x305   : > { %v4896_v40 = vpop.eup %4895  ;;  %v3055_v2 = vadd.f32 1.0, %v4894_v53  ;;  %4915 = vpow2.f32 %v4646_v55  ;;  %9019 = vst [vmem:[#allocation8_spill] sm:$0xff] %v7364_v5  ;;  %v2467_v55 = vmul.f32 %v7367_v16, %v7146_v27  ;;  %v7383_v54 = vmul.f32 %v7125_v57, %v7364_v5 }
 0x306   : > { %v7354_v25 = vpop.eup %4897  ;;  %v3056_v35 = vadd.f32 1.0, %v4896_v40  ;;  %4917 = vpow2.f32 %v4631_v42  ;;  %v9020_v40 = vld [vmem:[#allocation13_spill] sm:$0xff] }
 0x307   : > { %v7361_v10 = vpop.eup %4899  ;;  %4919 = vrcp.f32 %v3055_v2  ;;  %v2747_v7 = vadd.f32 %v2595_v37, %v2467_v55  ;;  %v7374_v46 = vmul.f32 0.00390625, %v9020_v40  ;;  %v2468_v2 = vmul.f32 %v7377_v32, %v7146_v27  ;;  %9023 = vst [vmem:[#allocation80_spill] sm:$0xff] %v7383_v54  ;;  %v5373_v54 = vld [vmem:[%s8735_s1 + $0x20] sm:$0xff] }
 0x308   : > { %v4902_v14 = vpop.eup %4901  ;;  %4921 = vrcp.f32 %v3056_v35  ;;  %v2560_v35 = vpop.permute.xlu1 %2559  ;;  %v4636_v55 = vmul.f32 -1.442695, %v2730_v60  ;;  %v9025_v60 = vld [vmem:[#allocation14_spill] sm:$0xff] }
 0x309   : > { %v4904_v42 = vpop.eup %4903  ;;  %v3041_v6 = vadd.f32 1.0, %v4902_v14  ;;  %4923 = vpow2.f32 %v4632_v59  ;;  %9021 = vst [vmem:[#allocation13_spill] sm:$0xff] %v7374_v46  ;;  %v2453_v59 = vmul.f32 %v7386_v52, %v7104_v44  ;;  %v2748_v27 = vadd.f32 %v2595_v37, %v2468_v2 }
 0x30a   : > { %v7371_v53 = vpop.eup %4905  ;;  %4925 = vpow2.f32 %v4649_v62  ;;  %v4653_v40 = vmul.f32 -1.442695, %v2747_v7  ;;  %v7396_v43 = vmul.f32 %v5373_v54, %v7374_v46  ;;  %v3279_v37 = vmul.f32 %v7262_v58, %v4904_v42  ;;  %v7408_v7 = vld [vmem:[%s5668_s5 + $0x1e0] sm:$0xff]  ;;  %v2605_v58 = vpop.permute.xlu0 %2604 }
 0x30b   : > { %v4908_v18 = vpop.eup %4907  ;;  %4927 = vrcp.f32 %v3041_v6  ;;  %v2733_v57 = vadd.f32 %v2560_v35, %v2453_v59  ;;  %v7399_v6 = vld [vmem:[%s5668_s5 + $0x128] sm:$0xff]  ;;  %9027 = vst [vmem:[#allocation82_spill] sm:$0xff] %v7408_v7  ;;  %v2457_v2 = vmul.f32 %v7408_v7, %v7111_v41 }
 0x30c   : > { %v4910_v36 = vpop.eup %4909  ;;  %v3042_v17 = vadd.f32 1.0, %v4908_v18  ;;  %4929 = vpow2.f32 %v4650_v22  ;;  %9024 = vst [vmem:[#allocation81_spill] sm:$0xff] %v7396_v43  ;;  %v2454_v18 = vmul.f32 %v7399_v6, %v7104_v44 }
 0x30d   : > { %v7390_v62 = vpop.eup %4911  ;;  %v3059_v14 = vadd.f32 1.0, %v4910_v36  ;;  %4931 = vpow2.f32 %v4635_v26  ;;  %v7405_v26 = vmul.f32 0.00390625, %v9025_v60  ;;  %v4654_v36 = vmul.f32 -1.442695, %v2748_v27  ;;  %v7416_v60 = vld [vmem:[%s5668_s5 + $0x250] sm:$0xff] }
 0x30e   : > { %v4914_v5 = vpop.eup %4913  ;;  %4933 = vrcp.f32 %v3042_v17  ;;  %v2734_v17 = vadd.f32 %v2560_v35, %v2454_v18  ;;  %9028 = vst [vmem:[#allocation83_spill] sm:$0xff] %v7416_v60  ;;  %v2471_v46 = vmul.f32 %v7416_v60, %v7150_v51  ;;  %v2570_v18 = vpop.permute.xlu1 %2569 }
 0x30f   : > { %v4916_v22 = vpop.eup %4915  ;;  %9026 = vst [vmem:[#allocation14_spill] sm:$0xff] %v7405_v26  ;;  %4935 = vrcp.f32 %v3059_v14  ;;  %v3280_v54 = vmul.f32 %v7267_v15, %v4914_v5  ;;  %v4639_v14 = vmul.f32 -1.442695, %v2733_v57  ;;  %v7423_v5 = vld [vmem:[%s5668_s5 + $0x1e8] sm:$0xff] }
 0x310   : > { %v4918_v59 = vpop.eup %4917  ;;  %v3060_v44 = vadd.f32 1.0, %v4916_v22  ;;  %4937 = vpow2.f32 %v4636_v55  ;;  %9029 = vst [vmem:[#allocation84_spill] sm:$0xff] %v7423_v5  ;;  %v2458_v35 = vmul.f32 %v7423_v5, %v7111_v41  ;;  %v7428_v55 = vld [vmem:[%s5668_s5 + $0x258] sm:$0xff]  ;;  %v7438_v57 = vld [vmem:[%s5668_s5 + $0x208] sm:$0xff]  ;;  %v2751_v60 = vadd.f32 %v2605_v58, %v2471_v46  ;;  %v7443_v5 = vld [vmem:[%s5668_s5 + $0x220] sm:$0xff] }
 0x311   : > { %v7413_v42 = vpop.eup %4919  ;;  %v3045_v43 = vadd.f32 1.0, %v4918_v59  ;;  %4939 = vpow2.f32 %v4653_v40  ;;  %9030 = vst [vmem:[#allocation85_spill] sm:$0xff] %v7428_v55  ;;  %v2472_v27 = vmul.f32 %v7428_v55, %v7150_v51  ;;  %v3360_v22 = vadd.f32 %v3280_v54, %v3279_v37  ;;  %v7433_v59 = vld [vmem:[%s5668_s5 + $0x200] sm:$0xff]  ;;  %9032 = vst [vmem:[#allocation87_spill] sm:$0xff] %v7438_v57  ;;  %v7450_v46 = vld [vmem:[%s5668_s5 + $0x228] sm:$0xff] }
 0x312   : > { %v7420_v15 = vpop.eup %4921  ;;  %4941 = vrcp.f32 %v3060_v44  ;;  %9031 = vst [vmem:[#allocation86_spill] sm:$0xff] %v7433_v59  ;;  %v2461_v40 = vmul.f32 %v7433_v59, %v7120_v61  ;;  %v2462_v41 = vmul.f32 %v7438_v57, %v7120_v61  ;;  %v4640_v55 = vmul.f32 -1.442695, %v2734_v17  ;;  %9033 = vst [vmem:[#allocation88_spill] sm:$0xff] %v7443_v5  ;;  %v7465_v57 = vld [vmem:[%s5668_s5 + $0x270] sm:$0xff] }
 0x313   : > { %v4924_v26 = vpop.eup %4923  ;;  %4943 = vrcp.f32 %v3045_v43  ;;  %v2752_v37 = vadd.f32 %v2605_v58, %v2472_v27  ;;  %3361 = vadd.xlane.f32.xlu0 %v3360_v22  ;;  %v7447_v59 = vmul.f32 %v7443_v5, %v7132_v23  ;;  %v2737_v61 = vadd.f32 %v2570_v18, %v2457_v2  ;;  %9034 = vst [vmem:[#allocation89_spill] sm:$0xff] %v7450_v46  ;;  %v2615_v22 = vpop.permute.xlu0 %2614 }
 0x314   : > { %v4926_v51 = vpop.eup %4925  ;;  %v3046_v44 = vadd.f32 1.0, %v4924_v26  ;;  %4945 = vpow2.f32 %v4654_v36  ;;  %v7454_v26 = vmul.f32 %v7450_v46, %v7132_v23  ;;  %v7457_v36 = vld [vmem:[%s5668_s5 + $0x240] sm:$0xff]  ;;  %v2738_v58 = vadd.f32 %v2570_v18, %v2458_v35  ;;  %v2580_v35 = vpop.permute.xlu1 %2579 }
 0x315   : > { %v4928_v54 = vpop.eup %4927  ;;  %v3063_v7 = vadd.f32 1.0, %v4926_v51  ;;  %4947 = vpow2.f32 %v4639_v14  ;;  %9035 = vst [vmem:[#allocation90_spill] sm:$0xff] %v7457_v36  ;;  %v7461_v17 = vmul.f32 %v7457_v36, %v7138_v24  ;;  %v4657_v2 = vmul.f32 -1.442695, %v2751_v60 }
 0x316   : > { %v4930_v43 = vpop.eup %4929  ;;  %4949 = vrcp.f32 %v3046_v44  ;;  %v3281_v51 = vmul.f32 %v7300_v49, %v4928_v54  ;;  %v2475_v23 = vmul.f32 %v7465_v57, %v7154_v39  ;;  %v4658_v36 = vmul.f32 -1.442695, %v2752_v37  ;;  %v7472_v44 = vld [vmem:[%s5668_s5 + $0x278] sm:$0xff] }
 0x317   : > { %v4932_v27 = vpop.eup %4931  ;;  %v3064_v14 = vadd.f32 1.0, %v4930_v43  ;;  %4951 = vrcp.f32 %v3063_v7  ;;  %9036 = vst [vmem:[#allocation91_spill] sm:$0xff] %v7472_v44  ;;  %v2476_v7 = vmul.f32 %v7472_v44, %v7154_v39  ;;  %v4643_v60 = vmul.f32 -1.442695, %v2737_v61 }
 0x318   : > { %v4934_v5 = vpop.eup %4933  ;;  %v3049_v46 = vadd.f32 1.0, %v4932_v27  ;;  %4953 = vpow2.f32 %v4640_v55  ;;  %v2755_v54 = vadd.f32 %v2615_v22, %v2475_v23  ;;  %v3283_v55 = vmul.f32 %v7234_v9, %v7345_v11  ;;  %v7484_v23 = vld [vmem:[%s5668_s5 + $0x330] sm:$0xff]  ;;  %v7489_v11 = vld [vmem:[%s5668_s5 + $0x338] sm:$0xff] }
 0x319   : > { %v7469_v32 = vpop.eup %4935  ;;  %4955 = vrcp.f32 %v3064_v14  ;;  %v3282_v49 = vmul.f32 %v7305_v50, %v4934_v5  ;;  %v3284_v37 = vmul.f32 %v7239_v0, %v7347_v19  ;;  %v4644_v39 = vmul.f32 -1.442695, %v2738_v58 }
 0x31a   : > { %v4938_v18 = vpop.eup %4937  ;;  %4957 = vrcp.f32 %v3049_v46  ;;  %v2756_v50 = vadd.f32 %v2615_v22, %v2476_v7  ;;  %v2741_v5 = vadd.f32 %v2580_v35, %v2461_v40  ;;  %v2479_v9 = vmul.f32 %v7484_v23, %v7158_v21 }
 0x31b   : > { %v4940_v43 = vpop.eup %4939  ;;  %v3050_v27 = vadd.f32 1.0, %v4938_v18  ;;  %4959 = vpow2.f32 %v4657_v2  ;;  %v3363_v14 = vadd.f32 %v3282_v49, %v3281_v51  ;;  %v2480_v19 = vmul.f32 %v7489_v11, %v7158_v21 }
 0x31c   : > { %v7481_v61 = vpop.eup %4941  ;;  %v3067_v44 = vadd.f32 1.0, %v4940_v43  ;;  %4961 = vpow2.f32 %v4658_v36  ;;  %v2742_v0 = vadd.f32 %v2580_v35, %v2462_v41  ;;  %v4661_v2 = vmul.f32 -1.442695, %v2755_v54  ;;  %v2625_v36 = vpop.permute.xlu0 %2624 }
 0x31d   : > { %v4944_v46 = vpop.eup %4943  ;;  %4963 = vrcp.f32 %v3050_v27  ;;  %3364 = vadd.xlane.f32.xlu0 %v3363_v14  ;;  %v3366_v22 = vadd.f32 %v3284_v37, %v3283_v55  ;;  %v3287_v40 = vmul.f32 %v7252_v48, %v7354_v25  ;;  %v3288_v18 = vmul.f32 %v7257_v56, %v7361_v10  ;;  %v2590_v48 = vpop.permute.xlu1 %2589 }
 0x31e   : > { %v4946_v58 = vpop.eup %4945  ;;  %4965 = vrcp.f32 %v3067_v44  ;;  %v3285_v49 = vmul.f32 %v7324_v28, %v4944_v46  ;;  %v4662_v41 = vmul.f32 -1.442695, %v2756_v50  ;;  %v4647_v35 = vmul.f32 -1.442695, %v2741_v5  ;;  %v7508_v5 = vld [vmem:[%s5668_s5 + $0x248] sm:$0xff]  ;;  %v7515_v46 = vld [vmem:[%s5668_s5 + $0x260] sm:$0xff] }
 0x31f   : > { %v4948_v51 = vpop.eup %4947  ;;  %v3068_v7 = vadd.f32 1.0, %v4946_v58  ;;  %4967 = vpow2.f32 %v4643_v60  ;;  %v2759_v54 = vadd.f32 %v2625_v36, %v2479_v9  ;;  %v2760_v55 = vadd.f32 %v2625_v36, %v2480_v19 }
 0x320   : > { %v4950_v21 = vpop.eup %4949  ;;  %v3053_v43 = vadd.f32 1.0, %v4948_v51  ;;  %4969 = vpow2.f32 %v4644_v39  ;;  %v4648_v60 = vmul.f32 -1.442695, %v2742_v0  ;;  %v3291_v56 = vmul.f32 %v7274_v20, %v7371_v53 }
 0x321   : > { %v7498_v44 = vpop.eup %4951  ;;  %4971 = vrcp.f32 %v3068_v7  ;;  %3367 = vadd.xlane.f32.xlu0 %v3366_v22  ;;  %v3286_v25 = vmul.f32 %v7329_v33, %v4950_v21  ;;  %v3292_v10 = vmul.f32 %v7279_v38, %v7390_v62  ;;  %v3372_v14 = vadd.f32 %v3288_v18, %v3287_v40  ;;  %v2635_v22 = vpop.permute.xlu0 %2634  ;;  %v7531_v7 = vld [vmem:[%s5668_s5 + $0x268] sm:$0xff] }
 0x322   : > { %v4954_v28 = vpop.eup %4953  ;;  %4973 = vrcp.f32 %v3053_v43  ;;  %v7512_v33 = vmul.f32 %v7508_v5, %v7138_v24  ;;  %v7519_v20 = vmul.f32 %v7515_v46, %v7143_v8  ;;  %v2745_v38 = vadd.f32 %v2590_v48, %v7447_v59 }
 0x323   : > { %v7505_v37 = vpop.eup %4955  ;;  %v3054_v27 = vadd.f32 1.0, %v4954_v28  ;;  %4975 = vpow2.f32 %v4661_v2  ;;  %v3369_v39 = vadd.f32 %v3286_v25, %v3285_v49  ;;  %v4665_v62 = vmul.f32 -1.442695, %v2759_v54  ;;  %v7538_v49 = vld [vmem:[%s5668_s5 + $0x350] sm:$0xff] }
 0x324   : > { %v4958_v50 = vpop.eup %4957  ;;  %4977 = vpow2.f32 %v4662_v41  ;;  %v4666_v9 = vmul.f32 -1.442695, %v2760_v55  ;;  %v2746_v19 = vadd.f32 %v2590_v48, %v7454_v26  ;;  %v3378_v2 = vadd.f32 %v3292_v10, %v3291_v56  ;;  %v2600_v41 = vpop.permute.xlu1 %2599 }
 0x325   : > { %v4960_v53 = vpop.eup %4959  ;;  %4979 = vrcp.f32 %v3054_v27  ;;  %3370 = vadd.xlane.f32.xlu1 %v3369_v39  ;;  %3373 = vadd.xlane.f32.xlu0 %v3372_v14  ;;  %v3289_v58 = vmul.f32 %v7350_v34, %v4958_v50  ;;  %v3295_v40 = vmul.f32 %v7288_v12, %v7413_v42  ;;  %v3296_v26 = vmul.f32 %v7293_v4, %v7420_v15  ;;  %v7544_v42 = vld [vmem:[%s5668_s5 + $0x320] sm:$0xff]  ;;  %v7551_v15 = vld [vmem:[%s5668_s5 + $0x358] sm:$0xff]  ;;  %v7563_v14 = vld [vmem:[%s5668_s5 + $0x328] sm:$0xff] }
 0x326   : > { %v4962_v24 = vpop.eup %4961  ;;  %v3071_v0 = vadd.f32 1.0, %v4960_v53  ;;  %4981 = vpow2.f32 %v4647_v35  ;;  %v7535_v34 = vmul.f32 %v7531_v7, %v7143_v8  ;;  %v2483_v18 = vmul.f32 %v7538_v49, %v7162_v29 }
 0x327   : > { %v4964_v36 = vpop.eup %4963  ;;  %v3072_v59 = vadd.f32 1.0, %v4962_v24  ;;  %4983 = vpow2.f32 %v4648_v60  ;;  %v7548_v4 = vmul.f32 %v7544_v42, %v7148_v45  ;;  %v2484_v8 = vmul.f32 %v7551_v15, %v7162_v29 }
 0x328   : > { %v7528_v51 = vpop.eup %4965  ;;  %4985 = vrcp.f32 %v3071_v0  ;;  %v3290_v21 = vmul.f32 %v7357_v30, %v4964_v36  ;;  %v4651_v43 = vmul.f32 -1.442695, %v2745_v38  ;;  %v2763_v30 = vadd.f32 %v2635_v22, %v2483_v18  ;;  %v7570_v38 = vld [vmem:[%s5668_s5 + $0x370] sm:$0xff] }
 0x329   : > { %v4968_v12 = vpop.eup %4967  ;;  %4987 = vrcp.f32 %v3072_v59  ;;  %3379 = vadd.xlane.f32.xlu0 %v3378_v2  ;;  %v4652_v28 = vmul.f32 -1.442695, %v2746_v19  ;;  %v3384_v60 = vadd.f32 %v3296_v26, %v3295_v40  ;;  %v2749_v29 = vadd.f32 %v2600_v41, %v7461_v17  ;;  %v2645_v19 = vpop.permute.xlu0 %2644 }
 0x32a   : > { %v4970_v35 = vpop.eup %4969  ;;  %v3057_v54 = vadd.f32 1.0, %v4968_v12  ;;  %4989 = vpow2.f32 %v4665_v62  ;;  %v3375_v55 = vadd.f32 %v3290_v21, %v3289_v58  ;;  %v3299_v10 = vmul.f32 %v7312_v1, %v7469_v32  ;;  %v2610_v2 = vpop.permute.xlu1 %2609 }
 0x32b   : > { %v7555_v48 = vpop.eup %4971  ;;  %v3058_v25 = vadd.f32 1.0, %v4970_v35  ;;  %4991 = vpow2.f32 %v4666_v9  ;;  %v3300_v27 = vmul.f32 %v7319_v63, %v7481_v61  ;;  %v7567_v50 = vmul.f32 %v7563_v14, %v7148_v45  ;;  %v7588_v35 = vld [vmem:[%s5668_s5 + $0x390] sm:$0xff] }
 0x32c   : > { %v4974_v56 = vpop.eup %4973  ;;  %4993 = vrcp.f32 %v3057_v54  ;;  %3376 = vadd.xlane.f32.xlu1 %v3375_v55  ;;  %v2487_v53 = vmul.f32 %v7570_v38, %v7166_v3  ;;  %v2764_v17 = vadd.f32 %v2635_v22, %v2484_v8  ;;  %v4669_v1 = vmul.f32 -1.442695, %v2763_v30 }
 0x32d   : > { %v4976_v39 = vpop.eup %4975  ;;  %4995 = vrcp.f32 %v3058_v25  ;;  %3385 = vadd.xlane.f32.xlu0 %v3384_v60  ;;  %v3293_v63 = vmul.f32 %v7386_v52, %v4974_v56  ;;  %v2750_v45 = vadd.f32 %v2600_v41, %v7512_v33  ;;  %v3390_v24 = vadd.f32 %v3300_v27, %v3299_v10  ;;  %v9037_v10 = vld [vmem:[#allocation79_spill] sm:$0xff] }
 0x32e   : > { %v4978_v62 = vpop.eup %4977  ;;  %v3075_v32 = vadd.f32 1.0, %v4976_v39  ;;  %4997 = vpow2.f32 %v4651_v43  ;;  %v4655_v58 = vmul.f32 -1.442695, %v2749_v29  ;;  %v3303_v59 = vmul.f32 %v7335_v13, %v7498_v44  ;;  %v2655_v29 = vpop.permute.xlu0 %2654 }
 0x32f   : > { %v4980_v61 = vpop.eup %4979  ;;  %v3076_v9 = vadd.f32 1.0, %v4978_v62  ;;  %4999 = vpow2.f32 %v4652_v28  ;;  %v4670_v40 = vmul.f32 -1.442695, %v2764_v17  ;;  %v3304_v33 = vmul.f32 %v7340_v47, %v7505_v37  ;;  %v7593_v37 = vld [vmem:[%s5668_s5 + $0x398] sm:$0xff]  ;;  %v2620_v62 = vpop.permute.xlu1 %2619 }
 0x330   : > { %v4982_v0 = vpop.eup %4981  ;;  %5001 = vrcp.f32 %v3075_v32  ;;  %v3294_v36 = vmul.f32 %v7399_v6, %v4980_v61  ;;  %v2767_v21 = vadd.f32 %v2645_v19, %v2487_v53  ;;  %v7582_v6 = vld [vmem:[%s5668_s5 + $0x378] sm:$0xff]  ;;  %v2753_v44 = vadd.f32 %v2610_v2, %v7519_v20  ;;  %v9039_v32 = vld [vmem:[#allocation84_spill] sm:$0xff]  ;;  %v9040_v61 = vld [vmem:[#allocation83_spill] sm:$0xff] }
 0x331   : > { %v4984_v22 = vpop.eup %4983  ;;  %5003 = vrcp.f32 %v3076_v9  ;;  %v3061_v52 = vadd.f32 1.0, %v4982_v0  ;;  %3391 = vadd.xlane.f32.xlu0 %v3390_v24  ;;  %v2488_v13 = vmul.f32 %v7582_v6, %v7166_v3  ;;  %v3396_v43 = vadd.f32 %v3304_v33, %v3303_v59 }
 0x332   : > { %v4986_v26 = vpop.eup %4985  ;;  %v3062_v18 = vadd.f32 1.0, %v4984_v22  ;;  %5005 = vpow2.f32 %v4669_v1  ;;  %v3381_v12 = vadd.f32 %v3294_v36, %v3293_v63  ;;  %v2491_v47 = vmul.f32 %v7588_v35, %v7170_v31 }
 0x333   : > { %v4988_v8 = vpop.eup %4987  ;;  %5007 = vrcp.f32 %v3061_v52  ;;  %v2492_v54 = vmul.f32 %v7593_v37, %v7170_v31  ;;  %v3307_v3 = vmul.f32 %v7367_v16, %v7528_v51  ;;  %v4656_v20 = vmul.f32 -1.442695, %v2750_v45  ;;  %v9038_v16 = vld [vmem:[#allocation82_spill] sm:$0xff] }
 0x334   : > { %v4990_v41 = vpop.eup %4989  ;;  %5009 = vrcp.f32 %v3062_v18  ;;  %3382 = vadd.xlane.f32.xlu1 %v3381_v12  ;;  %v2768_v25 = vadd.f32 %v2645_v19, %v2488_v13  ;;  %v4673_v56 = vmul.f32 -1.442695, %v2767_v21  ;;  %v3308_v27 = vmul.f32 %v9037_v10, %v7555_v48  ;;  %v9042_v21 = vld [vmem:[#allocation91_spill] sm:$0xff] }
 0x335   : > { %v4992_v30 = vpop.eup %4991  ;;  %v3079_v55 = vadd.f32 1.0, %v4990_v41  ;;  %5011 = vpow2.f32 %v4670_v40  ;;  %3397 = vadd.xlane.f32.xlu0 %v3396_v43  ;;  %v2754_v39 = vadd.f32 %v2610_v2, %v7535_v34  ;;  %v4659_v53 = vmul.f32 -1.442695, %v2753_v44  ;;  %v9041_v2 = vld [vmem:[#allocation85_spill] sm:$0xff]  ;;  %v9043_v44 = vld [vmem:[#allocation15_spill] sm:$0xff] }
 0x336   : > { %v4994_v28 = vpop.eup %4993  ;;  %v3080_v60 = vadd.f32 1.0, %v4992_v30  ;;  %5013 = vpow2.f32 %v4655_v58  ;;  %v3402_v63 = vadd.f32 %v3308_v27, %v3307_v3  ;;  %v3311_v9 = vmul.f32 %v9040_v61, %v4986_v26  ;;  %v7613_v3 = vld [vmem:[%s5668_s5 + $0x3b0] sm:$0xff] }
 0x337   : > { %v4996_v31 = vpop.eup %4995  ;;  %5015 = vrcp.f32 %v3079_v55  ;;  %v3297_v51 = vmul.f32 %v9038_v16, %v4994_v28  ;;  %v4674_v24 = vmul.f32 -1.442695, %v2768_v25  ;;  %v2771_v48 = vadd.f32 %v2655_v29, %v2491_v47  ;;  %v2665_v55 = vpop.permute.xlu0 %2664 }
 0x338   : > { %v4998_v17 = vpop.eup %4997  ;;  %5017 = vrcp.f32 %v3080_v60  ;;  %v3298_v1 = vmul.f32 %v9039_v32, %v4996_v31  ;;  %v3312_v36 = vmul.f32 %v9041_v2, %v4988_v8  ;;  %v4660_v22 = vmul.f32 -1.442695, %v2754_v39  ;;  %v9046_v60 = vld [vmem:[#allocation87_spill] sm:$0xff]  ;;  %v9047_v32 = vld [vmem:[#allocation14_spill] sm:$0xff] }
 0x339   : > { %v5000_v45 = vpop.eup %4999  ;;  %v3065_v19 = vadd.f32 1.0, %v4998_v17  ;;  %5019 = vpow2.f32 %v4656_v20  ;;  %3403 = vadd.xlane.f32.xlu0 %v3402_v63  ;;  %v2772_v52 = vadd.f32 %v2655_v29, %v2492_v54  ;;  %v2757_v40 = vadd.f32 %v2620_v62, %v7548_v4  ;;  %v9044_v54 = vld [vmem:[#allocation41_spill] sm:$0xff] }
 0x33a   : > { %v5002_v0 = vpop.eup %5001  ;;  %v3066_v58 = vadd.f32 1.0, %v5000_v45  ;;  %5021 = vpow2.f32 %v4673_v56  ;;  %v3387_v34 = vadd.f32 %v3298_v1, %v3297_v51  ;;  %v3408_v26 = vadd.f32 %v3312_v36, %v3311_v9  ;;  %v7630_v63 = vld [vmem:[%s5668_s5 + $0x3b8] sm:$0xff] }
 0x33b   : > { %v5004_v59 = vpop.eup %5003  ;;  %5023 = vrcp.f32 %v3065_v19  ;;  %v3315_v18 = vmul.f32 %v7465_v57, %v5002_v0  ;;  %v7610_v43 = vmul.f32 0.00390625, %v9043_v44  ;;  %v4677_v41 = vmul.f32 -1.442695, %v2771_v48  ;;  %v9045_v57 = vld [vmem:[#allocation86_spill] sm:$0xff]  ;;  %v7638_v19 = vld [vmem:[%s8735_s1 + $0x30] sm:$0xff] }
 0x33c   : > { %v5006_v33 = vpop.eup %5005  ;;  %5025 = vrcp.f32 %v3066_v58  ;;  %3388 = vadd.xlane.f32.xlu1 %v3387_v34  ;;  %v3316_v12 = vmul.f32 %v9042_v21, %v5004_v59  ;;  %v2495_v4 = vmul.f32 %v7613_v3, %v9044_v54  ;;  %v2758_v30 = vadd.f32 %v2620_v62, %v7567_v50  ;;  %v7623_v62 = vld [vmem:[%s8735_s1 + $0x38] sm:$0xff]  ;;  %v7645_v48 = vld [vmem:[%s5668_s5 + $0x340] sm:$0xff]  ;;  %v9048_v0 = vld [vmem:[#allocation60_spill] sm:$0xff] }
 0x33d   : > { %v5008_v13 = vpop.eup %5007  ;;  %v3083_v8 = vadd.f32 1.0, %v5006_v33  ;;  %5027 = vpow2.f32 %v4674_v24  ;;  %3409 = vadd.xlane.f32.xlu0 %v3408_v26  ;;  %v4663_v28 = vmul.f32 -1.442695, %v2757_v40  ;;  %v4678_v27 = vmul.f32 -1.442695, %v2772_v52  ;;  %v9049_v21 = vld [vmem:[#allocation16_spill] sm:$0xff] }
 0x33e   : > { %v5010_v47 = vpop.eup %5009  ;;  %5029 = vpow2.f32 %v4659_v53  ;;  %v3301_v20 = vmul.f32 %v9045_v57, %v5008_v13  ;;  %v3414_v31 = vadd.f32 %v3316_v12, %v3315_v18  ;;  %v5548_v39 = vmov 0   ;;  %v7654_v13 = vld [vmem:[%s5668_s5 + $0x348] sm:$0xff]  ;;  %v9050_v44 = vld [vmem:[#allocation88_spill] sm:$0xff]  ;;  %v9052_v57 = vld [vmem:[#allocation89_spill] sm:$0xff] }
 0x33f   : > { %v5012_v25 = vpop.eup %5011  ;;  %5031 = vrcp.f32 %v3083_v8  ;;  %v3302_v56 = vmul.f32 %v9046_v60, %v5010_v47  ;;  %4771 = vset.pattern.permute.xlu1 %v5548_v39  ;;  %4772 = vset.pattern.permute.xlu0 %v5548_v39  ;;  %v2775_v16 = vadd.f32 %v2665_v55, %v2495_v4  ;;  %v7627_v1 = vmul.f32 %v7623_v62, %v9047_v32  ;;  %v7660_v47 = vld [vmem:[%s5668_s5 + $0x470] sm:$0xff] }
 0x340   : > { %v5014_v29 = vpop.eup %5013  ;;  %v3084_v10 = vadd.f32 1.0, %v5012_v25  ;;  %5033 = vpow2.f32 %v4660_v22  ;;  %v2496_v61 = vmul.f32 %v7630_v63, %v9044_v54  ;;  %v7642_v24 = vmul.f32 %v7638_v19, %v7610_v43  ;;  %v2630_v22 = vpop.permute.xlu1 %2629  ;;  %v9051_v54 = vld [vmem:[#allocation47_spill] sm:$0xff] }
 0x341   : > { %v5016_v53 = vpop.eup %5015  ;;  %v3069_v50 = vadd.f32 1.0, %v5014_v29  ;;  %5035 = vpow2.f32 %v4677_v41  ;;  %v3393_v51 = vadd.f32 %v3302_v56, %v3301_v20  ;;  %3415 = vadd.xlane.f32.xlu0 %v3414_v31  ;;  %v2481_v58 = vmul.f32 %v7645_v48, %v9048_v0 }
 0x342   : > { %v5018_v17 = vpop.eup %5017  ;;  %5037 = vrcp.f32 %v3084_v10  ;;  %v3319_v9 = vmul.f32 %v7484_v23, %v5016_v53  ;;  %v4664_v36 = vmul.f32 -1.442695, %v2758_v30  ;;  %v2776_v59 = vadd.f32 %v2665_v55, %v2496_v61  ;;  %v2675_v55 = vpop.permute.xlu0 %2674  ;;  %v9053_v10 = vld [vmem:[#allocation17_spill] sm:$0xff] }
 0x343   : > { %v5020_v45 = vpop.eup %5019  ;;  %5039 = vrcp.f32 %v3069_v50  ;;  %3394 = vadd.xlane.f32.xlu1 %v3393_v51  ;;  %v3320_v23 = vmul.f32 %v7489_v11, %v5018_v17  ;;  %v4681_v33 = vmul.f32 -1.442695, %v2775_v16  ;;  %v7651_v12 = vmul.f32 0.00390625, %v9049_v21  ;;  %v7669_v50 = vld [vmem:[%s5668_s5 + $0x360] sm:$0xff]  ;;  %v9055_v16 = vld [vmem:[#allocation61_spill] sm:$0xff] }
 0x344   : > { %v5022_v34 = vpop.eup %5021  ;;  %v3070_v2 = vadd.f32 1.0, %v5020_v45  ;;  %5041 = vpow2.f32 %v4678_v27  ;;  %v2482_v11 = vmul.f32 %v7654_v13, %v9048_v0  ;;  %v2499_v4 = vmul.f32 %v7660_v47, %v9051_v54  ;;  %v7674_v17 = vld [vmem:[%s5668_s5 + $0x478] sm:$0xff] }
 0x345   : > { %v5024_v52 = vpop.eup %5023  ;;  %v3087_v40 = vadd.f32 1.0, %v5022_v34  ;;  %5043 = vpow2.f32 %v4663_v28  ;;  %v3420_v26 = vadd.f32 %v3320_v23, %v3319_v9  ;;  %v2761_v30 = vadd.f32 %v2630_v22, %v2481_v58  ;;  %v2640_v23 = vpop.permute.xlu1 %2639 }
 0x346   : > { %v5026_v18 = vpop.eup %5025  ;;  %5045 = vrcp.f32 %v3070_v2  ;;  %v3305_v8 = vmul.f32 %v9050_v44, %v5024_v52  ;;  %v4682_v60 = vmul.f32 -1.442695, %v2776_v59  ;;  %v2762_v56 = vadd.f32 %v2630_v22, %v2482_v11  ;;  %v7691_v44 = vld [vmem:[%s5668_s5 + $0x498] sm:$0xff] }
 0x347   : > { %v5028_v41 = vpop.eup %5027  ;;  %5047 = vrcp.f32 %v3087_v40  ;;  %v3306_v20 = vmul.f32 %v9052_v57, %v5026_v18  ;;  %3421 = vadd.xlane.f32.xlu0 %v3420_v26  ;;  %v7666_v27 = vmul.f32 0.00390625, %v9053_v10  ;;  %v2485_v51 = vmul.f32 %v7669_v50, %v9055_v16  ;;  %v7680_v40 = vld [vmem:[%s5668_s5 + $0x368] sm:$0xff]  ;;  %v7685_v26 = vld [vmem:[%s5668_s5 + $0x490] sm:$0xff]  ;;  %v9056_v18 = vld [vmem:[#allocation50_spill] sm:$0xff] }
 0x348   : > { %v5030_v25 = vpop.eup %5029  ;;  %v3088_v28 = vadd.f32 1.0, %v5028_v41  ;;  %5049 = vpow2.f32 %v4664_v36  ;;  %v2500_v61 = vmul.f32 %v7674_v17, %v9051_v54  ;;  %v2779_v9 = vadd.f32 %v2675_v55, %v2499_v4  ;;  %v9057_v57 = vld [vmem:[#allocation90_spill] sm:$0xff]  ;;  %v7699_v10 = vld [vmem:[%s8735_s1 + $0x48] sm:$0xff] }
 0x349   : > { %v5032_v29 = vpop.eup %5031  ;;  %9054 = vst [vmem:[#allocation79_spill] sm:$0xff] %v7666_v27  ;;  %v3073_v31 = vadd.f32 1.0, %v5030_v25  ;;  %5051 = vpow2.f32 %v4681_v33  ;;  %v3399_v39 = vadd.f32 %v3306_v20, %v3305_v8  ;;  %v4667_v58 = vmul.f32 -1.442695, %v2761_v30 }
 0x34a   : > { %v5034_v53 = vpop.eup %5033  ;;  %5053 = vrcp.f32 %v3088_v28  ;;  %v3323_v34 = vmul.f32 %v7538_v49, %v5032_v29  ;;  %v4668_v59 = vmul.f32 -1.442695, %v2762_v56  ;;  %v2780_v22 = vadd.f32 %v2675_v55, %v2500_v61  ;;  %v2685_v55 = vpop.permute.xlu0 %2684 }
 0x34b   : > { %v5036_v45 = vpop.eup %5035  ;;  %v3074_v0 = vadd.f32 1.0, %v5034_v53  ;;  %5055 = vrcp.f32 %v3073_v31  ;;  %3400 = vadd.xlane.f32.xlu1 %v3399_v39  ;;  %v2486_v33 = vmul.f32 %v7680_v40, %v9055_v16  ;;  %v2503_v21 = vmul.f32 %v7685_v26, %v9056_v18  ;;  %v7706_v39 = vld [vmem:[%s5668_s5 + $0x380] sm:$0xff]  ;;  %v9058_v53 = vld [vmem:[#allocation40_spill] sm:$0xff] }
 0x34c   : > { %v5038_v2 = vpop.eup %5037  ;;  %v3091_v36 = vadd.f32 1.0, %v5036_v45  ;;  %5057 = vpow2.f32 %v4682_v60  ;;  %v2504_v8 = vmul.f32 %v7691_v44, %v9056_v18  ;;  %v4685_v41 = vmul.f32 -1.442695, %v2779_v9 }
 0x34d   : > { %v5040_v52 = vpop.eup %5039  ;;  %5059 = vrcp.f32 %v3074_v0  ;;  %v3324_v11 = vmul.f32 %v7551_v15, %v5038_v2  ;;  %v2765_v54 = vadd.f32 %v2640_v23, %v2485_v51  ;;  %v4686_v15 = vmul.f32 -1.442695, %v2780_v22  ;;  %v7713_v22 = vld [vmem:[%s5668_s5 + $0x388] sm:$0xff] }
 0x34e   : > { %v5042_v49 = vpop.eup %5041  ;;  %5061 = vrcp.f32 %v3091_v36  ;;  %v3309_v20 = vmul.f32 %v9057_v57, %v5040_v52  ;;  %v2766_v56 = vadd.f32 %v2640_v23, %v2486_v33  ;;  %v7703_v31 = vmul.f32 %v7699_v10, %v7651_v12 }
 0x34f   : > { %v5044_v4 = vpop.eup %5043  ;;  %v3092_v30 = vadd.f32 1.0, %v5042_v49  ;;  %5063 = vpow2.f32 %v4667_v58  ;;  %v3426_v25 = vadd.f32 %v3324_v11, %v3323_v34  ;;  %v2489_v16 = vmul.f32 %v7706_v39, %v9058_v53  ;;  %v2650_v58 = vpop.permute.xlu1 %2649  ;;  %v7718_v11 = vld [vmem:[%s5668_s5 + $0x4b0] sm:$0xff] }
 0x350   : > { %v5046_v28 = vpop.eup %5045  ;;  %v3077_v60 = vadd.f32 1.0, %v5044_v4  ;;  %5065 = vpow2.f32 %v4668_v59  ;;  %v4671_v9 = vmul.f32 -1.442695, %v2765_v54  ;;  %v2783_v45 = vadd.f32 %v2685_v55, %v2503_v21  ;;  %v9059_v21 = vld [vmem:[#allocation55_spill] sm:$0xff] }
 0x351   : > { %v5048_v29 = vpop.eup %5047  ;;  %5067 = vrcp.f32 %v3092_v30  ;;  %v3310_v51 = vmul.f32 %v7508_v5, %v5046_v28  ;;  %3427 = vadd.xlane.f32.xlu0 %v3426_v25  ;;  %v2784_v0 = vadd.f32 %v2685_v55, %v2504_v8  ;;  %v2490_v5 = vmul.f32 %v7713_v22, %v9058_v53  ;;  %v2695_v30 = vpop.permute.xlu0 %2694 }
 0x352   : > { %v5050_v61 = vpop.eup %5049  ;;  %5069 = vrcp.f32 %v3077_v60  ;;  %v3327_v36 = vmul.f32 %v7570_v38, %v5048_v29  ;;  %v4672_v33 = vmul.f32 -1.442695, %v2766_v56  ;;  %v2507_v49 = vmul.f32 %v7718_v11, %v9059_v21  ;;  %v7728_v29 = vld [vmem:[%s5668_s5 + $0x3a0] sm:$0xff] }
 0x353   : > { %v5052_v23 = vpop.eup %5051  ;;  %v3078_v34 = vadd.f32 1.0, %v5050_v61  ;;  %5071 = vpow2.f32 %v4685_v41  ;;  %v3405_v2 = vadd.f32 %v3310_v51, %v3309_v20  ;;  %v2769_v8 = vadd.f32 %v2650_v58, %v2489_v16  ;;  %v7734_v61 = vld [vmem:[%s5668_s5 + $0x4b8] sm:$0xff] }
 0x354   : > { %v5054_v59 = vpop.eup %5053  ;;  %v3095_v52 = vadd.f32 1.0, %v5052_v23  ;;  %5073 = vpow2.f32 %v4686_v15  ;;  %v4689_v54 = vmul.f32 -1.442695, %v2783_v45  ;;  %v2770_v4 = vadd.f32 %v2650_v58, %v2490_v5  ;;  %v9060_v15 = vld [vmem:[#allocation19_spill] sm:$0xff]  ;;  %v2660_v23 = vpop.permute.xlu1 %2659 }
 0x355   : > { %v5056_v18 = vpop.eup %5055  ;;  %5075 = vrcp.f32 %v3078_v34  ;;  %3406 = vadd.xlane.f32.xlu1 %v3405_v2  ;;  %v3328_v38 = vmul.f32 %v7582_v6, %v5054_v59  ;;  %v4690_v25 = vmul.f32 -1.442695, %v2784_v0  ;;  %v7725_v56 = vmul.f32 0.00390625, %v9060_v15  ;;  %v9062_v6 = vld [vmem:[#allocation34_spill] sm:$0xff] }
 0x356   : > { %v5058_v41 = vpop.eup %5057  ;;  %5077 = vrcp.f32 %v3095_v52  ;;  %v3313_v55 = vmul.f32 %v7515_v46, %v5056_v18  ;;  %v2493_v53 = vmul.f32 %v7728_v29, %v9062_v6  ;;  %v2508_v46 = vmul.f32 %v7734_v61, %v9059_v21  ;;  %v7751_v21 = vld [vmem:[%s8735_s1] sm:$0xff] }
 0x357   : > { %v5060_v57 = vpop.eup %5059  ;;  %v3096_v20 = vadd.f32 1.0, %v5058_v41  ;;  %5079 = vpow2.f32 %v4671_v9  ;;  %v3432_v28 = vadd.f32 %v3328_v38, %v3327_v36  ;;  %9061 = vst [vmem:[#allocation82_spill] sm:$0xff] %v7725_v56  ;;  %v4675_v9 = vmul.f32 -1.442695, %v2769_v8  ;;  %v7759_v38 = vld [vmem:[%s5668_s5 + $0x3a8] sm:$0xff] }
 0x358   : > { %v5062_v60 = vpop.eup %5061  ;;  %5081 = vpow2.f32 %v4672_v33  ;;  %v3314_v16 = vmul.f32 %v7531_v7, %v5060_v57  ;;  %v2787_v45 = vadd.f32 %v2695_v30, %v2507_v49  ;;  %v4676_v59 = vmul.f32 -1.442695, %v2770_v4  ;;  %v7742_v33 = vld [vmem:[%s8735_s1 + $0x40] sm:$0xff]  ;;  %v2705_v57 = vpop.permute.xlu0 %2704 }
 0x359   : > { %v5064_v51 = vpop.eup %5063  ;;  %5083 = vrcp.f32 %v3096_v20  ;;  %3433 = vadd.xlane.f32.xlu0 %v3432_v28  ;;  %v3331_v2 = vmul.f32 %v7588_v35, %v5062_v60  ;;  %v2788_v5 = vadd.f32 %v2695_v30, %v2508_v46  ;;  %v7746_v18 = vmul.f32 %v7742_v33, %v7666_v27  ;;  %v7765_v60 = vld [vmem:[%s5668_s5 + $0x4d0] sm:$0xff]  ;;  %v7820_v27 = vld [vmem:[%s5668_s5 + $0x488] sm:$0xff] }
 0x35a   : > { %v5066_v0 = vpop.eup %5065  ;;  %v3081_v58 = vadd.f32 1.0, %v5064_v51  ;;  %5085 = vpow2.f32 %v4689_v54  ;;  %v3411_v34 = vadd.f32 %v3314_v16, %v3313_v55  ;;  %v7755_v35 = vmul.f32 %v7751_v21, %v7725_v56  ;;  %v9064_v46 = vld [vmem:[#allocation20_spill] sm:$0xff] }
 0x35b   : > { %v5068_v36 = vpop.eup %5067  ;;  %v3082_v7 = vadd.f32 1.0, %v5066_v0  ;;  %5087 = vpow2.f32 %v4690_v25  ;;  %v2494_v41 = vmul.f32 %v7759_v38, %v9062_v6  ;;  %v4693_v54 = vmul.f32 -1.442695, %v2787_v45 }
 0x35c   : > { %v5070_v52 = vpop.eup %5069  ;;  %5089 = vrcp.f32 %v3081_v58  ;;  %3412 = vadd.xlane.f32.xlu1 %v3411_v34  ;;  %v3332_v49 = vmul.f32 %v7593_v37, %v5068_v36  ;;  %v2773_v4 = vadd.f32 %v2660_v23, %v2493_v53  ;;  %v9063_v37 = vld [vmem:[#allocation57_spill] sm:$0xff]  ;;  %v4694_v6 = vmul.f32 -1.442695, %v2788_v5 }
 0x35d   : > { %v5072_v8 = vpop.eup %5071  ;;  %5091 = vrcp.f32 %v3082_v7  ;;  %v3317_v20 = vmul.f32 %v7544_v42, %v5070_v52  ;;  %v2511_v15 = vmul.f32 %v7765_v60, %v9063_v37  ;;  %v7770_v45 = vmul.f32 0.00390625, %v9064_v46  ;;  %v7773_v53 = vld [vmem:[%s5668_s5 + $0x4d8] sm:$0xff]  ;;  %v2670_v42 = vpop.permute.xlu1 %2669 }
 0x35e   : > { %v5074_v30 = vpop.eup %5073  ;;  %v3099_v55 = vadd.f32 1.0, %v5072_v8  ;;  %5093 = vpow2.f32 %v4675_v9  ;;  %v3438_v25 = vadd.f32 %v3332_v49, %v3331_v2  ;;  %v2512_v9 = vmul.f32 %v7773_v53, %v9063_v37  ;;  %v9066_v8 = vld [vmem:[#allocation21_spill] sm:$0xff]  ;;  %v9068_v37 = vld [vmem:[#allocation42_spill] sm:$0xff] }
 0x35f   : > { %v5076_v28 = vpop.eup %5075  ;;  %v3100_v16 = vadd.f32 1.0, %v5074_v30  ;;  %5095 = vpow2.f32 %v4676_v59  ;;  %9065 = vst [vmem:[#allocation84_spill] sm:$0xff] %v7770_v45  ;;  %v2774_v34 = vadd.f32 %v2660_v23, %v2494_v41  ;;  %v4679_v2 = vmul.f32 -1.442695, %v2773_v4  ;;  %v7790_v41 = vld [vmem:[%s8735_s1 + $0x18] sm:$0xff] }
 0x360   : > { %v5078_v51 = vpop.eup %5077  ;;  %5097 = vrcp.f32 %v3099_v55  ;;  %v3318_v0 = vmul.f32 %v7563_v14, %v5076_v28  ;;  %3439 = vadd.xlane.f32.xlu0 %v3438_v25  ;;  %v2791_v36 = vadd.f32 %v2705_v57, %v2511_v15  ;;  %v7780_v30 = vmul.f32 0.00390625, %v9066_v8  ;;  %v7783_v55 = vld [vmem:[%s5668_s5 + $0x460] sm:$0xff] }
 0x361   : > { %v5080_v58 = vpop.eup %5079  ;;  %5099 = vrcp.f32 %v3100_v16  ;;  %v3335_v52 = vmul.f32 %v7613_v3, %v5078_v51  ;;  %v2497_v14 = vmul.f32 %v7783_v55, %v9068_v37  ;;  %v7794_v3 = vmul.f32 %v7790_v41, %v7770_v45 }
 0x362   : > { %v5082_v7 = vpop.eup %5081  ;;  %v3085_v59 = vadd.f32 1.0, %v5080_v58  ;;  %5101 = vpow2.f32 %v4693_v54  ;;  %v3417_v5 = vadd.f32 %v3318_v0, %v3317_v20  ;;  %9067 = vst [vmem:[#allocation83_spill] sm:$0xff] %v7780_v30  ;;  %v2792_v54 = vadd.f32 %v2705_v57, %v2512_v9  ;;  %v2680_v0 = vpop.permute.xlu1 %2679  ;;  %v7803_v9 = vld [vmem:[%s5668_s5 + $0x4f0] sm:$0xff] }
 0x363   : > { %v5084_v49 = vpop.eup %5083  ;;  %v3086_v25 = vadd.f32 1.0, %v5082_v7  ;;  %5103 = vpow2.f32 %v4694_v6  ;;  %v4680_v15 = vmul.f32 -1.442695, %v2774_v34  ;;  %v2777_v16 = vadd.f32 %v2670_v42, %v2497_v14  ;;  %v2715_v34 = vpop.permute.xlu0 %2714 }
 0x364   : > { %v5086_v23 = vpop.eup %5085  ;;  %5105 = vrcp.f32 %v3085_v59  ;;  %3418 = vadd.xlane.f32.xlu1 %v3417_v5  ;;  %v3336_v4 = vmul.f32 %v7630_v63, %v5084_v49  ;;  %v4697_v46 = vmul.f32 -1.442695, %v2791_v36  ;;  %v7798_v59 = vld [vmem:[%s5668_s5 + $0x468] sm:$0xff] }
 0x365   : > { %v5088_v20 = vpop.eup %5087  ;;  %5107 = vrcp.f32 %v3086_v25  ;;  %v3103_v28 = vadd.f32 1.0, %v5086_v23  ;;  %v2498_v57 = vmul.f32 %v7798_v59, %v9068_v37  ;;  %v9069_v63 = vld [vmem:[#allocation11_spill] sm:$0xff] }
 0x366   : > { %v5090_v6 = vpop.eup %5089  ;;  %v3104_v51 = vadd.f32 1.0, %v5088_v20  ;;  %5109 = vpow2.f32 %v4679_v2  ;;  %v3444_v58 = vadd.f32 %v3336_v4, %v3335_v52  ;;  %v2515_v5 = vmul.f32 %v7803_v9, %v9069_v63  ;;  %v7809_v2 = vld [vmem:[%s5668_s5 + $0x4f8] sm:$0xff] }
 0x367   : > { %v5092_v7 = vpop.eup %5091  ;;  %5111 = vrcp.f32 %v3103_v28  ;;  %v3321_v49 = vmul.f32 %v7645_v48, %v5090_v6  ;;  %v2516_v36 = vmul.f32 %v7809_v2, %v9069_v63  ;;  %v4698_v52 = vmul.f32 -1.442695, %v2792_v54  ;;  %v7815_v63 = vld [vmem:[%s5668_s5 + $0x480] sm:$0xff] }
 0x368   : > { %v5094_v8 = vpop.eup %5093  ;;  %5113 = vrcp.f32 %v3104_v51  ;;  %v3322_v37 = vmul.f32 %v7654_v13, %v5092_v7  ;;  %3445 = vadd.xlane.f32.xlu0 %v3444_v58  ;;  %v2778_v23 = vadd.f32 %v2670_v42, %v2498_v57  ;;  %v4683_v4 = vmul.f32 -1.442695, %v2777_v16  ;;  %v9070_v51 = vld [vmem:[#allocation36_spill] sm:$0xff]  ;;  %v7826_v16 = vld [vmem:[%s5668_s5 + $0x4a0] sm:$0xff]  ;;  %v2690_v57 = vpop.permute.xlu1 %2689 }
 0x369   : > { %v5096_v14 = vpop.eup %5095  ;;  %v3089_v25 = vadd.f32 1.0, %v5094_v8  ;;  %5115 = vpow2.f32 %v4680_v15  ;;  %v2795_v28 = vadd.f32 %v2715_v34, %v2515_v5  ;;  %v2501_v54 = vmul.f32 %v7815_v63, %v9070_v51 }
 0x36a   : > { %v5098_v48 = vpop.eup %5097  ;;  %v3090_v20 = vadd.f32 1.0, %v5096_v14  ;;  %5117 = vpow2.f32 %v4697_v46  ;;  %v3423_v6 = vadd.f32 %v3322_v37, %v3321_v49  ;;  %v2502_v13 = vmul.f32 %v7820_v27, %v9070_v51  ;;  %v9071_v46 = vld [vmem:[#allocation45_spill] sm:$0xff] }
 0x36b   : > { %v5100_v56 = vpop.eup %5099  ;;  %5119 = vrcp.f32 %v3089_v25  ;;  %v3339_v42 = vmul.f32 %v7660_v47, %v5098_v48  ;;  %v2505_v58 = vmul.f32 %v7826_v16, %v9071_v46  ;;  %v2796_v7 = vadd.f32 %v2715_v34, %v2516_v36 }
 0x36c   : > { %v5102_v15 = vpop.eup %5101  ;;  %5121 = vrcp.f32 %v3090_v20  ;;  %3424 = vadd.xlane.f32.xlu1 %v3423_v6  ;;  %v3340_v5 = vmul.f32 %v7674_v17, %v5100_v56  ;;  %v4684_v37 = vmul.f32 -1.442695, %v2778_v23  ;;  %v2781_v14 = vadd.f32 %v2680_v0, %v2501_v54  ;;  %v7834_v20 = vld [vmem:[%s8735_s1 + $0x10] sm:$0xff]  ;;  %v9072_v6 = vld [vmem:[#allocation22_spill] sm:$0xff] }
 0x36d   : > { %v5104_v49 = vpop.eup %5103  ;;  %v3107_v8 = vadd.f32 1.0, %v5102_v15  ;;  %5123 = vpow2.f32 %v4698_v52  ;;  %v4701_v47 = vmul.f32 -1.442695, %v2795_v28  ;;  %v7838_v34 = vmul.f32 %v7834_v20, %v7780_v30 }
 0x36e   : > { %v5106_v25 = vpop.eup %5105  ;;  %v3108_v51 = vadd.f32 1.0, %v5104_v49  ;;  %5125 = vpow2.f32 %v4683_v4  ;;  %v3450_v48 = vadd.f32 %v3340_v5, %v3339_v42  ;;  %v2782_v17 = vadd.f32 %v2680_v0, %v2502_v13  ;;  %v7846_v49 = vld [vmem:[%s5668_s5 + $0x4a8] sm:$0xff]  ;;  %v2700_v0 = vpop.permute.xlu1 %2699 }
 0x36f   : > { %v5108_v45 = vpop.eup %5107  ;;  %5127 = vrcp.f32 %v3107_v8  ;;  %v3325_v56 = vmul.f32 %v7669_v50, %v5106_v25  ;;  %v4702_v52 = vmul.f32 -1.442695, %v2796_v7  ;;  %v2785_v23 = vadd.f32 %v2690_v57, %v2505_v58  ;;  %v9073_v7 = vld [vmem:[#allocation49_spill] sm:$0xff] }
 0x370   : > { %v5110_v36 = vpop.eup %5109  ;;  %5129 = vrcp.f32 %v3108_v51  ;;  %v3326_v4 = vmul.f32 %v7680_v40, %v5108_v45  ;;  %3451 = vadd.xlane.f32.xlu0 %v3450_v48  ;;  %v7843_v54 = vmul.f32 0.00390625, %v9072_v6  ;;  %v4687_v15 = vmul.f32 -1.442695, %v2781_v14  ;;  %v7852_v45 = vld [vmem:[%s5668_s5 + $0x4c0] sm:$0xff] }
 0x371   : > { %v5112_v28 = vpop.eup %5111  ;;  %v3093_v42 = vadd.f32 1.0, %v5110_v36  ;;  %5131 = vpow2.f32 %v4684_v37  ;;  %v2506_v50 = vmul.f32 %v7846_v49, %v9071_v46  ;;  %v2509_v8 = vmul.f32 %v7852_v45, %v9073_v7 }
 0x372   : > { %v5114_v5 = vpop.eup %5113  ;;  %5133 = vpow2.f32 %v4701_v47  ;;  %v3429_v13 = vadd.f32 %v3326_v4, %v3325_v56  ;;  %v3343_v58 = vmul.f32 %v7685_v26, %v5112_v28  ;;  %v4688_v37 = vmul.f32 -1.442695, %v2782_v17  ;;  %v9074_v28 = vld [vmem:[#allocation23_spill] sm:$0xff] }
 0x373   : > { %v5116_v40 = vpop.eup %5115  ;;  %5135 = vrcp.f32 %v3093_v42  ;;  %v3344_v14 = vmul.f32 %v7691_v44, %v5114_v5  ;;  %v2786_v46 = vadd.f32 %v2690_v57, %v2506_v50  ;;  %v4691_v47 = vmul.f32 -1.442695, %v2785_v23  ;;  %v7861_v42 = vld [vmem:[%s5668_s5 + $0x4c8] sm:$0xff]  ;;  %v7870_v5 = vld [vmem:[%s5668_s5 + $0x4e0] sm:$0xff] }
 0x374   : > { %v5118_v25 = vpop.eup %5117  ;;  %v3094_v51 = vadd.f32 1.0, %v5116_v40  ;;  %5137 = vpow2.f32 %v4702_v52  ;;  %3430 = vadd.xlane.f32.xlu1 %v3429_v13  ;;  %v2789_v56 = vadd.f32 %v2700_v0, %v2509_v8  ;;  %v7858_v6 = vmul.f32 0.00390625, %v9074_v28  ;;  %v9076_v52 = vld [vmem:[#allocation65_spill] sm:$0xff] }
 0x375   : > { %v5120_v48 = vpop.eup %5119  ;;  %v3111_v26 = vadd.f32 1.0, %v5118_v25  ;;  %5139 = vpow2.f32 %v4687_v15  ;;  %v3456_v36 = vadd.f32 %v3344_v14, %v3343_v58  ;;  %v2510_v44 = vmul.f32 %v7861_v42, %v9073_v7  ;;  %v9078_v15 = vld [vmem:[#allocation52_spill] sm:$0xff] }
 0x376   : > { %v5122_v4 = vpop.eup %5121  ;;  %9075 = vst [vmem:[#allocation85_spill] sm:$0xff] %v7858_v6  ;;  %5141 = vrcp.f32 %v3094_v51  ;;  %v3329_v57 = vmul.f32 %v7706_v39, %v5120_v48  ;;  %v7867_v23 = vmul.f32 0.00390625, %v9076_v52  ;;  %v2513_v50 = vmul.f32 %v7870_v5, %v9078_v15  ;;  %v2710_v39 = vpop.permute.xlu1 %2709 }
 0x377   : > { %v5124_v17 = vpop.eup %5123  ;;  %5143 = vrcp.f32 %v3111_v26  ;;  %v3330_v13 = vmul.f32 %v7713_v22, %v5122_v4  ;;  %3457 = vadd.xlane.f32.xlu0 %v3456_v36  ;;  %v4692_v7 = vmul.f32 -1.442695, %v2786_v46  ;;  %v2790_v8 = vadd.f32 %v2700_v0, %v2510_v44  ;;  %v7878_v26 = vld [vmem:[%s8735_s1 + $0x28] sm:$0xff] }
 0x378   : > { %9077 = vst [vmem:[#allocation91_spill] sm:$0xff] %v7867_v23  ;;  %v5126_v58 = vpop.eup %5125  ;;  %v3112_v40 = vadd.f32 1.0, %v5124_v17  ;;  %5145 = vpow2.f32 %v4688_v37  ;;  %v4695_v51 = vmul.f32 -1.442695, %v2789_v56  ;;  %v7882_v22 = vmul.f32 %v7878_v26, %v7843_v54  ;;  %v7885_v36 = vld [vmem:[%s5668_s5 + $0x4e8] sm:$0xff]  ;;  %s5551_s5 = smov [#allocation5]  }
 0x379   : > { %v5128_v14 = vpop.eup %5127  ;;  %v3097_v25 = vadd.f32 1.0, %v5126_v58  ;;  %5147 = vpow2.f32 %v4691_v47  ;;  %v3435_v48 = vadd.f32 %v3330_v13, %v3329_v57  ;;  %v2514_v0 = vmul.f32 %v7885_v36, %v9078_v15  ;;  %v5437_v47 = vld [vmem:[%s8735_s1 + $0x8] sm:$0xff]  ;;  %v9079_v58 = vld [vmem:[#allocation24_spill] sm:$0xff]  ;;  %s5477_s28 = sshll.u32 %s5551_s5, 4  ;;  %s5478_s28 = int_to_ptr.vmem [resolvable:$false] %s5477_s28 }
 0x37a   : > { %v5130_v28 = vpop.eup %5129  ;;  %5149 = vrcp.f32 %v3112_v40  ;;  %v3347_v37 = vmul.f32 %v7718_v11, %v5128_v14  ;;  %v523_v56 = vmul.f32 %v5437_v47, %v7867_v23  ;;  %v2793_v4 = vadd.f32 %v2710_v39, %v2513_v50  ;;  %v7901_v50 = vld [vmem:[%s8735_s1 + $0x20] sm:$0xff]  ;;  %v9088_v23 = vld [vmem:[#allocation81_spill] sm:$0xff]  ;;  %s5479_s6 = scalar_lea.vmem %s5478_s28, 256  ;;  %p5480_p8 = scmp.lt.s32.totalorder %s8692_s4, %s5478_s28 }
 0x37b   : > { %v5132_v46 = vpop.eup %5131  ;;  %5151 = vrcp.f32 %v3097_v25  ;;  %3436 = vadd.xlane.f32.xlu1 %v3435_v48  ;;  %v3348_v44 = vmul.f32 %v7734_v61, %v5130_v28  ;;  %v4696_v52 = vmul.f32 -1.442695, %v2790_v8  ;;  %v2794_v15 = vadd.f32 %v2710_v39, %v2514_v0  ;;  %v9081_v39 = vld [vmem:[#allocation75_spill] sm:$0xff]  ;;  %p5481_p9 = scmp.lt.s32.totalorder %s5479_s6, %s5473_s3 }
 0x37c   : > { %v5134_v57 = vpop.eup %5133  ;;  %v3098_v17 = vadd.f32 1.0, %v5132_v46  ;;  %5153 = vpow2.f32 %v4692_v7  ;;  %v7896_v11 = vmul.f32 0.00390625, %v9079_v58  ;;  %v7905_v61 = vmul.f32 %v7901_v50, %v7858_v6  ;;  %v9080_v7 = vld [vmem:[#allocation27_spill] sm:$0xff]  ;;  %v9082_v46 = vld [vmem:[#allocation32_spill] sm:$0xff] }
 0x37d   : > { %v5136_v13 = vpop.eup %5135  ;;  %v3115_v40 = vadd.f32 1.0, %v5134_v57  ;;  %5155 = vpow2.f32 %v4695_v51  ;;  %v3462_v14 = vadd.f32 %v3348_v44, %v3347_v37  ;;  %v7908_v8 = vmul.f32 0.00390625, %v9080_v7  ;;  %p5482_p13 = por %p5481_p9, %p5480_p8 }
 0x37e   : > { %v5138_v30 = vpop.eup %5137  ;;  %v603_v25 = vadd.f32 %v9081_v39, %v523_v56  ;;  %5157 = vrcp.f32 %v3098_v17  ;;  %v4699_v51 = vmul.f32 -1.442695, %v2793_v4  ;;  %v3333_v0 = vmul.f32 %v7728_v29, %v5136_v13  ;;  %v9083_v56 = vld [vmem:[#allocation28_spill] sm:$0xff]  ;;  %v9084_v4 = vld [vmem:[#allocation35_spill] sm:$0xff] }
 0x37f   : > { %v5140_v48 = vpop.eup %5139  ;;  %v3116_v28 = vadd.f32 1.0, %v5138_v30  ;;  %5159 = vrcp.f32 %v3115_v40  ;;  %3463 = vadd.xlane.f32.xlu0 %v3462_v14  ;;  %v579_v47 = vadd.f32 %v9082_v46, %v7627_v1  ;;  %v4700_v57 = vmul.f32 -1.442695, %v2794_v15  ;;  %v9086_v1 = vld [vmem:[#allocation80_spill] sm:$0xff]  ;;  %v9087_v14 = vld [vmem:[#allocation77_spill] sm:$0xff]  ;;  %p5483_p1 = pnand %p5482_p13, %p5476_p12 }
 0x380   : > { %v5142_v37 = vpop.eup %5141  ;;  %v3101_v44 = vadd.f32 1.0, %v5140_v48  ;;  %5161 = vpow2.f32 %v4696_v52  ;;  %v7916_v7 = vmul.f32 %v7623_v62, %v7896_v11  ;;  %v7919_v17 = vmul.f32 0.00390625, %v9083_v56 }
 0x381   : > { %v5144_v58 = vpop.eup %5143  ;;  %5163 = vrcp.f32 %v3116_v28  ;;  %v3334_v30 = vmul.f32 %v7759_v38, %v5142_v37  ;;  %v7923_v13 = vmul.f32 0.00390625, %v9084_v4  ;;  %v4614_v40 = vmul.f32 -1.442695, %v603_v25  ;;  %v9089_v28 = vld [vmem:[#allocation25_spill] sm:$0xff] }
 0x382   : > { %v5146_v29 = vpop.eup %5145  ;;  %v574_v52 = vadd.f32 %v9087_v14, %v9086_v1  ;;  %5165 = vrcp.f32 %v3101_v44  ;;  %v3351_v48 = vmul.f32 %v7765_v60, %v5144_v58  ;;  %v576_v6 = vadd.f32 %v9089_v28, %v9088_v23  ;;  %v9090_v1 = vld [vmem:[#allocation43_spill] sm:$0xff] }
 0x383   : > { %9085 = vst [vmem:[#allocation15_spill] sm:$0xff] %v7923_v13  ;;  %v5148_v15 = vpop.eup %5147  ;;  %v3102_v39 = vadd.f32 1.0, %v5146_v29  ;;  %5167 = vpow2.f32 %v4699_v51  ;;  %v3441_v62 = vadd.f32 %v3334_v30, %v3333_v0  ;;  %v4590_v38 = vmul.f32 -1.442695, %v579_v47  ;;  %v9092_v47 = vld [vmem:[#allocation33_spill] sm:$0xff] }
 0x384   : > { %v5150_v56 = vpop.eup %5149  ;;  %v3105_v37 = vadd.f32 1.0, %v5148_v15  ;;  %5169 = vpow2.f32 %v4700_v57  ;;  %v7932_v25 = vmul.f32 %v7638_v19, %v7908_v8  ;;  %v7935_v44 = vmul.f32 0.00390625, %v9090_v1 }
 0x385   : > { %v5152_v4 = vpop.eup %5151  ;;  %5171 = vrcp.f32 %v3102_v39  ;;  %3442 = vadd.xlane.f32.xlu1 %v3441_v62  ;;  %v3352_v51 = vmul.f32 %v7773_v53, %v5150_v56  ;;  %v7940_v0 = vmul.f32 %v7699_v10, %v7919_v17  ;;  %v4585_v23 = vmul.f32 -1.442695, %v574_v52 }
 0x386   : > { %9091 = vst [vmem:[#allocation41_spill] sm:$0xff] %v7935_v44  ;;  %v5154_v60 = vpop.eup %5153  ;;  %v581_v57 = vadd.f32 %v9092_v47, %v7703_v31  ;;  %5173 = vrcp.f32 %v3105_v37  ;;  %v3337_v30 = vmul.f32 %v7783_v55, %v5152_v4  ;;  %v7947_v53 = vmul.f32 %v7742_v33, %v7923_v13  ;;  %v9093_v31 = vld [vmem:[#allocation76_spill] sm:$0xff] }
 0x387   : > { %v5156_v58 = vpop.eup %5155  ;;  %5175 = vpow2.f32 %v4614_v40  ;;  %v3106_v19 = vadd.f32 1.0, %v5154_v60  ;;  %v3468_v29 = vadd.f32 %v3352_v51, %v3351_v48  ;;  %v4587_v39 = vmul.f32 -1.442695, %v576_v6  ;;  %v9094_v48 = vld [vmem:[#allocation44_spill] sm:$0xff]  ;;  %v9095_v51 = vld [vmem:[#allocation10_spill] sm:$0xff] }
 0x388   : > { %v5158_v15 = vpop.eup %5157  ;;  %5177 = vpow2.f32 %v4590_v38  ;;  %v3109_v62 = vadd.f32 1.0, %v5156_v58  ;;  %v512_v52 = vmul.f32 %v7751_v21, %v7935_v44  ;;  %v582_v37 = vadd.f32 %v9093_v31, %v7755_v35  ;;  %v9096_v35 = vld [vmem:[#allocation66_spill] sm:$0xff] }
 0x389   : > { %v5160_v56 = vpop.eup %5159  ;;  %5179 = vrcp.f32 %v3106_v19  ;;  %v3338_v40 = vmul.f32 %v7798_v59, %v5158_v15  ;;  %3469 = vadd.xlane.f32.xlu0 %v3468_v29  ;;  %v7955_v4 = vmul.f32 0.00390625, %v9094_v48  ;;  %v4592_v1 = vmul.f32 -1.442695, %v581_v57 }
 0x38a   : > { %v5162_v55 = vpop.eup %5161  ;;  %5181 = vrcp.f32 %v3109_v62  ;;  %v3355_v6 = vmul.f32 %v7803_v9, %v5160_v56  ;;  %v732_v60 = vadd.f32 1.0, %v9095_v51  ;;  %v7960_v19 = vmul.f32 0.00390625, %v9096_v35  ;;  %v9098_v62 = vld [vmem:[#allocation26_spill] sm:$0xff]  ;;  %v9099_v56 = vld [vmem:[#allocation29_spill] sm:$0xff] }
 0x38b   : > { %v5164_v38 = vpop.eup %5163  ;;  %5183 = vpow2.f32 %v4585_v23  ;;  %v3110_v58 = vadd.f32 1.0, %v5162_v55  ;;  %v3447_v44 = vadd.f32 %v3338_v40, %v3337_v30  ;;  %v592_v59 = vadd.f32 %v9093_v31, %v512_v52 }
 0x38c   : > { %v5166_v13 = vpop.eup %5165  ;;  %9097 = vst [vmem:[#allocation86_spill] sm:$0xff] %v7960_v19  ;;  %5185 = vpow2.f32 %v4587_v39  ;;  %v3356_v29 = vmul.f32 %v7809_v2, %v5164_v38  ;;  %v4593_v57 = vmul.f32 -1.442695, %v582_v37  ;;  %v585_v9 = vadd.f32 %v9098_v62, %v7794_v3  ;;  %v9100_v39 = vld [vmem:[#allocation51_spill] sm:$0xff]  ;;  %v9101_v2 = vld [vmem:[#allocation12_spill] sm:$0xff] }
 0x38d   : > { %v5168_v15 = vpop.eup %5167  ;;  %v578_v48 = vadd.f32 %v9099_v56, %v7642_v24  ;;  %5187 = vrcp.f32 %v3110_v58  ;;  %3448 = vadd.xlane.f32.xlu1 %v3447_v44  ;;  %v3341_v40 = vmul.f32 %v7815_v63, %v5166_v13  ;;  %v7970_v51 = vmul.f32 0.00390625, %v9100_v39  ;;  %v9102_v13 = vld [vmem:[#allocation30_spill] sm:$0xff] }
 0x38e   : > { %v5170_v23 = vpop.eup %5169  ;;  %5189 = vpow2.f32 %v4592_v1  ;;  %v3113_v30 = vadd.f32 1.0, %v5168_v15  ;;  %v3474_v55 = vadd.f32 %v3356_v29, %v3355_v6  ;;  %v735_v37 = vadd.f32 1.0, %v9101_v2 }
 0x38f   : > { %v5172_v52 = vpop.eup %5171  ;;  %5191 = vrcp.f32 %v732_v60  ;;  %v3114_v38 = vadd.f32 1.0, %v5170_v23  ;;  %v522_v24 = vmul.f32 %v7751_v21, %v7960_v19  ;;  %v4603_v58 = vmul.f32 -1.442695, %v592_v59  ;;  %v9103_v60 = vld [vmem:[#allocation31_spill] sm:$0xff] }
 0x390   : > { %v5174_v3 = vpop.eup %5173  ;;  %5193 = vrcp.f32 %v3113_v30  ;;  %v3342_v44 = vmul.f32 %v7820_v27, %v5172_v52  ;;  %3475 = vadd.xlane.f32.xlu0 %v3474_v55  ;;  %v4589_v63 = vmul.f32 -1.442695, %v578_v48  ;;  %v587_v6 = vadd.f32 %v9102_v13, %v7882_v22  ;;  %v9104_v30 = vld [vmem:[#allocation54_spill] sm:$0xff] }
 0x391   : > { %v7976_v1 = vpop.eup %5175  ;;  %v580_v35 = vadd.f32 %v9103_v60, %v7746_v18  ;;  %5195 = vrcp.f32 %v3114_v38  ;;  %v4596_v15 = vmul.f32 -1.442695, %v585_v9  ;;  %v3345_v21 = vmul.f32 %v7826_v16, %v5174_v3  ;;  %v9105_v22 = vld [vmem:[#allocation78_spill] sm:$0xff] }
 0x392   : > { %v5178_v29 = vpop.eup %5177  ;;  %5197 = vpow2.f32 %v4593_v57  ;;  %v3453_v23 = vadd.f32 %v3342_v44, %v3341_v40  ;;  %v7985_v27 = vmul.f32 %v7790_v41, %v7955_v4  ;;  %v7988_v48 = vmul.f32 0.00390625, %v9104_v30  ;;  %v9106_v18 = vld [vmem:[#allocation18_spill] sm:$0xff] }
 0x393   : > { %v5180_v59 = vpop.eup %5179  ;;  %5199 = vrcp.f32 %v735_v37  ;;  %v737_v55 = vadd.f32 1.0, %v9105_v22  ;;  %v733_v39 = vadd.f32 1.0, %v9106_v18  ;;  %v602_v57 = vadd.f32 %v9093_v31, %v522_v24  ;;  %v9107_v40 = vld [vmem:[#allocation58_spill] sm:$0xff] }
 0x394   : > { %v5182_v52 = vpop.eup %5181  ;;  %5201 = vpow2.f32 %v4603_v58  ;;  %3454 = vadd.xlane.f32.xlu1 %v3453_v23  ;;  %v3346_v16 = vmul.f32 %v7846_v49, %v5180_v59  ;;  %v7995_v2 = vmul.f32 0.00390625, %v9107_v40  ;;  %v4598_v38 = vmul.f32 -1.442695, %v587_v6  ;;  %v9108_v23 = vld [vmem:[#allocation59_spill] sm:$0xff] }
 0x395   : > { %v5184_v9 = vpop.eup %5183  ;;  %5203 = vpow2.f32 %v4589_v63  ;;  %v4591_v3 = vmul.f32 -1.442695, %v580_v35  ;;  %v589_v37 = vadd.f32 %v9082_v46, %v7916_v7  ;;  %v3349_v22 = vmul.f32 %v7852_v45, %v5182_v52 }
 0x396   : > { %v5186_v44 = vpop.eup %5185  ;;  %5205 = vpow2.f32 %v4596_v15  ;;  %v3459_v30 = vadd.f32 %v3346_v16, %v3345_v21  ;;  %v514_v24 = vmul.f32 %v7834_v20, %v7970_v51  ;;  %v8004_v49 = vmul.f32 %v7878_v26, %v7988_v48 }
 0x397   : > { %v5188_v31 = vpop.eup %5187  ;;  %5207 = vrcp.f32 %v737_v55  ;;  %v739_v58 = vadd.f32 1.0, %v5178_v29  ;;  %v4613_v6 = vmul.f32 -1.442695, %v602_v57  ;;  %v584_v35 = vadd.f32 %v9087_v14, %v7838_v34 }
 0x398   : > { %v5190_v63 = vpop.eup %5189  ;;  %5209 = vrcp.f32 %v733_v39  ;;  %3460 = vadd.xlane.f32.xlu1 %v3459_v30  ;;  %v3350_v7 = vmul.f32 %v7861_v42, %v5188_v31  ;;  %v8011_v15 = vmul.f32 %v7901_v50, %v7995_v2  ;;  %v8014_v21 = vmul.f32 0.00390625, %v9108_v23  ;;  %v9110_v30 = vld [vmem:[#allocation62_spill] sm:$0xff] }
 0x399   : > { %v5192_v45 = vpop.eup %5191  ;;  %v734_v59 = vadd.f32 1.0, %v5184_v9  ;;  %5211 = vpow2.f32 %v4591_v3  ;;  %v4600_v55 = vmul.f32 -1.442695, %v589_v37  ;;  %v591_v52 = vadd.f32 %v9092_v47, %v7940_v0 }
 0x39a   : > { %v5194_v29 = vpop.eup %5193  ;;  %5213 = vpow2.f32 %v4598_v38  ;;  %v3465_v34 = vadd.f32 %v3350_v7, %v3349_v22  ;;  %v586_v42 = vadd.f32 %v9089_v28, %v7905_v61  ;;  %v741_v39 = vadd.f32 1.0, %v5190_v63  ;;  %v9109_v38 = vld [vmem:[#allocation48_spill] sm:$0xff] }
 0x39b   : > { %v5196_v18 = vpop.eup %5195  ;;  %5215 = vrcp.f32 %v739_v58  ;;  %v3353_v57 = vmul.f32 %v7870_v5, %v5194_v29  ;;  %v4595_v40 = vmul.f32 -1.442695, %v584_v35  ;;  %v852_v3 = vmul.f32 %v5192_v45, %v9109_v38  ;;  %v9112_v58 = vld [vmem:[#allocation63_spill] sm:$0xff]  ;;  %v9115_v45 = vld [vmem:[#allocation38_spill] sm:$0xff] }
 0x39c   : > { %v5198_v16 = vpop.eup %5197  ;;  %5217 = vpow2.f32 %v4613_v6  ;;  %3466 = vadd.xlane.f32.xlu1 %v3465_v34  ;;  %v3354_v9 = vmul.f32 %v7885_v36, %v5196_v18  ;;  %v8024_v0 = vmul.f32 0.00390625, %v9110_v30  ;;  %v594_v22 = vadd.f32 %v9087_v14, %v514_v24  ;;  %v9113_v36 = vld [vmem:[#allocation64_spill] sm:$0xff]  ;;  %v9116_v34 = vld [vmem:[#allocation53_spill] sm:$0xff] }
 0x39d   : > { %v5200_v37 = vpop.eup %5199  ;;  %5219 = vrcp.f32 %v734_v59  ;;  %v736_v61 = vadd.f32 1.0, %v5186_v44  ;;  %v8030_v5 = vmul.f32 0.00390625, %v9112_v58  ;;  %v4602_v63 = vmul.f32 -1.442695, %v591_v52  ;;  %v8042_v52 = vld [vmem:[%s8735_s1 + $0x38] sm:$0xff] }
 0x39e   : > { %9111 = vst [vmem:[#allocation87_spill] sm:$0xff] %v8024_v0  ;;  %v8027_v31 = vpop.eup %5201  ;;  %5221 = vpow2.f32 %v4600_v55  ;;  %v3471_v6 = vadd.f32 %v3354_v9, %v3353_v57  ;;  %v8033_v7 = vmul.f32 0.00390625, %v9113_v36  ;;  %v743_v23 = vadd.f32 1.0, %v9115_v45  ;;  %v9117_v45 = vld [vmem:[#allocation56_spill] sm:$0xff] }
 0x39f   : > { %v5204_v35 = vpop.eup %5203  ;;  %v595_v29 = vadd.f32 %v9098_v62, %v7985_v27  ;;  %5223 = vrcp.f32 %v741_v39  ;;  %v4597_v44 = vmul.f32 -1.442695, %v586_v42  ;;  %v932_v59 = vcombine.high %v852_v3, %v852_v3  ;;  %v8051_v42 = vld [vmem:[%s8735_s1 + $0x30] sm:$0xff] }
 0x3a0   : > { %9114 = vst [vmem:[#allocation14_spill] sm:$0xff] %v8033_v7  ;;  %v5206_v24 = vpop.eup %5205  ;;  %5225 = vpow2.f32 %v4595_v40  ;;  %3472 = vadd.xlane.f32.xlu1 %v3471_v6  ;;  %v855_v18 = vmul.f32 %v5200_v37, %v9116_v34  ;;  %v519_v57 = vmul.f32 %v8042_v52, %v8014_v21  ;;  %v4605_v9 = vmul.f32 -1.442695, %v594_v22 }
 0x3a1   : > { %v5208_v55 = vpop.eup %5207  ;;  %5227 = vrcp.f32 %v736_v61  ;;  %v588_v27 = vadd.f32 %v9099_v56, %v7932_v25  ;;  %v8055_v40 = vmul.f32 %v8051_v42, %v8024_v0  ;;  %v8059_v38 = vmul.f32 %v7699_v10, %v8030_v5  ;;  %v9118_v0 = vld [vmem:[#allocation67_spill] sm:$0xff] }
 0x3a2   : > { %v5210_v39 = vpop.eup %5209  ;;  %v738_v37 = vadd.f32 1.0, %v5204_v35  ;;  %5229 = vpow2.f32 %v4602_v63  ;;  %v8063_v25 = vmul.f32 %v7742_v33, %v8033_v7  ;;  %v4606_v22 = vmul.f32 -1.442695, %v595_v29 }
 0x3a3   : > { %v5212_v30 = vpop.eup %5211  ;;  %5231 = vrcp.f32 %v743_v23  ;;  %v745_v61 = vadd.f32 1.0, %v5206_v24  ;;  %v972_v6 = vcombine.low %v852_v3, %v932_v59  ;;  %v935_v36 = vcombine.high %v855_v18, %v855_v18  ;;  %v9119_v3 = vld [vmem:[#allocation46_spill] sm:$0xff]  ;;  %v9120_v59 = vld [vmem:[#allocation68_spill] sm:$0xff] }
 0x3a4   : > { %v5214_v58 = vpop.eup %5213  ;;  %5233 = vpow2.f32 %v4597_v44  ;;  %v857_v34 = vmul.f32 %v5208_v55, %v9117_v45  ;;  %v8067_v10 = vmul.f32 0.00390625, %v9118_v0  ;;  %v4599_v63 = vmul.f32 -1.442695, %v588_v27 }
 0x3a5   : > { %v5216_v19 = vpop.eup %5215  ;;  %5235 = vpow2.f32 %v4605_v9  ;;  %v590_v35 = vadd.f32 %v9103_v60, %v7947_v53  ;;  %v597_v23 = vadd.f32 %v9102_v13, %v8004_v49  ;;  %v740_v29 = vadd.f32 1.0, %v5212_v30  ;;  %v9122_v30 = vld [vmem:[#allocation69_spill] sm:$0xff] }
 0x3a6   : > { %v8071_v33 = vpop.eup %5217  ;;  %5237 = vrcp.f32 %v738_v37  ;;  %v853_v24 = vmul.f32 %v5210_v39, %v9119_v3  ;;  %1013 = vperm.xlu0 %4772, %v972_v6   ;;  %v8077_v55 = vmul.f32 0.00390625, %v9120_v59  ;;  %v742_v0 = vadd.f32 1.0, %v5198_v16  ;;  %v8085_v3 = vpop.xlane.xlu0 %3361 }
 0x3a7   : > { %v5220_v44 = vpop.eup %5219  ;;  %5239 = vrcp.f32 %v745_v61  ;;  %v747_v9 = vadd.f32 1.0, %v5214_v58  ;;  %v975_v53 = vcombine.low %v855_v18, %v935_v36  ;;  %v937_v45 = vcombine.high %v857_v34, %v857_v34  ;;  %9123 = vst [vmem:[#allocation16_spill] sm:$0xff] %v8085_v3 }
 0x3a8   : > { %9121 = vst [vmem:[#allocation60_spill] sm:$0xff] %v8077_v55  ;;  %v5222_v27 = vpop.eup %5221  ;;  %5241 = vpow2.f32 %v4606_v22  ;;  %v859_v37 = vmul.f32 %v5216_v19, %v9047_v32  ;;  %v525_v49 = vmul.f32 %v7790_v41, %v8067_v10  ;;  %v8083_v39 = vmul.f32 0.00390625, %v9122_v30  ;;  %v9124_v19 = vld [vmem:[#allocation8_spill] sm:$0xff] }
 0x3a9   : > { %v5224_v7 = vpop.eup %5223  ;;  %5243 = vpow2.f32 %v4599_v63  ;;  %v4601_v6 = vmul.f32 -1.442695, %v590_v35  ;;  %v4608_v61 = vmul.f32 -1.442695, %v597_v23  ;;  %v599_v22 = vadd.f32 %v9082_v46, %v519_v57 }
 0x3aa   : > { %v5226_v16 = vpop.eup %5225  ;;  %5245 = vrcp.f32 %v740_v29  ;;  %v933_v18 = vcombine.high %v853_v24, %v853_v24  ;;  %1022 = vperm.xlu0 %4772, %v975_v53   ;;  %v524_v32 = vmul.f32 %v7834_v20, %v8077_v55  ;;  %v749_v41 = vadd.f32 1.0, %v5222_v27 }
 0x3ab   : > { %v5228_v58 = vpop.eup %5227  ;;  %5247 = vrcp.f32 %v747_v9  ;;  %v854_v36 = vmul.f32 %v5220_v44, %v9124_v19  ;;  %v977_v63 = vcombine.low %v857_v34, %v937_v45  ;;  %v939_v35 = vcombine.high %v859_v37, %v859_v37  ;;  %v8103_v45 = vpop.xlane.xlu0 %3364 }
 0x3ac   : > { %v5230_v59 = vpop.eup %5229  ;;  %5249 = vrcp.f32 %v742_v0  ;;  %v861_v30 = vmul.f32 %v5224_v7, %v7651_v12  ;;  %v8094_v57 = vmul.f32 %v7878_v26, %v8083_v39  ;;  %v744_v29 = vadd.f32 1.0, %v5226_v16  ;;  %v9125_v26 = vld [vmem:[#allocation13_spill] sm:$0xff] }
 0x3ad   : > { %v5232_v23 = vpop.eup %5231  ;;  %v596_v53 = vadd.f32 %v9089_v28, %v8011_v15  ;;  %5251 = vpow2.f32 %v4601_v6  ;;  %v4610_v9 = vmul.f32 -1.442695, %v599_v22  ;;  %v601_v44 = vadd.f32 %v9092_v47, %v8059_v38  ;;  %v9126_v15 = vld [vmem:[#allocation9_spill] sm:$0xff]  ;;  %v9128_v38 = vld [vmem:[#allocation71_spill] sm:$0xff] }
 0x3ae   : > { %v5234_v20 = vpop.eup %5233  ;;  %5253 = vpow2.f32 %v4608_v61  ;;  %v973_v34 = vcombine.low %v853_v24, %v933_v18  ;;  %1028 = vperm.xlu0 %4772, %v977_v63   ;;  %v751_v12 = vadd.f32 1.0, %v5230_v59  ;;  %v934_v7 = vcombine.high %v854_v36, %v854_v36  ;;  %v9127_v22 = vld [vmem:[#allocation37_spill] sm:$0xff] }
 0x3af   : > { %v8100_v0 = vpop.eup %5235  ;;  %5255 = vrcp.f32 %v749_v41  ;;  %v856_v27 = vmul.f32 %v5228_v58, %v9125_v26  ;;  %v753_v6 = vadd.f32 1.0, %v9126_v15  ;;  %v979_v19 = vcombine.low %v859_v37, %v939_v35 }
 0x3b0   : > { %v5238_v16 = vpop.eup %5237  ;;  %v941_v61 = vcombine.high %v861_v30, %v861_v30  ;;  %v863_v3 = vmul.f32 %v5232_v23, %v9127_v22  ;;  %v8108_v24 = vmul.f32 0.00390625, %v9128_v38  ;;  %v604_v18 = vadd.f32 %v9087_v14, %v524_v32  ;;  %v9129_v32 = vld [vmem:[#allocation84_spill] sm:$0xff] }
 0x3b1   : > { %v5240_v55 = vpop.eup %5239  ;;  %5257 = vrcp.f32 %v744_v29  ;;  %v746_v41 = vadd.f32 1.0, %v5234_v20  ;;  %1016 = vperm.xlu1 %4771, %v973_v34   ;;  %v4607_v58 = vmul.f32 -1.442695, %v596_v53  ;;  %v605_v63 = vadd.f32 %v9098_v62, %v525_v49 }
 0x3b2   : > { %v5242_v59 = vpop.eup %5241  ;;  %5259 = vpow2.f32 %v4610_v9  ;;  %v4612_v26 = vmul.f32 -1.442695, %v601_v44  ;;  %1034 = vperm.xlu0 %4772, %v979_v19   ;;  %v974_v35 = vcombine.low %v854_v36, %v934_v7  ;;  %v936_v23 = vcombine.high %v856_v27, %v856_v27  ;;  %v8118_v36 = vpop.xlane.xlu0 %3367 }
 0x3b3   : > { %v5244_v37 = vpop.eup %5243  ;;  %5261 = vrcp.f32 %v751_v12  ;;  %v858_v15 = vmul.f32 %v5238_v16, %v7610_v43  ;;  %v981_v38 = vcombine.low %v861_v30, %v941_v61  ;;  %v943_v14 = vcombine.high %v863_v3, %v863_v3  ;;  %v9130_v43 = vld [vmem:[#allocation73_spill] sm:$0xff]  ;;  %v9131_v16 = vld [vmem:[#allocation79_spill] sm:$0xff] }
 0x3b4   : > { %v5246_v22 = vpop.eup %5245  ;;  %5263 = vrcp.f32 %v753_v6  ;;  %v865_v29 = vmul.f32 %v5240_v55, %v9129_v32  ;;  %v529_v53 = vmul.f32 %v8042_v52, %v8108_v24  ;;  %v4615_v62 = vmul.f32 -1.442695, %v604_v18 }
 0x3b5   : > { %v5248_v20 = vpop.eup %5247  ;;  %5265 = vrcp.f32 %v746_v41  ;;  %v598_v49 = vadd.f32 %v9099_v56, %v8055_v40  ;;  %1019 = vperm.xlu1 %4771, %v974_v35   ;;  %v8121_v44 = vmul.f32 0.00390625, %v9130_v43  ;;  %v4616_v30 = vmul.f32 -1.442695, %v605_v63 }
 0x3b6   : > { %v5250_v9 = vpop.eup %5249  ;;  %v748_v34 = vadd.f32 1.0, %v5244_v37  ;;  %5267 = vpow2.f32 %v4612_v26  ;;  %1040 = vperm.xlu0 %4772, %v981_v38   ;;  %v755_v12 = vadd.f32 1.0, %v5242_v59  ;;  %v976_v7 = vcombine.low %v856_v27, %v936_v23  ;;  %v9132_v37 = vld [vmem:[#allocation82_spill] sm:$0xff]  ;;  %v8131_v38 = vpop.xlane.xlu0 %3373 }
 0x3b7   : > { %v5252_v55 = vpop.eup %5251  ;;  %v938_v52 = vcombine.high %v858_v15, %v858_v15  ;;  %v860_v6 = vmul.f32 %v5246_v22, %v9131_v16  ;;  %5269 = vpow2.f32 %v4607_v58  ;;  %v983_v40 = vcombine.low %v863_v3, %v943_v14 }
 0x3b8   : > { %v5254_v19 = vpop.eup %5253  ;;  %v945_v61 = vcombine.high %v865_v29, %v865_v29  ;;  %v867_v18 = vmul.f32 %v5248_v20, %v7843_v54  ;;  %5271 = vpow2.f32 %v4615_v62  ;;  %v4609_v35 = vmul.f32 -1.442695, %v598_v49  ;;  %v5441_v62 = vld [vmem:[%s8735_s1 + $0x48] sm:$0xff] }
 0x3b9   : > { %v5256_v41 = vpop.eup %5255  ;;  %v607_v63 = vadd.f32 %v9102_v13, %v8094_v57  ;;  %v600_v26 = vadd.f32 %v9103_v60, %v8063_v25  ;;  %1025 = vperm.xlu1 %4771, %v976_v7   ;;  %v752_v27 = vadd.f32 1.0, %v8027_v31  ;;  %5273 = vrcp.f32 %v748_v34  ;;  %v9133_v31 = vld [vmem:[#allocation70_spill] sm:$0xff] }
 0x3ba   : > { %v750_v59 = vadd.f32 1.0, %v5252_v55  ;;  %v862_v58 = vmul.f32 %v5250_v9, %v9132_v37  ;;  %1046 = vperm.xlu0 %4772, %v983_v40   ;;  %5275 = vrcp.f32 %v755_v12  ;;  %v757_v54 = vadd.f32 1.0, %v5254_v19  ;;  %v9134_v12 = vld [vmem:[#allocation83_spill] sm:$0xff] }
 0x3bb   : > { %v5258_v3 = vpop.eup %5257  ;;  %v978_v23 = vcombine.low %v858_v15, %v938_v52  ;;  %v940_v22 = vcombine.high %v860_v6, %v860_v6  ;;  %5277 = vpow2.f32 %v4616_v30  ;;  %v985_v13 = vcombine.low %v865_v29, %v945_v61 }
 0x3bc   : > { %v5260_v14 = vpop.eup %5259  ;;  %v947_v57 = vcombine.high %v867_v18, %v867_v18  ;;  %v869_v25 = vmul.f32 %v5256_v41, %v7896_v11  ;;  %v8135_v20 = vmul.f32 0.00390625, %v9133_v31  ;;  %v531_v49 = vmul.f32 %v5441_v62, %v8121_v44  ;;  %v9135_v41 = vld [vmem:[#allocation72_spill] sm:$0xff]  ;;  %v9138_v31 = vld [vmem:[#allocation74_spill] sm:$0xff] }
 0x3bd   : > { %v5262_v32 = vpop.eup %5261  ;;  %5279 = vpow2.f32 %v4609_v35  ;;  %v4611_v15 = vmul.f32 -1.442695, %v600_v26  ;;  %1031 = vperm.xlu1 %4771, %v978_v23   ;;  %v4618_v43 = vmul.f32 -1.442695, %v607_v63  ;;  %v609_v29 = vadd.f32 %v9082_v46, %v529_v53  ;;  %v8150_v53 = vpop.xlane.xlu0 %3379 }
 0x3be   : > { %v5264_v9 = vpop.eup %5263  ;;  %5281 = vrcp.f32 %v750_v59  ;;  %v942_v30 = vcombine.high %v862_v58, %v862_v58  ;;  %1052 = vperm.xlu0 %4772, %v985_v13   ;;  %v759_v34 = vadd.f32 1.0, %v5260_v14  ;;  %v980_v55 = vcombine.low %v860_v6, %v940_v22  ;;  %v9136_v59 = vld [vmem:[#allocation85_spill] sm:$0xff]  ;;  %v9137_v22 = vld [vmem:[#allocation39_spill] sm:$0xff] }
 0x3bf   : > { %v5266_v11 = vpop.eup %5265  ;;  %5283 = vrcp.f32 %v757_v54  ;;  %v864_v7 = vmul.f32 %v5258_v3, %v9134_v12  ;;  %v987_v16 = vcombine.low %v867_v18, %v947_v57  ;;  %v949_v19 = vcombine.high %v869_v25, %v869_v25 }
 0x3c0   : > { %v5268_v52 = vpop.eup %5267  ;;  %5285 = vrcp.f32 %v752_v27  ;;  %v871_v40 = vmul.f32 %v5262_v32, %v7919_v17  ;;  %v526_v61 = vmul.f32 %v7901_v50, %v8135_v20  ;;  %v8147_v35 = vmul.f32 0.00390625, %v9135_v41  ;;  %v9139_v41 = vld [vmem:[#allocation15_spill] sm:$0xff] }
 0x3c1   : > { %v754_v46 = vadd.f32 1.0, %v8100_v0  ;;  %5287 = vpow2.f32 %v4611_v15  ;;  %1037 = vperm.xlu1 %4771, %v980_v55   ;;  %v5270_v6 = vpop.eup %5269  ;;  %v4620_v63 = vmul.f32 -1.442695, %v609_v29  ;;  %v611_v18 = vadd.f32 %v9092_v47, %v531_v49 }
 0x3c2   : > { %5289 = vpow2.f32 %v4618_v43  ;;  %v982_v26 = vcombine.low %v862_v58, %v942_v30  ;;  %1058 = vperm.xlu0 %4772, %v987_v16   ;;  %v8153_v17 = vpop.eup %5271  ;;  %v761_v50 = vadd.f32 1.0, %v5268_v52  ;;  %v944_v27 = vcombine.high %v864_v7, %v864_v7  ;;  %v8165_v43 = vpop.xlane.xlu1 %3358 }
 0x3c3   : > { %5291 = vrcp.f32 %v759_v34  ;;  %v866_v37 = vmul.f32 %v5266_v11, %v9136_v59  ;;  %v5274_v3 = vpop.eup %5273  ;;  %v763_v0 = vadd.f32 1.0, %v7976_v1  ;;  %v989_v54 = vcombine.low %v869_v25, %v949_v19 }
 0x3c4   : > { %v951_v23 = vcombine.high %v871_v40, %v871_v40  ;;  %v873_v14 = vmul.f32 %v5264_v9, %v9137_v22  ;;  %v5276_v13 = vpop.eup %5275  ;;  %5293 = vrcp.f32 %v754_v46  ;;  %v606_v47 = vadd.f32 %v9089_v28, %v526_v61  ;;  %v8167_v28 = vpop.xlane.xlu0 %3385 }
 0x3c5   : > { %v756_v58 = vadd.f32 1.0, %v5270_v6  ;;  %1043 = vperm.xlu1 %4771, %v982_v26   ;;  %v5278_v57 = vpop.eup %5277  ;;  %v528_v32 = vmul.f32 %v8051_v42, %v8147_v35  ;;  %v8162_v62 = vmul.f32 0.00390625, %v9138_v31  ;;  %5295 = vpow2.f32 %v4620_v63 }
 0x3c6   : > { %v4622_v49 = vmul.f32 -1.442695, %v611_v18  ;;  %1064 = vperm.xlu0 %4772, %v989_v54   ;;  %5297 = vrcp.f32 %v761_v50  ;;  %v984_v25 = vcombine.low %v864_v7, %v944_v27  ;;  %v946_v15 = vcombine.high %v866_v37, %v866_v37  ;;  %v8176_v6 = vpop.xlane.xlu1 %3370 }
 0x3c7   : > { %v5280_v1 = vpop.eup %5279  ;;  %v868_v9 = vmul.f32 %v5274_v3, %v7908_v8  ;;  %5299 = vrcp.f32 %v763_v0  ;;  %v991_v30 = vcombine.low %v871_v40, %v951_v23  ;;  %v953_v42 = vcombine.high %v873_v14, %v873_v14  ;;  %v5442_v8 = vld [vmem:[%s8735_s1 + $0x40] sm:$0xff]  ;;  %v9140_v0 = vld [vmem:[#allocation41_spill] sm:$0xff] }
 0x3c8   : > { %v5282_v29 = vpop.eup %5281  ;;  %v875_v11 = vmul.f32 %v5276_v13, %v7955_v4  ;;  %v4617_v55 = vmul.f32 -1.442695, %v606_v47  ;;  %5301 = vrcp.f32 %v756_v58  ;;  %v608_v12 = vadd.f32 %v9099_v56, %v528_v32  ;;  %v8180_v3 = vpop.xlane.xlu0 %3391 }
 0x3c9   : > { %v5284_v34 = vpop.eup %5283  ;;  %1049 = vperm.xlu1 %4771, %v984_v25   ;;  %v530_v52 = vmul.f32 %v5442_v8, %v8162_v62  ;;  %v758_v16 = vadd.f32 1.0, %v5280_v1  ;;  %5303 = vpow2.f32 %v4622_v49  ;;  %v765_v40 = vadd.f32 1.0, %v5278_v57 }
 0x3ca   : > { %v5286_v7 = vpop.eup %5285  ;;  %1070 = vperm.xlu0 %4772, %v991_v30   ;;  %v986_v61 = vcombine.low %v866_v37, %v946_v15  ;;  %v948_v4 = vcombine.high %v868_v9, %v868_v9  ;;  %v870_v46 = vmul.f32 %v5282_v29, %v9139_v41  ;;  %v993_v63 = vcombine.low %v873_v14, %v953_v42  ;;  %v8185_v49 = vpop.xlane.xlu1 %3376 }
 0x3cb   : > { %v5288_v19 = vpop.eup %5287  ;;  %v955_v18 = vcombine.high %v875_v11, %v875_v11  ;;  %v877_v26 = vmul.f32 %v5284_v34, %v7988_v48  ;;  %5305 = vpow2.f32 %v4617_v55  ;;  %v4619_v27 = vmul.f32 -1.442695, %v608_v12 }
 0x3cc   : > { %v5290_v56 = vpop.eup %5289  ;;  %v610_v59 = vadd.f32 %v9103_v60, %v530_v52  ;;  %5307 = vrcp.f32 %v758_v16  ;;  %v760_v37 = vadd.f32 1.0, %v5288_v19  ;;  %v872_v54 = vmul.f32 %v5286_v7, %v9140_v0  ;;  %v8188_v30 = vpop.xlane.xlu0 %3397 }
 0x3cd   : > { %v5292_v50 = vpop.eup %5291  ;;  %1055 = vperm.xlu1 %4771, %v986_v61   ;;  %5309 = vrcp.f32 %v765_v40  ;;  %v767_v22 = vadd.f32 1.0, %v5290_v56  ;;  %v988_v14 = vcombine.low %v868_v9, %v948_v4  ;;  %v950_v13 = vcombine.high %v870_v46, %v870_v46  ;;  %v9141_v4 = vld [vmem:[#allocation91_spill] sm:$0xff] }
 0x3ce   : > { %1076 = vperm.xlu0 %4772, %v993_v63   ;;  %v5294_v23 = vpop.eup %5293  ;;  %v762_v48 = vadd.f32 1.0, %v8071_v33  ;;  %v995_v58 = vcombine.low %v875_v11, %v955_v18  ;;  %v957_v57 = vcombine.high %v877_v26, %v877_v26  ;;  %v879_v60 = vmul.f32 %v5292_v50, %v8014_v21  ;;  %v8193_v16 = vpop.xlane.xlu1 %3382 }
 0x3cf   : > { %v5296_v47 = vpop.eup %5295  ;;  %5311 = vpow2.f32 %v4619_v27  ;;  %v4621_v31 = vmul.f32 -1.442695, %v610_v59  ;;  %v952_v25 = vcombine.high %v872_v54, %v872_v54  ;;  %v990_v29 = vcombine.low %v870_v46, %v950_v13 }
 0x3d0   : > { %v5298_v32 = vpop.eup %5297  ;;  %5313 = vrcp.f32 %v760_v37  ;;  %v769_v9 = vadd.f32 1.0, %v5296_v47  ;;  %v874_v33 = vmul.f32 %v5294_v23, %v7970_v51  ;;  %v997_v21 = vcombine.low %v877_v26, %v957_v57  ;;  %v8196_v46 = vpop.xlane.xlu0 %3403  ;;  %v9142_v26 = vld [vmem:[#allocation87_spill] sm:$0xff] }
 0x3d1   : > { %1061 = vperm.xlu1 %4771, %v988_v14   ;;  %v5300_v1 = vpop.eup %5299  ;;  %5315 = vrcp.f32 %v767_v22  ;;  %v959_v11 = vcombine.high %v879_v60, %v879_v60  ;;  %v881_v34 = vmul.f32 %v5298_v32, %v8030_v5  ;;  %v764_v55 = vadd.f32 1.0, %v8153_v17 }
 0x3d2   : > { %1082 = vperm.xlu0 %4772, %v995_v58   ;;  %v5302_v15 = vpop.eup %5301  ;;  %5317 = vrcp.f32 %v762_v48  ;;  %v992_v12 = vcombine.low %v872_v54, %v952_v25  ;;  %v954_v52 = vcombine.high %v874_v33, %v874_v33  ;;  %v883_v41 = vmul.f32 %v5300_v1, %v9141_v4  ;;  %v8200_v54 = vpop.xlane.xlu1 %3388  ;;  %v9143_v48 = vld [vmem:[#allocation14_spill] sm:$0xff] }
 0x3d3   : > { %v5304_v42 = vpop.eup %5303  ;;  %5319 = vpow2.f32 %v4621_v31  ;;  %v876_v51 = vmul.f32 %v5302_v15, %v7995_v2  ;;  %v999_v40 = vcombine.low %v879_v60, %v959_v11  ;;  %v961_v61 = vcombine.high %v881_v34, %v881_v34  ;;  %v9144_v25 = vld [vmem:[#allocation86_spill] sm:$0xff] }
 0x3d4   : > { %5321 = vrcp.f32 %v769_v9  ;;  %v771_v8 = vadd.f32 1.0, %v5304_v42  ;;  %v994_v63 = vcombine.low %v874_v33, %v954_v52  ;;  %v963_v59 = vcombine.high %v883_v41, %v883_v41  ;;  %v8203_v57 = vpop.xlane.xlu0 %3409 }
 0x3d5   : > { %1067 = vperm.xlu1 %4771, %v990_v29   ;;  %v5306_v7 = vpop.eup %5305  ;;  %5323 = vrcp.f32 %v764_v55  ;;  %v956_v18 = vcombine.high %v876_v51, %v876_v51  ;;  %v1001_v27 = vcombine.low %v881_v34, %v961_v61  ;;  %v5550_v52 = vmov 1985246804   ;;  %v9145_v61 = vld [vmem:[#allocation60_spill] sm:$0xff] }
 0x3d6   : > { %1088 = vperm.xlu0 %4772, %v997_v21   ;;  %v5308_v19 = vpop.eup %5307  ;;  %v766_v17 = vadd.f32 1.0, %v5306_v7  ;;  %5325 = vrcp.f32 %v771_v8  ;;  %v1003_v60 = vcombine.low %v883_v41, %v963_v59  ;;  %v3395_v33 = vpop.xlane.xlu1 %3394  ;;  %v5549_v7 = vmov 839922192  }
 0x3d7   : > { %v5310_v5 = vpop.eup %5309  ;;  %v878_v2 = vmul.f32 %v5308_v19, %v9142_v26  ;;  %v996_v13 = vcombine.low %v876_v51, %v956_v18  ;;  %v3558_v8 = vunpack.c.l.s4 %v5549_v7  ;;  %v3565_v51 = vunpack.c.l.s4 %v5550_v52 }
 0x3d8   : > { %v885_v37 = vmul.f32 %v5310_v5, %v8067_v10  ;;  %5327 = vrcp.f32 %v766_v17 }
 0x3d9   : > { %1073 = vperm.xlu1 %4771, %v992_v12   ;;  %v5312_v56 = vpop.eup %5311  ;;  %v958_v47 = vcombine.high %v878_v2, %v878_v2  ;;  %v8208_v12 = vpop.xlane.xlu0 %3415  ;;  %v3559_v18 = vunpack.c.0.s8 %v3558_v8  ;;  %v3566_v26 = vunpack.c.0.s8 %v3565_v51 }
 0x3da   : > { %1094 = vperm.xlu0 %4772, %v999_v40   ;;  %v5314_v50 = vpop.eup %5313  ;;  %v768_v22 = vadd.f32 1.0, %v5312_v56  ;;  %v965_v32 = vcombine.high %v885_v37, %v885_v37  ;;  %v3401_v56 = vpop.xlane.xlu1 %3400 }
 0x3db   : > { %v5316_v0 = vpop.eup %5315  ;;  %v880_v58 = vmul.f32 %v5314_v50, %v9143_v48  ;;  %v998_v9 = vcombine.low %v878_v2, %v958_v47 }
 0x3dc   : > { %v5318_v23 = vpop.eup %5317  ;;  %v887_v31 = vmul.f32 %v5316_v0, %v8083_v39  ;;  %5329 = vrcp.f32 %v768_v22  ;;  %v1005_v21 = vcombine.low %v885_v37, %v965_v32  ;;  %v1132_v39 = vlaneseq  ;;  %v9146_v0 = vld [vmem:[#allocation16_spill] sm:$0xff] }
 0x3dd   : > { %1079 = vperm.xlu1 %4771, %v994_v63   ;;  %v5320_v14 = vpop.eup %5319  ;;  %v882_v15 = vmul.f32 %v5318_v23, %v9144_v25  ;;  %v960_v29 = vcombine.high %v880_v58, %v880_v58  ;;  %v8216_v59 = vpop.xlane.xlu0 %3421  ;;  %v3478_v23 = vmul.f32 0.00390625, %v9146_v0 }
 0x3de   : > { %1100 = vperm.xlu0 %4772, %v1001_v27   ;;  %v5322_v10 = vpop.eup %5321  ;;  %v770_v1 = vadd.f32 1.0, %v5320_v14  ;;  %v967_v11 = vcombine.high %v887_v31, %v887_v31  ;;  %v8213_v63 = vshrl.u32 %v1132_v39, 7 }
 0x3df   : > { %v5324_v42 = vpop.eup %5323  ;;  %v889_v34 = vmul.f32 %v5322_v10, %v8108_v24  ;;  %v1000_v19 = vcombine.low %v880_v58, %v960_v29  ;;  %v962_v40 = vcombine.high %v882_v15, %v882_v15  ;;  %v3487_v10 = vmul.f32 0.00390625, %v8200_v54 }
 0x3e0   : > { %v5326_v55 = vpop.eup %5325  ;;  %5331 = vrcp.f32 %v770_v1  ;;  %v884_v4 = vmul.f32 %v5324_v42, %v9145_v61  ;;  %v1007_v5 = vcombine.low %v887_v31, %v967_v11  ;;  %v3489_v11 = vmul.f32 0.00390625, %v3395_v33 }
 0x3e1   : > { %1085 = vperm.xlu1 %4771, %v996_v13   ;;  %v969_v17 = vcombine.high %v889_v34, %v889_v34  ;;  %v891_v24 = vmul.f32 %v5326_v55, %v8121_v44  ;;  %v1002_v2 = vcombine.low %v882_v15, %v962_v40  ;;  %v8220_v44 = vsub.s32 %v3559_v18, %v8213_v63  ;;  %v8229_v25 = vpop.xlane.xlu0 %3427 }
 0x3e2   : > { %1106 = vperm.xlu0 %4772, %v1003_v60   ;;  %v5328_v41 = vpop.eup %5327  ;;  %v964_v50 = vcombine.high %v884_v4, %v884_v4  ;;  %v8223_v13 = vsub.s32 %v3566_v26, %v8213_v63  ;;  %v3477_v54 = vmul.f32 0.00390625, %v8165_v43  ;;  %v3479_v61 = vmul.f32 0.00390625, %v8103_v45 }
 0x3e3   : > { %v886_v27 = vmul.f32 %v5328_v41, %v8135_v20  ;;  %v1009_v22 = vcombine.low %v889_v34, %v969_v17  ;;  %v971_v14 = vcombine.high %v891_v24, %v891_v24  ;;  %v3407_v20 = vpop.xlane.xlu1 %3406  ;;  %v3577_v32 = vrot.slane %v3478_v23, %v8220_v44 }
 0x3e4   : > { %v1004_v47 = vcombine.low %v884_v4, %v964_v50  ;;  %v3584_v31 = vrot.slane %v3478_v23, %v8223_v13  ;;  %v3731_v51 = vrot.slane %v3489_v11, %v8220_v44  ;;  %v3563_v40 = vrot.slane %v3477_v54, %v8220_v44 }
 0x3e5   : > { %1091 = vperm.xlu1 %4771, %v998_v9   ;;  %v966_v48 = vcombine.high %v886_v27, %v886_v27  ;;  %v1011_v1 = vcombine.low %v891_v24, %v971_v14  ;;  %v3570_v33 = vrot.slane %v3477_v54, %v8223_v13  ;;  %v3493_v24 = vmul.f32 0.00390625, %v3407_v20 }
 0x3e6   : > { %1112 = vperm.xlu0 %4772, %v1005_v21   ;;  %v5330_v37 = vpop.eup %5329  ;;  %v4118_v42 = vcombine.low %v3577_v32, %v3584_v31  ;;  %v3710_v21 = vrot.slane %v3487_v10, %v8223_v13  ;;  %v8235_v8 = vpop.xlane.xlu0 %3433  ;;  %v3591_v26 = vrot.slane %v3479_v61, %v8220_v44  ;;  %v3480_v50 = vmul.f32 0.00390625, %v8118_v36 }
 0x3e7   : > { %v888_v58 = vmul.f32 %v5330_v37, %v8147_v35  ;;  %v1006_v15 = vcombine.low %v886_v27, %v966_v48  ;;  %v3703_v35 = vrot.slane %v3487_v10, %v8220_v44  ;;  %v3787_v27 = vrot.slane %v3493_v24, %v8220_v44 }
 0x3e8   : > { %v3794_v37 = vrot.slane %v3493_v24, %v8223_v13  ;;  %v3605_v14 = vrot.slane %v3480_v50, %v8220_v44  ;;  %v3481_v48 = vmul.f32 0.00390625, %v8176_v6 }
 0x3e9   : > { %1097 = vperm.xlu1 %4771, %v1000_v19   ;;  %v968_v9 = vcombine.high %v888_v58, %v888_v58  ;;  %v3413_v34 = vpop.xlane.xlu1 %3412  ;;  %v4127_v52 = vcombine.low %v3703_v35, %v3710_v21  ;;  %v3491_v19 = vmul.f32 0.00390625, %v3401_v56  ;;  %v4117_v56 = vcombine.low %v3563_v40, %v3570_v33 }
 0x3ea   : > { %1118 = vperm.xlu0 %4772, %v1007_v5   ;;  %v5332_v60 = vpop.eup %5331  ;;  %v3495_v0 = vmul.f32 0.00390625, %v3413_v34  ;;  %v4133_v20 = vcombine.low %v3787_v27, %v3794_v37  ;;  %v3619_v10 = vrot.slane %v3481_v48, %v8220_v44 }
 0x3eb   : > { %v890_v29 = vmul.f32 %v5332_v60, %v8162_v62  ;;  %v1008_v55 = vcombine.low %v888_v58, %v968_v9  ;;  %v3738_v62 = vrot.slane %v3489_v11, %v8223_v13  ;;  %v3759_v5 = vrot.slane %v3491_v19, %v8220_v44 }
 0x3ec   : > { %v3766_v17 = vrot.slane %v3491_v19, %v8223_v13  ;;  %v3815_v36 = vrot.slane %v3495_v0, %v8220_v44  ;;  %v3822_v60 = vrot.slane %v3495_v0, %v8223_v13 }
 0x3ed   : > { %1103 = vperm.xlu1 %4771, %v1002_v2   ;;  %v970_v7 = vcombine.high %v890_v29, %v890_v29  ;;  %v4129_v41 = vcombine.low %v3731_v51, %v3738_v62  ;;  %v8244_v18 = vpop.xlane.xlu0 %3439  ;;  %v3598_v2 = vrot.slane %v3479_v61, %v8223_v13  ;;  %v3484_v61 = vmul.f32 0.00390625, %v8150_v53 }
 0x3ee   : > { %1124 = vperm.xlu0 %4772, %v1009_v22   ;;  %v4131_v45 = vcombine.low %v3759_v5, %v3766_v17  ;;  %v4135_v6 = vcombine.low %v3815_v36, %v3822_v60 }
 0x3ef   : > { %v1010_v4 = vcombine.low %v890_v29, %v970_v7  ;;  %v4119_v22 = vcombine.low %v3591_v26, %v3598_v2  ;;  %v3661_v24 = vrot.slane %v3484_v61, %v8220_v44  ;;  %v3485_v26 = vmul.f32 0.00390625, %v8193_v16 }
 0x3f1   : > { %1109 = vperm.xlu1 %4771, %v1004_v47   ;;  %v3419_v43 = vpop.xlane.xlu1 %3418  ;;  %v3612_v47 = vrot.slane %v3480_v50, %v8223_v13  ;;  %v3675_v0 = vrot.slane %v3485_v26, %v8220_v44 }
 0x3f2   : > { %1130 = vperm.xlu0 %4772, %v1011_v1   ;;  %v3497_v32 = vmul.f32 0.00390625, %v3419_v43  ;;  %v3626_v1 = vrot.slane %v3481_v48, %v8223_v13 }
 0x3f3   : > { %v4120_v31 = vcombine.low %v3605_v14, %v3612_v47 }
 0x3f4   : > { %v3843_v29 = vrot.slane %v3497_v32, %v8220_v44  ;;  %v4121_v11 = vcombine.low %v3619_v10, %v3626_v1  ;;  %v3490_v10 = vmul.f32 0.00390625, %v8188_v30 }
 0x3f5   : > { %1115 = vperm.xlu1 %4771, %v1006_v15   ;;  %v8254_v58 = vpop.xlane.xlu0 %3445  ;;  %v3482_v15 = vmul.f32 0.00390625, %v8131_v38 }
 0x3f6   : > { %4161 = vperm.xlu0 %4772, %v4118_v42   ;;  %v3850_v42 = vrot.slane %v3497_v32, %v8223_v13 }
 0x3f7   : > { %v3633_v34 = vrot.slane %v3482_v15, %v8220_v44  ;;  %v3640_v54 = vrot.slane %v3482_v15, %v8223_v13 }
 0x3f8   : > { %v4137_v7 = vcombine.low %v3843_v29, %v3850_v42 }
 0x3f9   : > { %1121 = vperm.xlu1 %4771, %v1008_v55   ;;  %v3425_v23 = vpop.xlane.xlu1 %3424  ;;  %v3483_v55 = vmul.f32 0.00390625, %v8185_v49  ;;  %v4122_v19 = vcombine.low %v3633_v34, %v3640_v54 }
 0x3fa   : > { %4188 = vperm.xlu0 %4772, %v4127_v52   ;;  %v3499_v35 = vmul.f32 0.00390625, %v3425_v23  ;;  %v3682_v23 = vrot.slane %v3485_v26, %v8223_v13 }
 0x3fb   : > { %v3647_v40 = vrot.slane %v3483_v55, %v8220_v44  ;;  %v3654_v33 = vrot.slane %v3483_v55, %v8223_v13 }
 0x3fc   : > { %v3871_v38 = vrot.slane %v3499_v35, %v8220_v44  ;;  %v3878_v52 = vrot.slane %v3499_v35, %v8223_v13  ;;  %v4125_v16 = vcombine.low %v3675_v0, %v3682_v23  ;;  %v3752_v35 = vrot.slane %v3490_v10, %v8223_v13 }
 0x3fd   : > { %1127 = vperm.xlu1 %4771, %v1010_v4   ;;  %v3452_v21 = vpop.xlane.xlu0 %3451  ;;  %v4123_v17 = vcombine.low %v3647_v40, %v3654_v33  ;;  %v3502_v40 = vmul.f32 0.00390625, %v8235_v8 }
 0x3fe   : > { %4194 = vperm.xlu0 %4772, %v4129_v41   ;;  %v3508_v51 = vmul.f32 0.00390625, %v3452_v21  ;;  %v4139_v43 = vcombine.low %v3871_v38, %v3878_v52  ;;  %v3492_v21 = vmul.f32 0.00390625, %v8196_v46  ;;  %v8307_v52 = vand.u32 127, %v1132_v39 }
 0x3ff   : > { %v3913_v26 = vrot.slane %v3502_v40, %v8220_v44 }
 0x400   : > { %v3997_v41 = vrot.slane %v3508_v51, %v8220_v44  ;;  %v4004_v5 = vrot.slane %v3508_v51, %v8223_v13  ;;  %v3780_v46 = vrot.slane %v3492_v21, %v8223_v13  ;;  %v8323_v8 = vsub.s32 %v8307_v52, %v8213_v63 }
 0x401   : > { %4158 = vperm.xlu1 %4771, %v4117_v56   ;;  %v8261_v9 = vpop.xlane.xlu1 %3430  ;;  %v3668_v56 = vrot.slane %v3484_v61, %v8223_v13 }
 0x402   : > { %4200 = vperm.xlu0 %4772, %v4131_v45   ;;  %v4148_v50 = vcombine.low %v3997_v41, %v4004_v5  ;;  %v1138_v41 = vadd.s32 4294967288, %v8307_v52 }
 0x403   : > { %v4124_v37 = vcombine.low %v3661_v24, %v3668_v56  ;;  %v3496_v24 = vmul.f32 0.00390625, %v8208_v12  ;;  %v1152_v12 = vadd.s32 4294967272, %v8307_v52 }
 0x404   : > { %v8273_v4 = vpop.xlane.xlu0 %3457  ;;  %v8334_v23 = vsub.s32 %v1138_v41, %v8213_v63  ;;  %v3504_v41 = vmul.f32 0.00390625, %v8244_v18 }
 0x405   : > { %4164 = vperm.xlu1 %4771, %v4119_v22   ;;  %v3486_v22 = vmul.f32 0.00390625, %v8167_v28 }
 0x406   : > { %4206 = vperm.xlu0 %4772, %v4133_v20   ;;  %v3488_v20 = vmul.f32 0.00390625, %v8180_v3  ;;  %v3745_v3 = vrot.slane %v3490_v10, %v8220_v44 }
 0x407   : > { %v3689_v47 = vrot.slane %v3486_v22, %v8220_v44  ;;  %v3696_v48 = vrot.slane %v3486_v22, %v8223_v13 }
 0x408   : > { %v3437_v62 = vpop.xlane.xlu1 %3436  ;;  %v3724_v28 = vrot.slane %v3488_v20, %v8223_v13  ;;  %v4130_v51 = vcombine.low %v3745_v3, %v3752_v35 }
 0x409   : > { %4167 = vperm.xlu1 %4771, %v4120_v31   ;;  %v3503_v49 = vmul.f32 0.00390625, %v3437_v62  ;;  %v4126_v32 = vcombine.low %v3689_v47, %v3696_v48  ;;  %v3717_v31 = vrot.slane %v3488_v20, %v8220_v44  ;;  %v3773_v62 = vrot.slane %v3492_v21, %v8220_v44 }
 0x40a   : > { %4212 = vperm.xlu0 %4772, %v4135_v6   ;;  %v3498_v47 = vmul.f32 0.00390625, %v8216_v59 }
 0x40b   : > { %v3927_v2 = vrot.slane %v3503_v49, %v8220_v44  ;;  %v3934_v53 = vrot.slane %v3503_v49, %v8223_v13  ;;  %v4128_v42 = vcombine.low %v3717_v31, %v3724_v28  ;;  %v4132_v39 = vcombine.low %v3773_v62, %v3780_v46 }
 0x40c   : > { %v8282_v27 = vpop.xlane.xlu0 %3463  ;;  %v8344_v28 = vsub.s32 %v1152_v12, %v8213_v63  ;;  %v3857_v3 = vrot.slane %v3498_v47, %v8220_v44  ;;  %v3864_v35 = vrot.slane %v3498_v47, %v8223_v13 }
 0x40d   : > { %4170 = vperm.xlu1 %4771, %v4121_v11   ;;  %v4143_v14 = vcombine.low %v3927_v2, %v3934_v53  ;;  %v3920_v2 = vrot.slane %v3502_v40, %v8223_v13  ;;  %v3512_v59 = vmul.f32 0.00390625, %v8282_v27 }
 0x40e   : > { %4218 = vperm.xlu0 %4772, %v4137_v7  }
 0x40f   : > { %v4142_v20 = vcombine.low %v3913_v26, %v3920_v2  ;;  %v3948_v26 = vrot.slane %v3504_v41, %v8223_v13 }
 0x411   : > { %4173 = vperm.xlu1 %4771, %v4122_v19   ;;  %v3494_v19 = vmul.f32 0.00390625, %v8203_v57 }
 0x412   : > { %4224 = vperm.xlu0 %4772, %v4139_v43   ;;  %v3443_v45 = vpop.xlane.xlu1 %3442 }
 0x413   : > { %v3505_v6 = vmul.f32 0.00390625, %v3443_v45  ;;  %v3801_v5 = vrot.slane %v3494_v19, %v8220_v44 }
 0x415   : > { %4176 = vperm.xlu1 %4771, %v4123_v17   ;;  %v3955_v55 = vrot.slane %v3505_v6, %v8220_v44  ;;  %v3962_v7 = vrot.slane %v3505_v6, %v8223_v13  ;;  %v3808_v17 = vrot.slane %v3494_v19, %v8223_v13 }
 0x416   : > { %4251 = vperm.xlu0 %4772, %v4148_v50   ;;  %v8292_v60 = vpop.xlane.xlu0 %3469  ;;  %v1145_v50 = vadd.s32 4294967280, %v8307_v52 }
 0x417   : > { %v4145_v43 = vcombine.low %v3955_v55, %v3962_v7  ;;  %v4134_v22 = vcombine.low %v3801_v5, %v3808_v17  ;;  %v4053_v55 = vrot.slane %v3512_v59, %v8220_v44  ;;  %v4060_v7 = vrot.slane %v3512_v59, %v8223_v13 }
 0x418   : > { %v8341_v31 = vsub.s32 %v1145_v50, %v8213_v63 }
 0x419   : > { %4179 = vperm.xlu1 %4771, %v4124_v37  }
 0x41a   : > { %4236 = vperm.xlu0 %4772, %v4143_v14   ;;  %v8290_v36 = vpop.xlane.xlu1 %3448  ;;  %v3829_v14 = vrot.slane %v3496_v24, %v8220_v44 }
 0x41b   : > { %v3507_v21 = vmul.f32 0.00390625, %v8290_v36  ;;  %v4138_v36 = vcombine.low %v3857_v3, %v3864_v35 }
 0x41d   : > { %4182 = vperm.xlu1 %4771, %v4125_v16   ;;  %v8297_v15 = vpop.xlane.xlu0 %3475  ;;  %v3836_v16 = vrot.slane %v3496_v24, %v8223_v13  ;;  %v3983_v62 = vrot.slane %v3507_v21, %v8220_v44  ;;  %v3990_v46 = vrot.slane %v3507_v21, %v8223_v13 }
 0x421   : > { %v3455_v1 = vpop.xlane.xlu1 %3454  ;;  %4185 = vperm.xlu1 %4771, %v4126_v32  }
 0x422   : > { %v3509_v29 = vmul.f32 0.00390625, %v3455_v1 }
 0x424   : > { %v4011_v11 = vrot.slane %v3509_v29, %v8220_v44  ;;  %v4018_v34 = vrot.slane %v3509_v29, %v8223_v13 }
 0x425   : > { %v3461_v54 = vpop.xlane.xlu1 %3460  ;;  %4191 = vperm.xlu1 %4771, %v4128_v42   ;;  %v1014_v30 = vpop.permute.xlu0 %1013  ;;  %v4136_v42 = vcombine.low %v3829_v14, %v3836_v16 }
 0x426   : > { %v4149_v38 = vcombine.low %v4011_v11, %v4018_v34  ;;  %v3511_v37 = vmul.f32 0.00390625, %v3461_v54  ;;  %v1137_v48 = vrot.slane %v1014_v30, %v8323_v8 }
 0x428   : > { %4254 = vperm.xlu0 %4772, %v4149_v38   ;;  %v4039_v1 = vrot.slane %v3511_v37, %v8220_v44  ;;  %v4046_v6 = vrot.slane %v3511_v37, %v8223_v13 }
 0x429   : > { %v3467_v33 = vpop.xlane.xlu1 %3466  ;;  %4197 = vperm.xlu1 %4771, %v4130_v51   ;;  %v8313_v61 = vpop.permute.xlu0 %1022  ;;  %v3500_v51 = vmul.f32 0.00390625, %v8229_v25 }
 0x42a   : > { %v3513_v49 = vmul.f32 0.00390625, %v3467_v33  ;;  %v1156_v54 = vrot.slane %v8313_v61, %v8344_v28  ;;  %v4151_v30 = vcombine.low %v4039_v1, %v4046_v6  ;;  %v3506_v1 = vmul.f32 0.00390625, %v8254_v58 }
 0x42b   : > { %v3892_v25 = vrot.slane %v3500_v51, %v8223_v13 }
 0x42c   : > { %v4067_v57 = vrot.slane %v3513_v49, %v8220_v44  ;;  %v4074_v56 = vrot.slane %v3513_v49, %v8223_v13  ;;  %4242 = vperm.xlu0 %4772, %v4145_v43   ;;  %v4152_v43 = vcombine.low %v4053_v55, %v4060_v7  ;;  %v3885_v49 = vrot.slane %v3500_v51, %v8220_v44 }
 0x42d   : > { %v8327_v53 = vpop.xlane.xlu1 %3472  ;;  %4203 = vperm.xlu1 %4771, %v4132_v39   ;;  %v8331_v45 = vpop.permute.xlu0 %1028  ;;  %v4147_v39 = vcombine.low %v3983_v62, %v3990_v46  ;;  %v3969_v3 = vrot.slane %v3506_v1, %v8220_v44  ;;  %v3516_v55 = vmul.f32 0.00390625, %v8297_v15 }
 0x42e   : > { %v4153_v0 = vcombine.low %v4067_v57, %v4074_v56  ;;  %v4140_v24 = vcombine.low %v3885_v49, %v3892_v25  ;;  %v3501_v57 = vmul.f32 0.00390625, %v8261_v9  ;;  %v3941_v56 = vrot.slane %v3504_v41, %v8220_v44 }
 0x42f   : > { %v3515_v21 = vmul.f32 0.00390625, %v8327_v53  ;;  %v4109_v53 = vrot.slane %v3516_v55, %v8220_v44  ;;  %v4116_v51 = vrot.slane %v3516_v55, %v8223_v13 }
 0x430   : > { %4266 = vperm.xlu0 %4772, %v4153_v0   ;;  %v3899_v18 = vrot.slane %v3501_v57, %v8220_v44  ;;  %v3906_v12 = vrot.slane %v3501_v57, %v8223_v13  ;;  %v4144_v37 = vcombine.low %v3941_v56, %v3948_v26  ;;  %v3510_v0 = vmul.f32 0.00390625, %v8273_v4 }
 0x431   : > { %v1017_v32 = vpop.permute.xlu1 %1016  ;;  %4209 = vperm.xlu1 %4771, %v4134_v22   ;;  %v8346_v10 = vpop.permute.xlu0 %1034  ;;  %v1187_v57 = vadd.s32 4294967232, %v8307_v52  ;;  %v1180_v56 = vadd.s32 4294967240, %v8307_v52 }
 0x432   : > { %v1142_v29 = vrot.slane %v1017_v32, %v8334_v23  ;;  %v4141_v14 = vcombine.low %v3899_v18, %v3906_v12  ;;  %v4025_v16 = vrot.slane %v3510_v0, %v8220_v44  ;;  %v4032_v47 = vrot.slane %v3510_v0, %v8223_v13 }
 0x434   : > { %v1144_v11 = vsel %vm1143_vm0, %v1142_v29, %v1137_v48  ;;  %4233 = vperm.xlu0 %4772, %v4142_v20   ;;  %v3514_v48 = vmul.f32 0.00390625, %v8292_v60  ;;  %v4150_v4 = vcombine.low %v4025_v16, %v4032_v47  ;;  %v3976_v60 = vrot.slane %v3506_v1, %v8223_v13 }
 0x435   : > { %v1020_v34 = vpop.permute.xlu1 %1019  ;;  %4215 = vperm.xlu1 %4771, %v4136_v42   ;;  %v8358_v27 = vpop.permute.xlu0 %1040  ;;  %v8451_v47 = vsub.s32 %v1187_v57, %v8213_v63  ;;  %v8455_v1 = vsub.s32 %v1180_v56, %v8213_v63 }
 0x436   : > { %v1149_v38 = vrot.slane %v1020_v34, %v8341_v31  ;;  %v4081_v6 = vrot.slane %v3514_v48, %v8220_v44  ;;  %v4088_v59 = vrot.slane %v3514_v48, %v8223_v13  ;;  %v4146_v34 = vcombine.low %v3969_v3, %v3976_v60 }
 0x438   : > { %v1151_v19 = vsel %vm1150_vm1, %v1149_v38, %v1144_v11  ;;  %4260 = vperm.xlu0 %4772, %v4151_v30   ;;  %v4154_v35 = vcombine.low %v4081_v6, %v4088_v59  ;;  %v4102_v30 = vrot.slane %v3515_v21, %v8223_v13  ;;  %v1166_v13 = vadd.s32 4294967256, %v8307_v52 }
 0x439   : > { %v8367_v40 = vpop.permute.xlu1 %1025  ;;  %4221 = vperm.xlu1 %4771, %v4138_v36   ;;  %v8370_v33 = vsel %vm1157_vm2, %v1156_v54, %v1151_v19  ;;  %v8372_v61 = vpop.permute.xlu0 %1046  ;;  %v4095_v54 = vrot.slane %v3515_v21, %v8220_v44  ;;  %v4156_v19 = vcombine.low %v4109_v53, %v4116_v51  ;;  %v1173_v44 = vadd.s32 4294967248, %v8307_v52 }
 0x43a   : > { %v1208_v26 = vrot.slane %v8372_v61, %v8334_v23 }
 0x43b   : > { %v4155_v36 = vcombine.low %v4095_v54, %v4102_v30  ;;  %v8443_v0 = vsub.s32 %v1173_v44, %v8213_v63 }
 0x43c   : > { %4263 = vperm.xlu0 %4772, %v4152_v43  }
 0x43d   : > { %v8377_v5 = vpop.permute.xlu1 %1031  ;;  %4248 = vperm.xlu1 %4771, %v4147_v39   ;;  %v8379_v17 = vpop.permute.xlu0 %1052  ;;  %v1159_v39 = vadd.s32 4294967264, %v8307_v52 }
 0x43e   : > { %v1218_v6 = vrot.slane %v8379_v17, %v8344_v28 }
 0x43f   : > { %v8439_v12 = vsub.s32 %v1159_v39, %v8213_v63 }
 0x441   : > { %v8384_v2 = vpop.permute.xlu1 %1037  ;;  %4227 = vperm.xlu1 %4771, %v4140_v24   ;;  %v8386_v50 = vpop.permute.xlu0 %1058 }
 0x445   : > { %4239 = vperm.xlu1 %4771, %v4144_v37   ;;  %v8391_v22 = vpop.permute.xlu1 %1043  ;;  %v8393_v9 = vpop.permute.xlu0 %1064 }
 0x446   : > { %v1204_v16 = vrot.slane %v8391_v22, %v8323_v8 }
 0x449   : > { %4230 = vperm.xlu1 %4771, %v4141_v14   ;;  %v8398_v20 = vpop.permute.xlu1 %1049  ;;  %v8400_v32 = vpop.permute.xlu0 %1070  ;;  %v8446_v14 = vsub.s32 %v1166_v13, %v8213_v63 }
 0x44a   : > { %v1213_v3 = vrot.slane %v8398_v20, %v8341_v31 }
 0x44b   : > { %v1170_v21 = vrot.slane %v8331_v45, %v8446_v14  ;;  %v1228_v30 = vrot.slane %v8386_v50, %v8446_v14 }
 0x44d   : > { %4257 = vperm.xlu1 %4771, %v4150_v4   ;;  %v8405_v29 = vpop.permute.xlu1 %1055  ;;  %v1077_v42 = vpop.permute.xlu0 %1076  ;;  %v1209_v4 = vsel %vm1143_vm0, %v1208_v26, %v1204_v16 }
 0x44e   : > { %v1257_v37 = vrot.slane %v1077_v42, %v8334_v23  ;;  %v1163_v42 = vrot.slane %v8367_v40, %v8439_v12  ;;  %v1214_v20 = vsel %vm1150_vm1, %v1213_v3, %v1209_v4  ;;  %v1223_v51 = vrot.slane %v8405_v29, %v8439_v12 }
 0x450   : > { %v1165_v40 = vsel %vm1164_vm3, %v1163_v42, %v8370_v33 }
 0x451   : > { %4269 = vperm.xlu1 %4771, %v4154_v35   ;;  %v8410_v11 = vpop.permute.xlu1 %1061  ;;  %v8412_v58 = vpop.permute.xlu0 %1082 }
 0x452   : > { %v1267_v35 = vrot.slane %v8412_v58, %v8344_v28  ;;  %v1219_v58 = vsel %vm1157_vm2, %v1218_v6, %v1214_v20  ;;  %v4282_v6 = vadd.s32 4294967208, %v8307_v52 }
 0x453   : > { %v1224_v29 = vsel %vm1164_vm3, %v1223_v51, %v1219_v58 }
 0x454   : > { %v1229_v13 = vsel %vm1171_vm4, %v1228_v30, %v1224_v29 }
 0x455   : > { %4245 = vperm.xlu1 %4771, %v4146_v34   ;;  %v8417_v7 = vpop.permute.xlu1 %1067  ;;  %v8419_v38 = vpop.permute.xlu0 %1088  ;;  %v1194_v34 = vadd.s32 4294967224, %v8307_v52 }
 0x456   : > { %v1243_v3 = vrot.slane %v8417_v7, %v8451_v47  ;;  %v1191_v7 = vrot.slane %v8384_v2, %v8451_v47 }
 0x459   : > { %4272 = vperm.xlu1 %4771, %v4155_v36   ;;  %v1074_v62 = vpop.permute.xlu1 %1073  ;;  %v8423_v46 = vpop.permute.xlu0 %1094 }
 0x45a   : > { %v1253_v61 = vrot.slane %v1074_v62, %v8323_v8  ;;  %v1277_v62 = vrot.slane %v8419_v38, %v8446_v14  ;;  %v1238_v38 = vrot.slane %v8393_v9, %v8455_v1  ;;  %v1287_v9 = vrot.slane %v8423_v46, %v8455_v1 }
 0x45c   : > { %v1258_v60 = vsel %vm1143_vm0, %v1257_v37, %v1253_v61  ;;  %v1184_v61 = vrot.slane %v8346_v10, %v8455_v1 }
 0x45d   : > { %4275 = vperm.xlu1 %4771, %v4156_v19   ;;  %v1080_v43 = vpop.permute.xlu1 %1079  ;;  %v8425_v49 = vpop.permute.xlu0 %1100 }
 0x45e   : > { %v1262_v17 = vrot.slane %v1080_v43, %v8341_v31  ;;  %v1172_v43 = vsel %vm1171_vm4, %v1170_v21, %v1165_v40 }
 0x460   : > { %v1263_v55 = vsel %vm1150_vm1, %v1262_v17, %v1258_v60 }
 0x461   : > { %v1086_v15 = vpop.permute.xlu1 %1085  ;;  %v1107_v25 = vpop.permute.xlu0 %1106  ;;  %v1268_v33 = vsel %vm1157_vm2, %v1267_v35, %v1263_v55 }
 0x462   : > { %v1306_v22 = vrot.slane %v1107_v25, %v8334_v23  ;;  %v8490_v25 = vsub.s32 %v1194_v34, %v8213_v63  ;;  %v1272_v39 = vrot.slane %v1086_v15, %v8439_v12 }
 0x464   : > { %v1273_v57 = vsel %vm1164_vm3, %v1272_v39, %v1268_v33  ;;  %v1198_v34 = vrot.slane %v8358_v27, %v8490_v25 }
 0x465   : > { %v8427_v41 = vpop.permute.xlu1 %1091  ;;  %v1113_v24 = vpop.permute.xlu0 %1112  ;;  %v1278_v37 = vsel %vm1171_vm4, %v1277_v62, %v1273_v57 }
 0x466   : > { %v1316_v53 = vrot.slane %v1113_v24, %v8344_v28  ;;  %v1177_v24 = vrot.slane %v8377_v5, %v8443_v0  ;;  %v1233_v5 = vrot.slane %v8410_v11, %v8443_v0  ;;  %v1282_v4 = vrot.slane %v8427_v41, %v8443_v0 }
 0x468   : > { %v1234_v11 = vsel %vm1178_vm5, %v1233_v5, %v1229_v13  ;;  %v1283_v10 = vsel %vm1178_vm5, %v1282_v4, %v1278_v37 }
 0x469   : > { %v8436_v18 = vpop.permute.xlu1 %1097  ;;  %v1119_v48 = vpop.permute.xlu0 %1118  ;;  %v1288_v60 = vsel %vm1185_vm6, %v1287_v9, %v1283_v10 }
 0x46a   : > { %v1326_v15 = vrot.slane %v1119_v48, %v8446_v14  ;;  %v1179_v14 = vsel %vm1178_vm5, %v1177_v24, %v1172_v43  ;;  %v1248_v48 = vrot.slane %v8400_v32, %v8490_v25  ;;  %v1297_v32 = vrot.slane %v8425_v49, %v8490_v25 }
 0x46b   : > { %v1186_v21 = vsel %vm1185_vm6, %v1184_v61, %v1179_v14  ;;  %v1292_v17 = vrot.slane %v8436_v18, %v8451_v47  ;;  %v8540_v49 = vsub.s32 %v4282_v6, %v8213_v63  ;;  %v4296_v24 = vadd.s32 4294967192, %v8307_v52 }
 0x46c   : > { %v1193_v58 = vsel %vm1192_vm7, %v1191_v7, %v1186_v21 }
 0x46d   : > { %v1104_v59 = vpop.permute.xlu1 %1103  ;;  %v1125_v50 = vpop.permute.xlu0 %1124  ;;  %v1293_v20 = vsel %vm1192_vm7, %v1292_v17, %v1288_v60 }
 0x46e   : > { %v1302_v54 = vrot.slane %v1104_v59, %v8323_v8  ;;  %v1336_v42 = vrot.slane %v1125_v50, %v8455_v1  ;;  %v4277_v1 = vadd.s32 4294967216, %v8307_v52  ;;  %v1298_v2 = vsel %vm1199_vm8, %v1297_v32, %v1293_v20 }
 0x470   : > { %v1307_v36 = vsel %vm1143_vm0, %v1306_v22, %v1302_v54  ;;  %v8553_v51 = vsub.s32 %v4277_v1, %v8213_v63 }
 0x471   : > { %v1110_v45 = vpop.permute.xlu1 %1109  ;;  %v1131_v59 = vpop.permute.xlu0 %1130 }
 0x472   : > { %v1311_v19 = vrot.slane %v1110_v45, %v8341_v31  ;;  %v1346_v18 = vrot.slane %v1131_v59, %v8490_v25  ;;  %v4289_v45 = vadd.s32 4294967200, %v8307_v52 }
 0x474   : > { %v1312_v44 = vsel %vm1150_vm1, %v1311_v19, %v1307_v36  ;;  %v8561_v25 = vsub.s32 %v4289_v45, %v8213_v63 }
 0x475   : > { %v1116_v56 = vpop.permute.xlu1 %1115  ;;  %v1317_v26 = vsel %vm1157_vm2, %v1316_v53, %v1312_v44  ;;  %v4162_v36 = vpop.permute.xlu0 %4161  ;;  %v1200_v53 = vsel %vm1199_vm8, %v1198_v34, %v1193_v58 }
 0x476   : > { %v1321_v16 = vrot.slane %v1116_v56, %v8439_v12  ;;  %v1239_v12 = vsel %vm1185_vm6, %v1238_v38, %v1234_v11  ;;  %v8572_v56 = vsub.s32 %v4296_v24, %v8213_v63 }
 0x477   : > { %v1244_v54 = vsel %vm1192_vm7, %v1243_v3, %v1239_v12 }
 0x478   : > { %v1322_v46 = vsel %vm1164_vm3, %v1321_v16, %v1317_v26  ;;  %v4303_v26 = vadd.s32 4294967184, %v8307_v52  ;;  %v4310_v16 = vadd.s32 4294967176, %v8307_v52  ;;  %vm4308_vm3 = vcmask 982912  }
 0x479   : > { %v1122_v22 = vpop.permute.xlu1 %1121  ;;  %v1327_v41 = vsel %vm1171_vm4, %v1326_v15, %v1322_v46  ;;  %v4189_v13 = vpop.permute.xlu0 %4188  ;;  %vm4315_vm4 = vcmask 1048512  }
 0x47a   : > { %v1331_v35 = vrot.slane %v1122_v22, %v8443_v0  ;;  %v1249_v0 = vsel %vm1199_vm8, %v1248_v48, %v1244_v54  ;;  %v8578_v9 = vsub.s32 %v4303_v26, %v8213_v63  ;;  %v8584_v11 = vsub.s32 %v4310_v16, %v8213_v63 }
 0x47b   : > { %v1349_v33 = vsel %vm1348_vm9, %v1249_v0, %v1200_v53 }
 0x47c   : > { %v1332_v40 = vsel %vm1178_vm5, %v1331_v35, %v1327_v41  ;;  %v1351_v19 = vsel %vm1350_vm10, %v1298_v2, %v1349_v33  ;;  %vm4488_vm5 = vcmask 1044096  }
 0x47d   : > { %v1128_v27 = vpop.permute.xlu1 %1127  ;;  %v1337_v30 = vsel %vm1185_vm6, %v1336_v42, %v1332_v40  ;;  %v4195_v61 = vpop.permute.xlu0 %4194  ;;  %vm4489_vm6 = vcmask 261124  }
 0x47e   : > { %v1341_v55 = vrot.slane %v1128_v27, %v8451_v47  ;;  %v4286_v47 = vrot.slane %v4162_v36, %v8540_v49 }
 0x480   : > { %v1342_v62 = vsel %vm1192_vm7, %v1341_v55, %v1337_v30 }
 0x481   : > { %v4159_v50 = vpop.permute.xlu1 %4158  ;;  %v1347_v43 = vsel %vm1199_vm8, %v1346_v18, %v1342_v62  ;;  %v8587_v59 = vpop.permute.xlu0 %4200 }
 0x482   : > { %v1353_v39 = vsel %vm1352_vm11, %v1347_v43, %v1351_v19  ;;  %v4281_v29 = vrot.slane %v4159_v50, %v8553_v51  ;;  %v4339_v19 = vrot.slane %v4189_v13, %v8553_v51 }
 0x483   : > { %1356 = vst.msk [vmem:[%s8566_s25] sm:$0xf] %vm1355_vm12, %v1353_v39  ;;  %v4348_v39 = vrot.slane %v4195_v61, %v8561_v25 }
 0x484   : > { %v4288_v44 = vsel %vm4287_vm13, %v4286_v47, %v4281_v29 }
 0x485   : > { %v4165_v38 = vpop.permute.xlu1 %4164  ;;  %v4207_v22 = vpop.permute.xlu0 %4206 }
 0x486   : > { %v4293_v57 = vrot.slane %v4165_v38, %v8561_v25  ;;  %v4358_v38 = vrot.slane %v8587_v59, %v8578_v9 }
 0x488   : > { %v4295_v15 = vsel %vm4294_vm14, %v4293_v57, %v4288_v44  ;;  %v4368_v57 = vrot.slane %v4207_v22, %v8323_v8 }
 0x489   : > { %v4168_v5 = vpop.permute.xlu1 %4167  ;;  %v8600_v32 = vpop.permute.xlu0 %4212 }
 0x48a   : > { %v4300_v37 = vrot.slane %v4168_v5, %v8572_v56  ;;  %v4377_v13 = vrot.slane %v8600_v32, %v8341_v31 }
 0x48c   : > { %v4302_v4 = vsel %vm4301_vm15, %v4300_v37, %v4295_v15 }
 0x48d   : > { %v4171_v6 = vpop.permute.xlu1 %4170  ;;  %v4219_v21 = vpop.permute.xlu0 %4218 }
 0x48e   : > { %v4307_v14 = vrot.slane %v4171_v6, %v8578_v9  ;;  %v4387_v26 = vrot.slane %v4219_v21, %v8553_v51 }
 0x490   : > { %v4309_v48 = vsel %vm4308_vm3, %v4307_v14, %v4302_v4 }
 0x491   : > { %v4174_v46 = vpop.permute.xlu1 %4173  ;;  %v4225_v17 = vpop.permute.xlu0 %4224 }
 0x492   : > { %v4314_v12 = vrot.slane %v4174_v46, %v8584_v11  ;;  %v4396_v46 = vrot.slane %v4225_v17, %v8561_v25 }
 0x494   : > { %v8591_v52 = vsel %vm4315_vm4, %v4314_v12, %v4309_v48 }
 0x495   : > { %v4177_v10 = vpop.permute.xlu1 %4176  ;;  %v4252_v54 = vpop.permute.xlu0 %4251 }
 0x496   : > { %v4320_v42 = vrot.slane %v4177_v10, %v8323_v8  ;;  %v4439_v44 = vrot.slane %v4252_v54, %v8540_v49 }
 0x499   : > { %v4180_v41 = vpop.permute.xlu1 %4179  ;;  %v4237_v0 = vpop.permute.xlu0 %4236 }
 0x49a   : > { %v4324_v3 = vrot.slane %v4180_v41, %v8334_v23  ;;  %v4416_v12 = vrot.slane %v4237_v0, %v8323_v8 }
 0x49c   : > { %v8596_v63 = vsel %vm1143_vm0, %v4324_v3, %v4320_v42 }
 0x49d   : > { %v8598_v60 = vpop.permute.xlu1 %4182 }
 0x49e   : > { %v4329_v22 = vrot.slane %v8598_v60, %v8341_v31 }
 0x4a1   : > { %v8602_v35 = vpop.permute.xlu1 %4185 }
 0x4a2   : > { %v4334_v41 = vrot.slane %v8602_v35, %v8344_v28 }
 0x4a5   : > { %v4192_v34 = vpop.permute.xlu1 %4191 }
 0x4a6   : > { %v4343_v53 = vrot.slane %v4192_v34, %v8540_v49 }
 0x4a7   : > { %v4255_v30 = vpop.permute.xlu0 %4254 }
 0x4a8   : > { %v4344_v50 = vsel %vm4287_vm13, %v4343_v53, %v4339_v19 }
 0x4a9   : > { %v4198_v1 = vpop.permute.xlu1 %4197  ;;  %v4349_v15 = vsel %vm4294_vm14, %v4348_v39, %v4344_v50 }
 0x4aa   : > { %v4353_v43 = vrot.slane %v4198_v1, %v8572_v56 }
 0x4ab   : > { %v8606_v58 = vpop.permute.xlu0 %4242 }
 0x4ac   : > { %v4354_v37 = vsel %vm4301_vm15, %v4353_v43, %v4349_v15 }
 0x4ad   : > { %v4204_v7 = vpop.permute.xlu1 %4203 }
 0x4ae   : > { %v4363_v59 = vrot.slane %v4204_v7, %v8584_v11 }
 0x4af   : > { %v8608_v45 = vpop.permute.xlu0 %4266 }
 0x4b1   : > { %v4210_v40 = vpop.permute.xlu1 %4209 }
 0x4b2   : > { %v4372_v16 = vrot.slane %v4210_v40, %v8334_v23  ;;  %v4425_v40 = vrot.slane %v8606_v58, %v8341_v31 }
 0x4b3   : > { %v4234_v33 = vpop.permute.xlu0 %4233 }
 0x4b4   : > { %v4373_v3 = vsel %vm1143_vm0, %v4372_v16, %v4368_v57 }
 0x4b5   : > { %v8604_v20 = vpop.permute.xlu1 %4215 }
 0x4b7   : > { %v4261_v5 = vpop.permute.xlu0 %4260 }
 0x4b8   : > { %v4454_v60 = vrot.slane %v4261_v5, %v8578_v9 }
 0x4b9   : > { %v4222_v27 = vpop.permute.xlu1 %4221 }
 0x4ba   : > { %v4391_v24 = vrot.slane %v4222_v27, %v8540_v49  ;;  %v4444_v49 = vrot.slane %v4255_v30, %v8561_v25  ;;  %v4382_v25 = vrot.slane %v8604_v20, %v8344_v28  ;;  %v4378_v27 = vsel %vm1150_vm1, %v4377_v13, %v4373_v3 }
 0x4bb   : > { %v4264_v35 = vpop.permute.xlu0 %4263  ;;  %v4411_v30 = vrot.slane %v4234_v33, %v8584_v11 }
 0x4bc   : > { %v4392_v6 = vsel %vm4287_vm13, %v4391_v24, %v4387_v26  ;;  %v4459_v58 = vrot.slane %v4264_v35, %v8584_v11 }
 0x4bd   : > { %v4249_v18 = vpop.permute.xlu1 %4248  ;;  %v4397_v32 = vsel %vm4294_vm14, %v4396_v46, %v4392_v6 }
 0x4be   : > { %v4435_v47 = vrot.slane %v4249_v18, %v8553_v51 }
 0x4c0   : > { %v4440_v61 = vsel %vm4287_vm13, %v4439_v44, %v4435_v47 }
 0x4c1   : > { %v4228_v2 = vpop.permute.xlu1 %4227  ;;  %v4445_v42 = vsel %vm4294_vm14, %v4444_v49, %v4440_v61 }
 0x4c2   : > { %v4401_v14 = vrot.slane %v4228_v2, %v8572_v56  ;;  %v4383_v2 = vsel %vm1157_vm2, %v4382_v25, %v4378_v27 }
 0x4c4   : > { %v4402_v34 = vsel %vm4301_vm15, %v4401_v14, %v4397_v32 }
 0x4c5   : > { %v4240_v55 = vpop.permute.xlu1 %4239 }
 0x4c6   : > { %v4420_v48 = vrot.slane %v4240_v55, %v8334_v23  ;;  %v4464_v55 = vrot.slane %v8608_v45, %v8323_v8 }
 0x4c8   : > { %v4421_v17 = vsel %vm1143_vm0, %v4420_v48, %v4416_v12 }
 0x4c9   : > { %v4231_v36 = vpop.permute.xlu1 %4230 }
 0x4ca   : > { %v4406_v10 = vrot.slane %v4231_v36, %v8578_v9  ;;  %v4426_v36 = vsel %vm1150_vm1, %v4425_v40, %v4421_v17 }
 0x4cc   : > { %v4407_v0 = vsel %vm4308_vm3, %v4406_v10, %v4402_v34 }
 0x4cd   : > { %v4258_v62 = vpop.permute.xlu1 %4257  ;;  %v4412_v53 = vsel %vm4315_vm4, %v4411_v30, %v4407_v0 }
 0x4ce   : > { %v4449_v4 = vrot.slane %v4258_v62, %v8572_v56  ;;  %v4359_v56 = vsel %vm4308_vm3, %v4358_v38, %v4354_v37 }
 0x4cf   : > { %v4364_v54 = vsel %vm4315_vm4, %v4363_v59, %v4359_v56 }
 0x4d0   : > { %v4450_v21 = vsel %vm4301_vm15, %v4449_v4, %v4445_v42  ;;  %v4480_v45 = vsel %vm1348_vm9, %v4364_v54, %v8591_v52 }
 0x4d1   : > { %v4270_v29 = vpop.permute.xlu1 %4269  ;;  %v4455_v9 = vsel %vm4308_vm3, %v4454_v60, %v4450_v21  ;;  %v4481_v43 = vsel %vm1350_vm10, %v4412_v53, %v4480_v45 }
 0x4d2   : > { %v4468_v20 = vrot.slane %v4270_v29, %v8334_v23  ;;  %v4330_v23 = vsel %vm1150_vm1, %v4329_v22, %v8596_v63  ;;  %v4460_v19 = vsel %vm4315_vm4, %v4459_v58, %v4455_v9 }
 0x4d3   : > { %v4482_v24 = vsel %vm1352_vm11, %v4460_v19, %v4481_v43 }
 0x4d4   : > { %v4469_v8 = vsel %vm1143_vm0, %v4468_v20, %v4464_v55  ;;  %vm4490_vm0 = vmor %vm4489_vm6, %vm4488_vm5 }
 0x4d5   : > { %v4246_v51 = vpop.permute.xlu1 %4245 }
 0x4d6   : > { %v4430_v1 = vrot.slane %v4246_v51, %v8344_v28 }
 0x4d8   : > { %v4431_v33 = vsel %vm1157_vm2, %v4430_v1, %v4426_v36 }
 0x4d9   : > { %v4273_v7 = vpop.permute.xlu1 %4272 }
 0x4da   : > { %v4473_v18 = vrot.slane %v4273_v7, %v8341_v31  ;;  %v4335_v31 = vsel %vm1157_vm2, %v4334_v41, %v4330_v23 }
 0x4db   : > { %v4483_v63 = vsel %vm1348_vm9, %v4383_v2, %v4335_v31 }
 0x4dc   : > { %v4474_v50 = vsel %vm1150_vm1, %v4473_v18, %v4469_v8  ;;  %v4484_v47 = vsel %vm1350_vm10, %v4431_v33, %v4483_v63 }
 0x4dd   : > { %v4276_v62 = vpop.permute.xlu1 %4275 }
 0x4de   : > { %v4478_v11 = vrot.slane %v4276_v62, %v8344_v28 }
 0x4e0   : > { %v4479_v39 = vsel %vm1157_vm2, %v4478_v11, %v4474_v50 }
 0x4e1   : > { %v4485_v28 = vsel %vm1352_vm11, %v4479_v39, %v4484_v47 }
 0x4e2   : > { %v4486_v52 = vcombine.low %v4482_v24, %v4485_v28 }
 0x4e4   : > { %4491 = vst.msk [vmem:[%s8566_s25] sm:$0xff] %vm4490_vm0, %v4486_v52 }
 0x4e5   : > { %5486 = shalt.err (!%p5483_p1)
}
 0x4e6   : > { %s5487_s26 = scalar_lea.hbm %s8690_s30, 128  ;;  %s5491_s14 = scalar_lea.hbm %s8736_s2, 512 }
 0x4e7   : > { %p5488_p3 = scmp.ne.s32.totalorder %s8690_s30, %s5487_s26  ;;  %p5492_p0 = scmp.lt.u32.totalorder %s8690_s30, %s8736_s2 }
 0x4e8   : > { %p5493_p2 = scmp.lt.u32.totalorder %s5491_s14, %s5487_s26  ;;  %p5495_p6 = scmp.lt.u32.totalorder %s5487_s26, %s8690_s30 }
 0x4e9   : > { %p5489_p4 = pnand %p5488_p3, %p9147_p10 }
 0x4ea   : > { %p5494_p7 = por %p5493_p2, %p5492_p0 }
 0x4eb   : > { %p5490_p5 = pneg %p5489_p4 }
 0x4ec   : > { %p5496_p11 = por %p5495_p6, %p5494_p7 }
 0x4ee   : > { %p5497_p12 = pnand %p5496_p11, %p5490_p5 }
 0x4f0   : > { %5500 = shalt.err (!%p5497_p12)
}
 0x4f1   : > { %4714 = dma.vmem_to_hbm [thread:$0]  (%p9147_p10), %s8692_s4, 128, %s8690_s30, %s4493_s13  }
 0x4f2 PF: > { %p4725_p8 = scmp.ge.s32.totalorder %s5539_s12, 2  ;;  %s4519_s22 = sand.u32 1, %s5527_s9  }
 0x4f3   : > { %p9148_p9 = scmp.ne.s32.totalorder %s8839_s21, 0  ;;  %s4520_s23 = scalar_lea.sflag [#allocation4], %s4519_s22 }
 0x4f5   : > { %p4721_p13 = pnand %p4725_p8, %p9148_p9 }
 0x4f7   : > { %5522 = dma.done.wait (!%p4721_p13), %s4520_s23, 128  }
 0x4f8   : > { %5524 = vsyncadd (!%p4721_p13), %s4520_s23, 4294967168  ;;  %p15_p1 = scmp.ge.s32.totalorder %s5592_s15, 6   ;;  %s9149_s9 = smov %s5531_s10 }
 0x4f9   : > { %s9150_s10 = smov %s5535_s11  ;;  %s9151_s11 = smov %s5604_s18 }
 0x4fa   : > { %s9152_s12 = smov %s5592_s15  ;;  %17 = sbr.rel (!%p15_p1) target bundleno = 5 (0x5), region = 73 }
 0x501   :  { %4525 = vsyncpa [#allocation3], 1 }
 0x502   :  { %4527 = vsyncpa [#allocation3 + $0x1], 1 }
 0x503   :  { %4528 = vsyncpa [#allocation4], 1 }
 0x504   :  { %4530 = vsyncpa [#allocation4 + $0x1], 1 }

</bundles_post_ra>
